<compile_context>
chip_gen: v5e
topology: v5e:2x2
jax: 0.10.0
libtpu: 0.0.40
codegen_flags: <defaults>
</compile_context>

<pallas_src>
import numpy as np
import jax
import jax.numpy as jnp
from jax.experimental import pallas as pl
from jax.experimental.pallas import tpu as pltpu


# ---------------------------------------------------------------------------
# Host-side precomputation: gather matrices, BN folding, stem im2col
# ---------------------------------------------------------------------------

def _tap_gather_matrices(n, h, w, kh, kw, stride, pad):
    """Per-tap one-hot row-gather matrices for a conv on an (N*H*W, C) layout.

    S[t] has shape (N*Ho*Wo, N*H*W); S[t][ro, ri] = 1 iff output row ro reads
    input row ri for tap t (all-zero rows == zero padding).  valid[t] marks
    output rows whose source for tap t is in bounds.
    """
    ho = (h + 2 * pad - kh) // stride + 1
    wo = (w + 2 * pad - kw) // stride + 1
    taps = kh * kw
    s = np.zeros((taps, n * ho * wo, n * h * w), np.float32)
    valid = np.zeros((taps, n * ho * wo, 1), np.float32)
    for t in range(taps):
        di, dj = t // kw, t % kw
        for b in range(n):
            for yo in range(ho):
                yi = yo * stride + di - pad
                if yi < 0 or yi >= h:
                    continue
                for xo in range(wo):
                    xi = xo * stride + dj - pad
                    if xi < 0 or xi >= w:
                        continue
                    ro = b * ho * wo + yo * wo + xo
                    s[t, ro, b * h * w + yi * w + xi] = 1.0
                    valid[t, ro, 0] = 1.0
    return s, valid, ho, wo


def _fold_bn(w, bn):
    """Fold inference BN scale into conv weights; return (w_folded, shift(1,C))."""
    scale, shift = bn
    return w * scale.reshape(1, 1, 1, -1), shift.reshape(1, -1)


def _prep_gather_conv(w, bn, n, h, w_sp, stride, pad):
    """(S, W, b) kernel operands for one conv+BN; prunes taps that are all padding."""
    kh, kw, cin, cout = w.shape
    wf, shift = _fold_bn(w, bn)
    wmat = np.asarray(wf).astype(np.float32).reshape(kh * kw, cin, cout)
    s, valid, ho, wo = _tap_gather_matrices(n, h, w_sp, kh, kw, stride, pad)
    keep = [t for t in range(kh * kw) if valid[t].any()]
    ops = (jnp.asarray(s[keep], jnp.bfloat16),       # (T, Ro, Ri)
           jnp.asarray(wmat[keep], jnp.bfloat16),    # (T, Cin, Cout)
           jnp.asarray(shift, jnp.float32))          # (1, Cout)
    return ops, ho, wo


def _im2col(x, kh, kw, stride, pad):
    """Host/XLA im2col (used only for the stem conv on the raw network input)."""
    n, h, w, c = x.shape
    ho = (h + 2 * pad - kh) // stride + 1
    wo = (w + 2 * pad - kw) // stride + 1
    xp = jnp.pad(x, ((0, 0), (pad, pad), (pad, pad), (0, 0))) if pad else x
    cols = [xp[:, i:i + stride * ho:stride, j:j + stride * wo:stride, :]
            for i in range(kh) for j in range(kw)]
    patches = jnp.stack(cols, axis=3)                 # (N, Ho, Wo, kh*kw, C)
    return patches.reshape(n * ho * wo, kh * kw * c)  # tap-major, channel-minor


# ---------------------------------------------------------------------------
# The single fused Pallas kernel
# ---------------------------------------------------------------------------

def _make_fused_kernel(down_flags, use_avg_matmul):
    """Build the fused kernel body.

    Ref pop order (must match the operand assembly in build_model):
      stem patches, stem W, stem shift,
      maxpool S, maxpool -inf bias,
      per BasicBlock: [conv1 S, W, b] [conv2 S, W, b] [downsample S, W, b]?,
      (optional) avg-pool matrix.
    """

    def kernel(*refs):
        out_ref = refs[-1]
        it = iter(refs[:-1])

        def gather_conv(x_bf, relu):
            """sum_t (S_t @ x) @ W_t + shift  (BN scale pre-folded into W)."""
            s_ref, w_ref, b_ref = next(it), next(it), next(it)
            acc = None
            for t in range(s_ref.shape[0]):
                g = jnp.dot(s_ref[t], x_bf, preferred_element_type=jnp.float32)
                c = jnp.dot(g.astype(jnp.bfloat16), w_ref[t],
                            preferred_element_type=jnp.float32)
                acc = c if acc is None else acc + c
            y = acc + b_ref[...]
            return jnp.maximum(y, 0.0) if relu else y

        # Stem: conv1_m (7x7, s5, p3) + bn1 + relu; patches come from XLA im2col.
        p_ref, w_ref, b_ref = next(it), next(it), next(it)
        x = jnp.dot(p_ref[...], w_ref[...], preferred_element_type=jnp.float32)
        x = jnp.maximum(x + b_ref[...], 0.0)           # (N*Ho*Wo, 64) f32

        # MaxPool2d(3, stride=2, padding=1): max over one-hot tap gathers,
        # out-of-bounds taps pushed to -inf via the precomputed bias.
        s_ref, mb_ref = next(it), next(it)
        x_bf = x.astype(jnp.bfloat16)
        pooled = None
        for t in range(s_ref.shape[0]):
            g = jnp.dot(s_ref[t], x_bf, preferred_element_type=jnp.float32) + mb_ref[t]
            pooled = g if pooled is None else jnp.maximum(pooled, g)
        x = pooled

        # Residual trunk (BasicBlocks).
        for has_down in down_flags:
            x_bf = x.astype(jnp.bfloat16)
            out = gather_conv(x_bf, relu=True)                       # conv1+bn1+relu
            out = gather_conv(out.astype(jnp.bfloat16), relu=False)  # conv2+bn2
            identity = gather_conv(x_bf, relu=False) if has_down else x
            x = jnp.maximum(out + identity, 0.0)                     # add + relu

        # AdaptiveAvgPool2d((1,1)) + flatten.
        if use_avg_matmul:
            a_ref = next(it)
            x = jnp.dot(a_ref[...], x.astype(jnp.bfloat16),
                        preferred_element_type=jnp.float32)
        out_ref[...] = x

    return kernel


# ---------------------------------------------------------------------------
# Model builder: precompute all VMEM-resident operands, return a jitted forward
# ---------------------------------------------------------------------------

def build_model(params, input_shape):
    n, _, h, w = input_shape

    consts = []          # static (data-independent) kernel inputs, in pop order
    down_flags = []

    # Stem conv1_m (7x7, stride 5, pad 3) + bn1.
    k1, s1, p1 = 7, 5, 3
    w1, b1 = _fold_bn(params["conv1_w"], params["bn1"])
    kh, kw, cin, cout = params["conv1_w"].shape
    consts += [jnp.asarray(w1, jnp.float32).reshape(kh * kw * cin, cout)
               .astype(jnp.bfloat16),
               jnp.asarray(b1, jnp.float32)]
    h, w = (h + 2 * p1 - k1) // s1 + 1, (w + 2 * p1 - k1) // s1 + 1

    # MaxPool2d(3, stride=2, padding=1).
    s_mp, valid_mp, h2, w2 = _tap_gather_matrices(n, h, w, 3, 3, 2, 1)
    consts += [jnp.asarray(s_mp, jnp.bfloat16),
               jnp.asarray((valid_mp - 1.0) * 1e30, jnp.float32)]
    h, w = h2, w2

    # Residual trunk.
    for layer in params["layers"]:
        for blk in layer:
            stride = blk["stride"]
            ops1, ho, wo = _prep_gather_conv(blk["conv1_w"], blk["bn1"],
                                             n, h, w, stride, 1)
            ops2, _, _ = _prep_gather_conv(blk["conv2_w"], blk["bn2"],
                                           n, ho, wo, 1, 1)
            consts += list(ops1) + list(ops2)
            if "down_w" in blk:
                opsd, _, _ = _prep_gather_conv(blk["down_w"], blk["dbn"],
                                               n, h, w, stride, 0)
                consts += list(opsd)
                down_flags.append(True)
            else:
                down_flags.append(False)
            h, w = ho, wo

    # Global average pool + flatten (identity when the final map is 1x1).
    hw = h * w
    use_avg = hw != 1
    if use_avg:
        avg = np.zeros((n, n * hw), np.float32)
        for b in range(n):
            avg[b, b * hw:(b + 1) * hw] = 1.0 / hw
        consts.append(jnp.asarray(avg, jnp.bfloat16))

    out_dim = params["layers"][-1][-1]["conv2_w"].shape[-1]
    consts = tuple(consts)
    kernel = _make_fused_kernel(tuple(down_flags), use_avg)

    vmem_spec = pl.BlockSpec(memory_space=pltpu.MemorySpace.VMEM)
    fused_call = pl.pallas_call(
        kernel,
        out_shape=jax.ShapeDtypeStruct((n, out_dim), jnp.float32),
        in_specs=[vmem_spec] * (1 + len(consts)),
        out_specs=vmem_spec,
    )

    def forward(x_nchw):
        x = jnp.transpose(x_nchw, (0, 2, 3, 1)).astype(jnp.float32)   # NCHW -> NHWC
        patches = _im2col(x, k1, k1, s1, p1).astype(jnp.bfloat16)
        return fused_call(patches, *consts)

    return jax.jit(forward)


# ---------------------------------------------------------------------------
# Deterministic parameter init (kaiming_normal fan_out/relu convs, BN identity)
# ---------------------------------------------------------------------------

def kaiming_conv(key, kh, kw, cin, cout):
    fan_out = cout * kh * kw
    std = (2.0 / fan_out) ** 0.5
    return std * jax.random.normal(key, (kh, kw, cin, cout), jnp.float32)


def bn_params(c, eps=1e-5):
    gamma = jnp.ones((c,), jnp.float32)
    beta = jnp.zeros((c,), jnp.float32)
    mean = jnp.zeros((c,), jnp.float32)
    var = jnp.ones((c,), jnp.float32)
    scale = gamma / jnp.sqrt(var + eps)
    shift = beta - mean * scale
    return scale, shift


def init_params(key, bev_ch=4, layers=(1, 1, 1)):
    keys = jax.random.split(key, 64)
    ki = iter(range(64))
    params = {
        "conv1_w": kaiming_conv(keys[next(ki)], 7, 7, bev_ch, 64),
        "bn1": bn_params(64),
        "layers": [],
    }
    inplanes = 64
    for planes, nblocks, stride in zip((64, 128, 256), layers, (1, 2, 2)):
        blocks = []
        for bi in range(nblocks):
            s = stride if bi == 0 else 1
            blk = {
                "stride": s,
                "conv1_w": kaiming_conv(keys[next(ki)], 3, 3, inplanes, planes),
                "bn1": bn_params(planes),
                "conv2_w": kaiming_conv(keys[next(ki)], 3, 3, planes, planes),
                "bn2": bn_params(planes),
            }
            if s != 1 or inplanes != planes:      # BasicBlock expansion == 1
                blk["down_w"] = kaiming_conv(keys[next(ki)], 1, 1, inplanes, planes)
                blk["dbn"] = bn_params(planes)
            inplanes = planes
            blocks.append(blk)
        params["layers"].append(blocks)
    return params


if __name__ == "__main__":
    key = jax.random.PRNGKey(0)
    pkey, xkey = jax.random.split(key)

    # RN_BEV_condition(BasicBlock, layers=[1, 1, 1], BEV_ch=4)
    params = init_params(pkey, bev_ch=4, layers=(1, 1, 1))

    # Input in PyTorch NCHW convention: (batch=2, BEV_ch=4, H=40, W=40)
    x = jax.random.normal(xkey, (2, 4, 40, 40), jnp.float32)

    forward = build_model(params, x.shape)
    out = jax.block_until_ready(forward(x))

    assert out.shape == (2, 256), out.shape
    assert bool(jnp.all(jnp.isfinite(out)))
    print("KERNEL_OK")
</pallas_src>

<mosaic_0001>
module attributes {stable_mosaic.version = 11 : i64} {
  func.func @kernel(%arg0: memref<128x196xbf16, #tpu.memory_space<vmem>>, %arg1: memref<196x64xbf16, #tpu.memory_space<vmem>>, %arg2: memref<1x64xf32, #tpu.memory_space<vmem>>, %arg3: memref<9x32x128xbf16, #tpu.memory_space<vmem>>, %arg4: memref<9x32x1xf32, #tpu.memory_space<vmem>>, %arg5: memref<9x32x32xbf16, #tpu.memory_space<vmem>>, %arg6: memref<9x64x64xbf16, #tpu.memory_space<vmem>>, %arg7: memref<1x64xf32, #tpu.memory_space<vmem>>, %arg8: memref<9x32x32xbf16, #tpu.memory_space<vmem>>, %arg9: memref<9x64x64xbf16, #tpu.memory_space<vmem>>, %arg10: memref<1x64xf32, #tpu.memory_space<vmem>>, %arg11: memref<9x8x32xbf16, #tpu.memory_space<vmem>>, %arg12: memref<9x64x128xbf16, #tpu.memory_space<vmem>>, %arg13: memref<1x128xf32, #tpu.memory_space<vmem>>, %arg14: memref<9x8x8xbf16, #tpu.memory_space<vmem>>, %arg15: memref<9x128x128xbf16, #tpu.memory_space<vmem>>, %arg16: memref<1x128xf32, #tpu.memory_space<vmem>>, %arg17: memref<1x8x32xbf16, #tpu.memory_space<vmem>>, %arg18: memref<1x64x128xbf16, #tpu.memory_space<vmem>>, %arg19: memref<1x128xf32, #tpu.memory_space<vmem>>, %arg20: memref<4x2x8xbf16, #tpu.memory_space<vmem>>, %arg21: memref<4x128x256xbf16, #tpu.memory_space<vmem>>, %arg22: memref<1x256xf32, #tpu.memory_space<vmem>>, %arg23: memref<1x2x2xbf16, #tpu.memory_space<vmem>>, %arg24: memref<1x256x256xbf16, #tpu.memory_space<vmem>>, %arg25: memref<1x256xf32, #tpu.memory_space<vmem>>, %arg26: memref<1x2x8xbf16, #tpu.memory_space<vmem>>, %arg27: memref<1x128x256xbf16, #tpu.memory_space<vmem>>, %arg28: memref<1x256xf32, #tpu.memory_space<vmem>>, %arg29: memref<2x256xf32, #tpu.memory_space<vmem>>) attributes {dimension_semantics = [], scalar_prefetch = 0 : i64, scratch_operands = 0 : i64, tpu.core_type = #tpu.core_type<tc>} {
    %c0 = arith.constant 0 : index
    %c0_0 = arith.constant 0 : index
    %0 = vector.load %arg0[%c0, %c0_0] : memref<128x196xbf16, #tpu.memory_space<vmem>>, vector<128x196xbf16>
    %c0_1 = arith.constant 0 : index
    %c0_2 = arith.constant 0 : index
    %1 = vector.load %arg1[%c0_1, %c0_2] : memref<196x64xbf16, #tpu.memory_space<vmem>>, vector<196x64xbf16>
    %cst = arith.constant dense<0.000000e+00> : vector<128x64xf32>
    %2 = tpu.matmul %0, %1, %cst {dimension_numbers = #tpu.dot_dimension_numbers<[1], [0], [0], [1], [0, 0, 1, 1], [], []>} : vector<128x196xbf16>, vector<196x64xbf16>, vector<128x64xf32> -> vector<128x64xf32>
    %c0_3 = arith.constant 0 : index
    %c0_4 = arith.constant 0 : index
    %3 = vector.load %arg2[%c0_3, %c0_4] : memref<1x64xf32, #tpu.memory_space<vmem>>, vector<1x64xf32>
    %4 = vector.broadcast %3 : vector<1x64xf32> to vector<128x64xf32>
    %5 = arith.addf %2, %4 : vector<128x64xf32>
    %cst_5 = arith.constant 0.000000e+00 : f32
    %6 = vector.broadcast %cst_5 : f32 to vector<128x64xf32>
    %7 = arith.maximumf %5, %6 : vector<128x64xf32>
    %8 = arith.truncf %7 : vector<128x64xf32> to vector<128x64xbf16>
    %c0_6 = arith.constant 0 : index
    %c0_7 = arith.constant 0 : index
    %c0_8 = arith.constant 0 : index
    %9 = vector.load %arg3[%c0_6, %c0_7, %c0_8] : memref<9x32x128xbf16, #tpu.memory_space<vmem>>, vector<1x32x128xbf16>
    %10 = vector.shape_cast %9 : vector<1x32x128xbf16> to vector<32x128xbf16>
    %cst_9 = arith.constant dense<0.000000e+00> : vector<32x64xf32>
    %11 = tpu.matmul %10, %8, %cst_9 {dimension_numbers = #tpu.dot_dimension_numbers<[1], [0], [0], [1], [0, 0, 1, 1], [], []>} : vector<32x128xbf16>, vector<128x64xbf16>, vector<32x64xf32> -> vector<32x64xf32>
    %c0_10 = arith.constant 0 : index
    %c0_11 = arith.constant 0 : index
    %c0_12 = arith.constant 0 : index
    %12 = vector.load %arg4[%c0_10, %c0_11, %c0_12] : memref<9x32x1xf32, #tpu.memory_space<vmem>>, vector<1x32x1xf32>
    %13 = vector.shape_cast %12 : vector<1x32x1xf32> to vector<32x1xf32>
    %14 = vector.broadcast %13 : vector<32x1xf32> to vector<32x64xf32>
    %15 = arith.addf %11, %14 : vector<32x64xf32>
    %c1 = arith.constant 1 : index
    %c0_13 = arith.constant 0 : index
    %c0_14 = arith.constant 0 : index
    %16 = vector.load %arg3[%c1, %c0_13, %c0_14] : memref<9x32x128xbf16, #tpu.memory_space<vmem>>, vector<1x32x128xbf16>
    %17 = vector.shape_cast %16 : vector<1x32x128xbf16> to vector<32x128xbf16>
    %cst_15 = arith.constant dense<0.000000e+00> : vector<32x64xf32>
    %18 = tpu.matmul %17, %8, %cst_15 {dimension_numbers = #tpu.dot_dimension_numbers<[1], [0], [0], [1], [0, 0, 1, 1], [], []>} : vector<32x128xbf16>, vector<128x64xbf16>, vector<32x64xf32> -> vector<32x64xf32>
    %c1_16 = arith.constant 1 : index
    %c0_17 = arith.constant 0 : index
    %c0_18 = arith.constant 0 : index
    %19 = vector.load %arg4[%c1_16, %c0_17, %c0_18] : memref<9x32x1xf32, #tpu.memory_space<vmem>>, vector<1x32x1xf32>
    %20 = vector.shape_cast %19 : vector<1x32x1xf32> to vector<32x1xf32>
    %21 = vector.broadcast %20 : vector<32x1xf32> to vector<32x64xf32>
    %22 = arith.addf %18, %21 : vector<32x64xf32>
    %23 = arith.maximumf %15, %22 : vector<32x64xf32>
    %c2 = arith.constant 2 : index
    %c0_19 = arith.constant 0 : index
    %c0_20 = arith.constant 0 : index
    %24 = vector.load %arg3[%c2, %c0_19, %c0_20] : memref<9x32x128xbf16, #tpu.memory_space<vmem>>, vector<1x32x128xbf16>
    %25 = vector.shape_cast %24 : vector<1x32x128xbf16> to vector<32x128xbf16>
    %cst_21 = arith.constant dense<0.000000e+00> : vector<32x64xf32>
    %26 = tpu.matmul %25, %8, %cst_21 {dimension_numbers = #tpu.dot_dimension_numbers<[1], [0], [0], [1], [0, 0, 1, 1], [], []>} : vector<32x128xbf16>, vector<128x64xbf16>, vector<32x64xf32> -> vector<32x64xf32>
    %c2_22 = arith.constant 2 : index
    %c0_23 = arith.constant 0 : index
    %c0_24 = arith.constant 0 : index
    %27 = vector.load %arg4[%c2_22, %c0_23, %c0_24] : memref<9x32x1xf32, #tpu.memory_space<vmem>>, vector<1x32x1xf32>
    %28 = vector.shape_cast %27 : vector<1x32x1xf32> to vector<32x1xf32>
    %29 = vector.broadcast %28 : vector<32x1xf32> to vector<32x64xf32>
    %30 = arith.addf %26, %29 : vector<32x64xf32>
    %31 = arith.maximumf %23, %30 : vector<32x64xf32>
    %c3 = arith.constant 3 : index
    %c0_25 = arith.constant 0 : index
    %c0_26 = arith.constant 0 : index
    %32 = vector.load %arg3[%c3, %c0_25, %c0_26] : memref<9x32x128xbf16, #tpu.memory_space<vmem>>, vector<1x32x128xbf16>
    %33 = vector.shape_cast %32 : vector<1x32x128xbf16> to vector<32x128xbf16>
    %cst_27 = arith.constant dense<0.000000e+00> : vector<32x64xf32>
    %34 = tpu.matmul %33, %8, %cst_27 {dimension_numbers = #tpu.dot_dimension_numbers<[1], [0], [0], [1], [0, 0, 1, 1], [], []>} : vector<32x128xbf16>, vector<128x64xbf16>, vector<32x64xf32> -> vector<32x64xf32>
    %c3_28 = arith.constant 3 : index
    %c0_29 = arith.constant 0 : index
    %c0_30 = arith.constant 0 : index
    %35 = vector.load %arg4[%c3_28, %c0_29, %c0_30] : memref<9x32x1xf32, #tpu.memory_space<vmem>>, vector<1x32x1xf32>
    %36 = vector.shape_cast %35 : vector<1x32x1xf32> to vector<32x1xf32>
    %37 = vector.broadcast %36 : vector<32x1xf32> to vector<32x64xf32>
    %38 = arith.addf %34, %37 : vector<32x64xf32>
    %39 = arith.maximumf %31, %38 : vector<32x64xf32>
    %c4 = arith.constant 4 : index
    %c0_31 = arith.constant 0 : index
    %c0_32 = arith.constant 0 : index
    %40 = vector.load %arg3[%c4, %c0_31, %c0_32] : memref<9x32x128xbf16, #tpu.memory_space<vmem>>, vector<1x32x128xbf16>
    %41 = vector.shape_cast %40 : vector<1x32x128xbf16> to vector<32x128xbf16>
    %cst_33 = arith.constant dense<0.000000e+00> : vector<32x64xf32>
    %42 = tpu.matmul %41, %8, %cst_33 {dimension_numbers = #tpu.dot_dimension_numbers<[1], [0], [0], [1], [0, 0, 1, 1], [], []>} : vector<32x128xbf16>, vector<128x64xbf16>, vector<32x64xf32> -> vector<32x64xf32>
    %c4_34 = arith.constant 4 : index
    %c0_35 = arith.constant 0 : index
    %c0_36 = arith.constant 0 : index
    %43 = vector.load %arg4[%c4_34, %c0_35, %c0_36] : memref<9x32x1xf32, #tpu.memory_space<vmem>>, vector<1x32x1xf32>
    %44 = vector.shape_cast %43 : vector<1x32x1xf32> to vector<32x1xf32>
    %45 = vector.broadcast %44 : vector<32x1xf32> to vector<32x64xf32>
    %46 = arith.addf %42, %45 : vector<32x64xf32>
    %47 = arith.maximumf %39, %46 : vector<32x64xf32>
    %c5 = arith.constant 5 : index
    %c0_37 = arith.constant 0 : index
    %c0_38 = arith.constant 0 : index
    %48 = vector.load %arg3[%c5, %c0_37, %c0_38] : memref<9x32x128xbf16, #tpu.memory_space<vmem>>, vector<1x32x128xbf16>
    %49 = vector.shape_cast %48 : vector<1x32x128xbf16> to vector<32x128xbf16>
    %cst_39 = arith.constant dense<0.000000e+00> : vector<32x64xf32>
    %50 = tpu.matmul %49, %8, %cst_39 {dimension_numbers = #tpu.dot_dimension_numbers<[1], [0], [0], [1], [0, 0, 1, 1], [], []>} : vector<32x128xbf16>, vector<128x64xbf16>, vector<32x64xf32> -> vector<32x64xf32>
    %c5_40 = arith.constant 5 : index
    %c0_41 = arith.constant 0 : index
    %c0_42 = arith.constant 0 : index
    %51 = vector.load %arg4[%c5_40, %c0_41, %c0_42] : memref<9x32x1xf32, #tpu.memory_space<vmem>>, vector<1x32x1xf32>
    %52 = vector.shape_cast %51 : vector<1x32x1xf32> to vector<32x1xf32>
    %53 = vector.broadcast %52 : vector<32x1xf32> to vector<32x64xf32>
    %54 = arith.addf %50, %53 : vector<32x64xf32>
    %55 = arith.maximumf %47, %54 : vector<32x64xf32>
    %c6 = arith.constant 6 : index
    %c0_43 = arith.constant 0 : index
    %c0_44 = arith.constant 0 : index
    %56 = vector.load %arg3[%c6, %c0_43, %c0_44] : memref<9x32x128xbf16, #tpu.memory_space<vmem>>, vector<1x32x128xbf16>
    %57 = vector.shape_cast %56 : vector<1x32x128xbf16> to vector<32x128xbf16>
    %cst_45 = arith.constant dense<0.000000e+00> : vector<32x64xf32>
    %58 = tpu.matmul %57, %8, %cst_45 {dimension_numbers = #tpu.dot_dimension_numbers<[1], [0], [0], [1], [0, 0, 1, 1], [], []>} : vector<32x128xbf16>, vector<128x64xbf16>, vector<32x64xf32> -> vector<32x64xf32>
    %c6_46 = arith.constant 6 : index
    %c0_47 = arith.constant 0 : index
    %c0_48 = arith.constant 0 : index
    %59 = vector.load %arg4[%c6_46, %c0_47, %c0_48] : memref<9x32x1xf32, #tpu.memory_space<vmem>>, vector<1x32x1xf32>
    %60 = vector.shape_cast %59 : vector<1x32x1xf32> to vector<32x1xf32>
    %61 = vector.broadcast %60 : vector<32x1xf32> to vector<32x64xf32>
    %62 = arith.addf %58, %61 : vector<32x64xf32>
    %63 = arith.maximumf %55, %62 : vector<32x64xf32>
    %c7 = arith.constant 7 : index
    %c0_49 = arith.constant 0 : index
    %c0_50 = arith.constant 0 : index
    %64 = vector.load %arg3[%c7, %c0_49, %c0_50] : memref<9x32x128xbf16, #tpu.memory_space<vmem>>, vector<1x32x128xbf16>
    %65 = vector.shape_cast %64 : vector<1x32x128xbf16> to vector<32x128xbf16>
    %cst_51 = arith.constant dense<0.000000e+00> : vector<32x64xf32>
    %66 = tpu.matmul %65, %8, %cst_51 {dimension_numbers = #tpu.dot_dimension_numbers<[1], [0], [0], [1], [0, 0, 1, 1], [], []>} : vector<32x128xbf16>, vector<128x64xbf16>, vector<32x64xf32> -> vector<32x64xf32>
    %c7_52 = arith.constant 7 : index
    %c0_53 = arith.constant 0 : index
    %c0_54 = arith.constant 0 : index
    %67 = vector.load %arg4[%c7_52, %c0_53, %c0_54] : memref<9x32x1xf32, #tpu.memory_space<vmem>>, vector<1x32x1xf32>
    %68 = vector.shape_cast %67 : vector<1x32x1xf32> to vector<32x1xf32>
    %69 = vector.broadcast %68 : vector<32x1xf32> to vector<32x64xf32>
    %70 = arith.addf %66, %69 : vector<32x64xf32>
    %71 = arith.maximumf %63, %70 : vector<32x64xf32>
    %c8 = arith.constant 8 : index
    %c0_55 = arith.constant 0 : index
    %c0_56 = arith.constant 0 : index
    %72 = vector.load %arg3[%c8, %c0_55, %c0_56] : memref<9x32x128xbf16, #tpu.memory_space<vmem>>, vector<1x32x128xbf16>
    %73 = vector.shape_cast %72 : vector<1x32x128xbf16> to vector<32x128xbf16>
    %cst_57 = arith.constant dense<0.000000e+00> : vector<32x64xf32>
    %74 = tpu.matmul %73, %8, %cst_57 {dimension_numbers = #tpu.dot_dimension_numbers<[1], [0], [0], [1], [0, 0, 1, 1], [], []>} : vector<32x128xbf16>, vector<128x64xbf16>, vector<32x64xf32> -> vector<32x64xf32>
    %c8_58 = arith.constant 8 : index
    %c0_59 = arith.constant 0 : index
    %c0_60 = arith.constant 0 : index
    %75 = vector.load %arg4[%c8_58, %c0_59, %c0_60] : memref<9x32x1xf32, #tpu.memory_space<vmem>>, vector<1x32x1xf32>
    %76 = vector.shape_cast %75 : vector<1x32x1xf32> to vector<32x1xf32>
    %77 = vector.broadcast %76 : vector<32x1xf32> to vector<32x64xf32>
    %78 = arith.addf %74, %77 : vector<32x64xf32>
    %79 = arith.maximumf %71, %78 : vector<32x64xf32>
    %80 = arith.truncf %79 : vector<32x64xf32> to vector<32x64xbf16>
    %c0_61 = arith.constant 0 : index
    %c0_62 = arith.constant 0 : index
    %c0_63 = arith.constant 0 : index
    %81 = vector.load %arg5[%c0_61, %c0_62, %c0_63] : memref<9x32x32xbf16, #tpu.memory_space<vmem>>, vector<1x32x32xbf16>
    %82 = vector.shape_cast %81 : vector<1x32x32xbf16> to vector<32x32xbf16>
    %cst_64 = arith.constant dense<0.000000e+00> : vector<32x64xf32>
    %83 = tpu.matmul %82, %80, %cst_64 {dimension_numbers = #tpu.dot_dimension_numbers<[1], [0], [0], [1], [0, 0, 1, 1], [], []>} : vector<32x32xbf16>, vector<32x64xbf16>, vector<32x64xf32> -> vector<32x64xf32>
    %84 = arith.truncf %83 : vector<32x64xf32> to vector<32x64xbf16>
    %c0_65 = arith.constant 0 : index
    %c0_66 = arith.constant 0 : index
    %c0_67 = arith.constant 0 : index
    %85 = vector.load %arg6[%c0_65, %c0_66, %c0_67] : memref<9x64x64xbf16, #tpu.memory_space<vmem>>, vector<1x64x64xbf16>
    %86 = vector.shape_cast %85 : vector<1x64x64xbf16> to vector<64x64xbf16>
    %cst_68 = arith.constant dense<0.000000e+00> : vector<32x64xf32>
    %87 = tpu.matmul %84, %86, %cst_68 {dimension_numbers = #tpu.dot_dimension_numbers<[1], [0], [0], [1], [0, 0, 1, 1], [], []>} : vector<32x64xbf16>, vector<64x64xbf16>, vector<32x64xf32> -> vector<32x64xf32>
    %c1_69 = arith.constant 1 : index
    %c0_70 = arith.constant 0 : index
    %c0_71 = arith.constant 0 : index
    %88 = vector.load %arg5[%c1_69, %c0_70, %c0_71] : memref<9x32x32xbf16, #tpu.memory_space<vmem>>, vector<1x32x32xbf16>
    %89 = vector.shape_cast %88 : vector<1x32x32xbf16> to vector<32x32xbf16>
    %cst_72 = arith.constant dense<0.000000e+00> : vector<32x64xf32>
    %90 = tpu.matmul %89, %80, %cst_72 {dimension_numbers = #tpu.dot_dimension_numbers<[1], [0], [0], [1], [0, 0, 1, 1], [], []>} : vector<32x32xbf16>, vector<32x64xbf16>, vector<32x64xf32> -> vector<32x64xf32>
    %91 = arith.truncf %90 : vector<32x64xf32> to vector<32x64xbf16>
    %c1_73 = arith.constant 1 : index
    %c0_74 = arith.constant 0 : index
    %c0_75 = arith.constant 0 : index
    %92 = vector.load %arg6[%c1_73, %c0_74, %c0_75] : memref<9x64x64xbf16, #tpu.memory_space<vmem>>, vector<1x64x64xbf16>
    %93 = vector.shape_cast %92 : vector<1x64x64xbf16> to vector<64x64xbf16>
    %cst_76 = arith.constant dense<0.000000e+00> : vector<32x64xf32>
    %94 = tpu.matmul %91, %93, %cst_76 {dimension_numbers = #tpu.dot_dimension_numbers<[1], [0], [0], [1], [0, 0, 1, 1], [], []>} : vector<32x64xbf16>, vector<64x64xbf16>, vector<32x64xf32> -> vector<32x64xf32>
    %95 = arith.addf %87, %94 : vector<32x64xf32>
    %c2_77 = arith.constant 2 : index
    %c0_78 = arith.constant 0 : index
    %c0_79 = arith.constant 0 : index
    %96 = vector.load %arg5[%c2_77, %c0_78, %c0_79] : memref<9x32x32xbf16, #tpu.memory_space<vmem>>, vector<1x32x32xbf16>
    %97 = vector.shape_cast %96 : vector<1x32x32xbf16> to vector<32x32xbf16>
    %cst_80 = arith.constant dense<0.000000e+00> : vector<32x64xf32>
    %98 = tpu.matmul %97, %80, %cst_80 {dimension_numbers = #tpu.dot_dimension_numbers<[1], [0], [0], [1], [0, 0, 1, 1], [], []>} : vector<32x32xbf16>, vector<32x64xbf16>, vector<32x64xf32> -> vector<32x64xf32>
    %99 = arith.truncf %98 : vector<32x64xf32> to vector<32x64xbf16>
    %c2_81 = arith.constant 2 : index
    %c0_82 = arith.constant 0 : index
    %c0_83 = arith.constant 0 : index
    %100 = vector.load %arg6[%c2_81, %c0_82, %c0_83] : memref<9x64x64xbf16, #tpu.memory_space<vmem>>, vector<1x64x64xbf16>
    %101 = vector.shape_cast %100 : vector<1x64x64xbf16> to vector<64x64xbf16>
    %cst_84 = arith.constant dense<0.000000e+00> : vector<32x64xf32>
    %102 = tpu.matmul %99, %101, %cst_84 {dimension_numbers = #tpu.dot_dimension_numbers<[1], [0], [0], [1], [0, 0, 1, 1], [], []>} : vector<32x64xbf16>, vector<64x64xbf16>, vector<32x64xf32> -> vector<32x64xf32>
    %103 = arith.addf %95, %102 : vector<32x64xf32>
    %c3_85 = arith.constant 3 : index
    %c0_86 = arith.constant 0 : index
    %c0_87 = arith.constant 0 : index
    %104 = vector.load %arg5[%c3_85, %c0_86, %c0_87] : memref<9x32x32xbf16, #tpu.memory_space<vmem>>, vector<1x32x32xbf16>
    %105 = vector.shape_cast %104 : vector<1x32x32xbf16> to vector<32x32xbf16>
    %cst_88 = arith.constant dense<0.000000e+00> : vector<32x64xf32>
    %106 = tpu.matmul %105, %80, %cst_88 {dimension_numbers = #tpu.dot_dimension_numbers<[1], [0], [0], [1], [0, 0, 1, 1], [], []>} : vector<32x32xbf16>, vector<32x64xbf16>, vector<32x64xf32> -> vector<32x64xf32>
    %107 = arith.truncf %106 : vector<32x64xf32> to vector<32x64xbf16>
    %c3_89 = arith.constant 3 : index
    %c0_90 = arith.constant 0 : index
    %c0_91 = arith.constant 0 : index
    %108 = vector.load %arg6[%c3_89, %c0_90, %c0_91] : memref<9x64x64xbf16, #tpu.memory_space<vmem>>, vector<1x64x64xbf16>
    %109 = vector.shape_cast %108 : vector<1x64x64xbf16> to vector<64x64xbf16>
    %cst_92 = arith.constant dense<0.000000e+00> : vector<32x64xf32>
    %110 = tpu.matmul %107, %109, %cst_92 {dimension_numbers = #tpu.dot_dimension_numbers<[1], [0], [0], [1], [0, 0, 1, 1], [], []>} : vector<32x64xbf16>, vector<64x64xbf16>, vector<32x64xf32> -> vector<32x64xf32>
    %111 = arith.addf %103, %110 : vector<32x64xf32>
    %c4_93 = arith.constant 4 : index
    %c0_94 = arith.constant 0 : index
    %c0_95 = arith.constant 0 : index
    %112 = vector.load %arg5[%c4_93, %c0_94, %c0_95] : memref<9x32x32xbf16, #tpu.memory_space<vmem>>, vector<1x32x32xbf16>
    %113 = vector.shape_cast %112 : vector<1x32x32xbf16> to vector<32x32xbf16>
    %cst_96 = arith.constant dense<0.000000e+00> : vector<32x64xf32>
    %114 = tpu.matmul %113, %80, %cst_96 {dimension_numbers = #tpu.dot_dimension_numbers<[1], [0], [0], [1], [0, 0, 1, 1], [], []>} : vector<32x32xbf16>, vector<32x64xbf16>, vector<32x64xf32> -> vector<32x64xf32>
    %115 = arith.truncf %114 : vector<32x64xf32> to vector<32x64xbf16>
    %c4_97 = arith.constant 4 : index
    %c0_98 = arith.constant 0 : index
    %c0_99 = arith.constant 0 : index
    %116 = vector.load %arg6[%c4_97, %c0_98, %c0_99] : memref<9x64x64xbf16, #tpu.memory_space<vmem>>, vector<1x64x64xbf16>
    %117 = vector.shape_cast %116 : vector<1x64x64xbf16> to vector<64x64xbf16>
    %cst_100 = arith.constant dense<0.000000e+00> : vector<32x64xf32>
    %118 = tpu.matmul %115, %117, %cst_100 {dimension_numbers = #tpu.dot_dimension_numbers<[1], [0], [0], [1], [0, 0, 1, 1], [], []>} : vector<32x64xbf16>, vector<64x64xbf16>, vector<32x64xf32> -> vector<32x64xf32>
    %119 = arith.addf %111, %118 : vector<32x64xf32>
    %c5_101 = arith.constant 5 : index
    %c0_102 = arith.constant 0 : index
    %c0_103 = arith.constant 0 : index
    %120 = vector.load %arg5[%c5_101, %c0_102, %c0_103] : memref<9x32x32xbf16, #tpu.memory_space<vmem>>, vector<1x32x32xbf16>
    %121 = vector.shape_cast %120 : vector<1x32x32xbf16> to vector<32x32xbf16>
    %cst_104 = arith.constant dense<0.000000e+00> : vector<32x64xf32>
    %122 = tpu.matmul %121, %80, %cst_104 {dimension_numbers = #tpu.dot_dimension_numbers<[1], [0], [0], [1], [0, 0, 1, 1], [], []>} : vector<32x32xbf16>, vector<32x64xbf16>, vector<32x64xf32> -> vector<32x64xf32>
    %123 = arith.truncf %122 : vector<32x64xf32> to vector<32x64xbf16>
    %c5_105 = arith.constant 5 : index
    %c0_106 = arith.constant 0 : index
    %c0_107 = arith.constant 0 : index
    %124 = vector.load %arg6[%c5_105, %c0_106, %c0_107] : memref<9x64x64xbf16, #tpu.memory_space<vmem>>, vector<1x64x64xbf16>
    %125 = vector.shape_cast %124 : vector<1x64x64xbf16> to vector<64x64xbf16>
    %cst_108 = arith.constant dense<0.000000e+00> : vector<32x64xf32>
    %126 = tpu.matmul %123, %125, %cst_108 {dimension_numbers = #tpu.dot_dimension_numbers<[1], [0], [0], [1], [0, 0, 1, 1], [], []>} : vector<32x64xbf16>, vector<64x64xbf16>, vector<32x64xf32> -> vector<32x64xf32>
    %127 = arith.addf %119, %126 : vector<32x64xf32>
    %c6_109 = arith.constant 6 : index
    %c0_110 = arith.constant 0 : index
    %c0_111 = arith.constant 0 : index
    %128 = vector.load %arg5[%c6_109, %c0_110, %c0_111] : memref<9x32x32xbf16, #tpu.memory_space<vmem>>, vector<1x32x32xbf16>
    %129 = vector.shape_cast %128 : vector<1x32x32xbf16> to vector<32x32xbf16>
    %cst_112 = arith.constant dense<0.000000e+00> : vector<32x64xf32>
    %130 = tpu.matmul %129, %80, %cst_112 {dimension_numbers = #tpu.dot_dimension_numbers<[1], [0], [0], [1], [0, 0, 1, 1], [], []>} : vector<32x32xbf16>, vector<32x64xbf16>, vector<32x64xf32> -> vector<32x64xf32>
    %131 = arith.truncf %130 : vector<32x64xf32> to vector<32x64xbf16>
    %c6_113 = arith.constant 6 : index
    %c0_114 = arith.constant 0 : index
    %c0_115 = arith.constant 0 : index
    %132 = vector.load %arg6[%c6_113, %c0_114, %c0_115] : memref<9x64x64xbf16, #tpu.memory_space<vmem>>, vector<1x64x64xbf16>
    %133 = vector.shape_cast %132 : vector<1x64x64xbf16> to vector<64x64xbf16>
    %cst_116 = arith.constant dense<0.000000e+00> : vector<32x64xf32>
    %134 = tpu.matmul %131, %133, %cst_116 {dimension_numbers = #tpu.dot_dimension_numbers<[1], [0], [0], [1], [0, 0, 1, 1], [], []>} : vector<32x64xbf16>, vector<64x64xbf16>, vector<32x64xf32> -> vector<32x64xf32>
    %135 = arith.addf %127, %134 : vector<32x64xf32>
    %c7_117 = arith.constant 7 : index
    %c0_118 = arith.constant 0 : index
    %c0_119 = arith.constant 0 : index
    %136 = vector.load %arg5[%c7_117, %c0_118, %c0_119] : memref<9x32x32xbf16, #tpu.memory_space<vmem>>, vector<1x32x32xbf16>
    %137 = vector.shape_cast %136 : vector<1x32x32xbf16> to vector<32x32xbf16>
    %cst_120 = arith.constant dense<0.000000e+00> : vector<32x64xf32>
    %138 = tpu.matmul %137, %80, %cst_120 {dimension_numbers = #tpu.dot_dimension_numbers<[1], [0], [0], [1], [0, 0, 1, 1], [], []>} : vector<32x32xbf16>, vector<32x64xbf16>, vector<32x64xf32> -> vector<32x64xf32>
    %139 = arith.truncf %138 : vector<32x64xf32> to vector<32x64xbf16>
    %c7_121 = arith.constant 7 : index
    %c0_122 = arith.constant 0 : index
    %c0_123 = arith.constant 0 : index
    %140 = vector.load %arg6[%c7_121, %c0_122, %c0_123] : memref<9x64x64xbf16, #tpu.memory_space<vmem>>, vector<1x64x64xbf16>
    %141 = vector.shape_cast %140 : vector<1x64x64xbf16> to vector<64x64xbf16>
    %cst_124 = arith.constant dense<0.000000e+00> : vector<32x64xf32>
    %142 = tpu.matmul %139, %141, %cst_124 {dimension_numbers = #tpu.dot_dimension_numbers<[1], [0], [0], [1], [0, 0, 1, 1], [], []>} : vector<32x64xbf16>, vector<64x64xbf16>, vector<32x64xf32> -> vector<32x64xf32>
    %143 = arith.addf %135, %142 : vector<32x64xf32>
    %c8_125 = arith.constant 8 : index
    %c0_126 = arith.constant 0 : index
    %c0_127 = arith.constant 0 : index
    %144 = vector.load %arg5[%c8_125, %c0_126, %c0_127] : memref<9x32x32xbf16, #tpu.memory_space<vmem>>, vector<1x32x32xbf16>
    %145 = vector.shape_cast %144 : vector<1x32x32xbf16> to vector<32x32xbf16>
    %cst_128 = arith.constant dense<0.000000e+00> : vector<32x64xf32>
    %146 = tpu.matmul %145, %80, %cst_128 {dimension_numbers = #tpu.dot_dimension_numbers<[1], [0], [0], [1], [0, 0, 1, 1], [], []>} : vector<32x32xbf16>, vector<32x64xbf16>, vector<32x64xf32> -> vector<32x64xf32>
    %147 = arith.truncf %146 : vector<32x64xf32> to vector<32x64xbf16>
    %c8_129 = arith.constant 8 : index
    %c0_130 = arith.constant 0 : index
    %c0_131 = arith.constant 0 : index
    %148 = vector.load %arg6[%c8_129, %c0_130, %c0_131] : memref<9x64x64xbf16, #tpu.memory_space<vmem>>, vector<1x64x64xbf16>
    %149 = vector.shape_cast %148 : vector<1x64x64xbf16> to vector<64x64xbf16>
    %cst_132 = arith.constant dense<0.000000e+00> : vector<32x64xf32>
    %150 = tpu.matmul %147, %149, %cst_132 {dimension_numbers = #tpu.dot_dimension_numbers<[1], [0], [0], [1], [0, 0, 1, 1], [], []>} : vector<32x64xbf16>, vector<64x64xbf16>, vector<32x64xf32> -> vector<32x64xf32>
    %151 = arith.addf %143, %150 : vector<32x64xf32>
    %c0_133 = arith.constant 0 : index
    %c0_134 = arith.constant 0 : index
    %152 = vector.load %arg7[%c0_133, %c0_134] : memref<1x64xf32, #tpu.memory_space<vmem>>, vector<1x64xf32>
    %153 = vector.broadcast %152 : vector<1x64xf32> to vector<32x64xf32>
    %154 = arith.addf %151, %153 : vector<32x64xf32>
    %cst_135 = arith.constant 0.000000e+00 : f32
    %155 = vector.broadcast %cst_135 : f32 to vector<32x64xf32>
    %156 = arith.maximumf %154, %155 : vector<32x64xf32>
    %157 = arith.truncf %156 : vector<32x64xf32> to vector<32x64xbf16>
    %c0_136 = arith.constant 0 : index
    %c0_137 = arith.constant 0 : index
    %c0_138 = arith.constant 0 : index
    %158 = vector.load %arg8[%c0_136, %c0_137, %c0_138] : memref<9x32x32xbf16, #tpu.memory_space<vmem>>, vector<1x32x32xbf16>
    %159 = vector.shape_cast %158 : vector<1x32x32xbf16> to vector<32x32xbf16>
    %cst_139 = arith.constant dense<0.000000e+00> : vector<32x64xf32>
    %160 = tpu.matmul %159, %157, %cst_139 {dimension_numbers = #tpu.dot_dimension_numbers<[1], [0], [0], [1], [0, 0, 1, 1], [], []>} : vector<32x32xbf16>, vector<32x64xbf16>, vector<32x64xf32> -> vector<32x64xf32>
    %161 = arith.truncf %160 : vector<32x64xf32> to vector<32x64xbf16>
    %c0_140 = arith.constant 0 : index
    %c0_141 = arith.constant 0 : index
    %c0_142 = arith.constant 0 : index
    %162 = vector.load %arg9[%c0_140, %c0_141, %c0_142] : memref<9x64x64xbf16, #tpu.memory_space<vmem>>, vector<1x64x64xbf16>
    %163 = vector.shape_cast %162 : vector<1x64x64xbf16> to vector<64x64xbf16>
    %cst_143 = arith.constant dense<0.000000e+00> : vector<32x64xf32>
    %164 = tpu.matmul %161, %163, %cst_143 {dimension_numbers = #tpu.dot_dimension_numbers<[1], [0], [0], [1], [0, 0, 1, 1], [], []>} : vector<32x64xbf16>, vector<64x64xbf16>, vector<32x64xf32> -> vector<32x64xf32>
    %c1_144 = arith.constant 1 : index
    %c0_145 = arith.constant 0 : index
    %c0_146 = arith.constant 0 : index
    %165 = vector.load %arg8[%c1_144, %c0_145, %c0_146] : memref<9x32x32xbf16, #tpu.memory_space<vmem>>, vector<1x32x32xbf16>
    %166 = vector.shape_cast %165 : vector<1x32x32xbf16> to vector<32x32xbf16>
    %cst_147 = arith.constant dense<0.000000e+00> : vector<32x64xf32>
    %167 = tpu.matmul %166, %157, %cst_147 {dimension_numbers = #tpu.dot_dimension_numbers<[1], [0], [0], [1], [0, 0, 1, 1], [], []>} : vector<32x32xbf16>, vector<32x64xbf16>, vector<32x64xf32> -> vector<32x64xf32>
    %168 = arith.truncf %167 : vector<32x64xf32> to vector<32x64xbf16>
    %c1_148 = arith.constant 1 : index
    %c0_149 = arith.constant 0 : index
    %c0_150 = arith.constant 0 : index
    %169 = vector.load %arg9[%c1_148, %c0_149, %c0_150] : memref<9x64x64xbf16, #tpu.memory_space<vmem>>, vector<1x64x64xbf16>
    %170 = vector.shape_cast %169 : vector<1x64x64xbf16> to vector<64x64xbf16>
    %cst_151 = arith.constant dense<0.000000e+00> : vector<32x64xf32>
    %171 = tpu.matmul %168, %170, %cst_151 {dimension_numbers = #tpu.dot_dimension_numbers<[1], [0], [0], [1], [0, 0, 1, 1], [], []>} : vector<32x64xbf16>, vector<64x64xbf16>, vector<32x64xf32> -> vector<32x64xf32>
    %172 = arith.addf %164, %171 : vector<32x64xf32>
    %c2_152 = arith.constant 2 : index
    %c0_153 = arith.constant 0 : index
    %c0_154 = arith.constant 0 : index
    %173 = vector.load %arg8[%c2_152, %c0_153, %c0_154] : memref<9x32x32xbf16, #tpu.memory_space<vmem>>, vector<1x32x32xbf16>
    %174 = vector.shape_cast %173 : vector<1x32x32xbf16> to vector<32x32xbf16>
    %cst_155 = arith.constant dense<0.000000e+00> : vector<32x64xf32>
    %175 = tpu.matmul %174, %157, %cst_155 {dimension_numbers = #tpu.dot_dimension_numbers<[1], [0], [0], [1], [0, 0, 1, 1], [], []>} : vector<32x32xbf16>, vector<32x64xbf16>, vector<32x64xf32> -> vector<32x64xf32>
    %176 = arith.truncf %175 : vector<32x64xf32> to vector<32x64xbf16>
    %c2_156 = arith.constant 2 : index
    %c0_157 = arith.constant 0 : index
    %c0_158 = arith.constant 0 : index
    %177 = vector.load %arg9[%c2_156, %c0_157, %c0_158] : memref<9x64x64xbf16, #tpu.memory_space<vmem>>, vector<1x64x64xbf16>
    %178 = vector.shape_cast %177 : vector<1x64x64xbf16> to vector<64x64xbf16>
    %cst_159 = arith.constant dense<0.000000e+00> : vector<32x64xf32>
    %179 = tpu.matmul %176, %178, %cst_159 {dimension_numbers = #tpu.dot_dimension_numbers<[1], [0], [0], [1], [0, 0, 1, 1], [], []>} : vector<32x64xbf16>, vector<64x64xbf16>, vector<32x64xf32> -> vector<32x64xf32>
    %180 = arith.addf %172, %179 : vector<32x64xf32>
    %c3_160 = arith.constant 3 : index
    %c0_161 = arith.constant 0 : index
    %c0_162 = arith.constant 0 : index
    %181 = vector.load %arg8[%c3_160, %c0_161, %c0_162] : memref<9x32x32xbf16, #tpu.memory_space<vmem>>, vector<1x32x32xbf16>
    %182 = vector.shape_cast %181 : vector<1x32x32xbf16> to vector<32x32xbf16>
    %cst_163 = arith.constant dense<0.000000e+00> : vector<32x64xf32>
    %183 = tpu.matmul %182, %157, %cst_163 {dimension_numbers = #tpu.dot_dimension_numbers<[1], [0], [0], [1], [0, 0, 1, 1], [], []>} : vector<32x32xbf16>, vector<32x64xbf16>, vector<32x64xf32> -> vector<32x64xf32>
    %184 = arith.truncf %183 : vector<32x64xf32> to vector<32x64xbf16>
    %c3_164 = arith.constant 3 : index
    %c0_165 = arith.constant 0 : index
    %c0_166 = arith.constant 0 : index
    %185 = vector.load %arg9[%c3_164, %c0_165, %c0_166] : memref<9x64x64xbf16, #tpu.memory_space<vmem>>, vector<1x64x64xbf16>
    %186 = vector.shape_cast %185 : vector<1x64x64xbf16> to vector<64x64xbf16>
    %cst_167 = arith.constant dense<0.000000e+00> : vector<32x64xf32>
    %187 = tpu.matmul %184, %186, %cst_167 {dimension_numbers = #tpu.dot_dimension_numbers<[1], [0], [0], [1], [0, 0, 1, 1], [], []>} : vector<32x64xbf16>, vector<64x64xbf16>, vector<32x64xf32> -> vector<32x64xf32>
    %188 = arith.addf %180, %187 : vector<32x64xf32>
    %c4_168 = arith.constant 4 : index
    %c0_169 = arith.constant 0 : index
    %c0_170 = arith.constant 0 : index
    %189 = vector.load %arg8[%c4_168, %c0_169, %c0_170] : memref<9x32x32xbf16, #tpu.memory_space<vmem>>, vector<1x32x32xbf16>
    %190 = vector.shape_cast %189 : vector<1x32x32xbf16> to vector<32x32xbf16>
    %cst_171 = arith.constant dense<0.000000e+00> : vector<32x64xf32>
    %191 = tpu.matmul %190, %157, %cst_171 {dimension_numbers = #tpu.dot_dimension_numbers<[1], [0], [0], [1], [0, 0, 1, 1], [], []>} : vector<32x32xbf16>, vector<32x64xbf16>, vector<32x64xf32> -> vector<32x64xf32>
    %192 = arith.truncf %191 : vector<32x64xf32> to vector<32x64xbf16>
    %c4_172 = arith.constant 4 : index
    %c0_173 = arith.constant 0 : index
    %c0_174 = arith.constant 0 : index
    %193 = vector.load %arg9[%c4_172, %c0_173, %c0_174] : memref<9x64x64xbf16, #tpu.memory_space<vmem>>, vector<1x64x64xbf16>
    %194 = vector.shape_cast %193 : vector<1x64x64xbf16> to vector<64x64xbf16>
    %cst_175 = arith.constant dense<0.000000e+00> : vector<32x64xf32>
    %195 = tpu.matmul %192, %194, %cst_175 {dimension_numbers = #tpu.dot_dimension_numbers<[1], [0], [0], [1], [0, 0, 1, 1], [], []>} : vector<32x64xbf16>, vector<64x64xbf16>, vector<32x64xf32> -> vector<32x64xf32>
    %196 = arith.addf %188, %195 : vector<32x64xf32>
    %c5_176 = arith.constant 5 : index
    %c0_177 = arith.constant 0 : index
    %c0_178 = arith.constant 0 : index
    %197 = vector.load %arg8[%c5_176, %c0_177, %c0_178] : memref<9x32x32xbf16, #tpu.memory_space<vmem>>, vector<1x32x32xbf16>
    %198 = vector.shape_cast %197 : vector<1x32x32xbf16> to vector<32x32xbf16>
    %cst_179 = arith.constant dense<0.000000e+00> : vector<32x64xf32>
    %199 = tpu.matmul %198, %157, %cst_179 {dimension_numbers = #tpu.dot_dimension_numbers<[1], [0], [0], [1], [0, 0, 1, 1], [], []>} : vector<32x32xbf16>, vector<32x64xbf16>, vector<32x64xf32> -> vector<32x64xf32>
    %200 = arith.truncf %199 : vector<32x64xf32> to vector<32x64xbf16>
    %c5_180 = arith.constant 5 : index
    %c0_181 = arith.constant 0 : index
    %c0_182 = arith.constant 0 : index
    %201 = vector.load %arg9[%c5_180, %c0_181, %c0_182] : memref<9x64x64xbf16, #tpu.memory_space<vmem>>, vector<1x64x64xbf16>
    %202 = vector.shape_cast %201 : vector<1x64x64xbf16> to vector<64x64xbf16>
    %cst_183 = arith.constant dense<0.000000e+00> : vector<32x64xf32>
    %203 = tpu.matmul %200, %202, %cst_183 {dimension_numbers = #tpu.dot_dimension_numbers<[1], [0], [0], [1], [0, 0, 1, 1], [], []>} : vector<32x64xbf16>, vector<64x64xbf16>, vector<32x64xf32> -> vector<32x64xf32>
    %204 = arith.addf %196, %203 : vector<32x64xf32>
    %c6_184 = arith.constant 6 : index
    %c0_185 = arith.constant 0 : index
    %c0_186 = arith.constant 0 : index
    %205 = vector.load %arg8[%c6_184, %c0_185, %c0_186] : memref<9x32x32xbf16, #tpu.memory_space<vmem>>, vector<1x32x32xbf16>
    %206 = vector.shape_cast %205 : vector<1x32x32xbf16> to vector<32x32xbf16>
    %cst_187 = arith.constant dense<0.000000e+00> : vector<32x64xf32>
    %207 = tpu.matmul %206, %157, %cst_187 {dimension_numbers = #tpu.dot_dimension_numbers<[1], [0], [0], [1], [0, 0, 1, 1], [], []>} : vector<32x32xbf16>, vector<32x64xbf16>, vector<32x64xf32> -> vector<32x64xf32>
    %208 = arith.truncf %207 : vector<32x64xf32> to vector<32x64xbf16>
    %c6_188 = arith.constant 6 : index
    %c0_189 = arith.constant 0 : index
    %c0_190 = arith.constant 0 : index
    %209 = vector.load %arg9[%c6_188, %c0_189, %c0_190] : memref<9x64x64xbf16, #tpu.memory_space<vmem>>, vector<1x64x64xbf16>
    %210 = vector.shape_cast %209 : vector<1x64x64xbf16> to vector<64x64xbf16>
    %cst_191 = arith.constant dense<0.000000e+00> : vector<32x64xf32>
    %211 = tpu.matmul %208, %210, %cst_191 {dimension_numbers = #tpu.dot_dimension_numbers<[1], [0], [0], [1], [0, 0, 1, 1], [], []>} : vector<32x64xbf16>, vector<64x64xbf16>, vector<32x64xf32> -> vector<32x64xf32>
    %212 = arith.addf %204, %211 : vector<32x64xf32>
    %c7_192 = arith.constant 7 : index
    %c0_193 = arith.constant 0 : index
    %c0_194 = arith.constant 0 : index
    %213 = vector.load %arg8[%c7_192, %c0_193, %c0_194] : memref<9x32x32xbf16, #tpu.memory_space<vmem>>, vector<1x32x32xbf16>
    %214 = vector.shape_cast %213 : vector<1x32x32xbf16> to vector<32x32xbf16>
    %cst_195 = arith.constant dense<0.000000e+00> : vector<32x64xf32>
    %215 = tpu.matmul %214, %157, %cst_195 {dimension_numbers = #tpu.dot_dimension_numbers<[1], [0], [0], [1], [0, 0, 1, 1], [], []>} : vector<32x32xbf16>, vector<32x64xbf16>, vector<32x64xf32> -> vector<32x64xf32>
    %216 = arith.truncf %215 : vector<32x64xf32> to vector<32x64xbf16>
    %c7_196 = arith.constant 7 : index
    %c0_197 = arith.constant 0 : index
    %c0_198 = arith.constant 0 : index
    %217 = vector.load %arg9[%c7_196, %c0_197, %c0_198] : memref<9x64x64xbf16, #tpu.memory_space<vmem>>, vector<1x64x64xbf16>
    %218 = vector.shape_cast %217 : vector<1x64x64xbf16> to vector<64x64xbf16>
    %cst_199 = arith.constant dense<0.000000e+00> : vector<32x64xf32>
    %219 = tpu.matmul %216, %218, %cst_199 {dimension_numbers = #tpu.dot_dimension_numbers<[1], [0], [0], [1], [0, 0, 1, 1], [], []>} : vector<32x64xbf16>, vector<64x64xbf16>, vector<32x64xf32> -> vector<32x64xf32>
    %220 = arith.addf %212, %219 : vector<32x64xf32>
    %c8_200 = arith.constant 8 : index
    %c0_201 = arith.constant 0 : index
    %c0_202 = arith.constant 0 : index
    %221 = vector.load %arg8[%c8_200, %c0_201, %c0_202] : memref<9x32x32xbf16, #tpu.memory_space<vmem>>, vector<1x32x32xbf16>
    %222 = vector.shape_cast %221 : vector<1x32x32xbf16> to vector<32x32xbf16>
    %cst_203 = arith.constant dense<0.000000e+00> : vector<32x64xf32>
    %223 = tpu.matmul %222, %157, %cst_203 {dimension_numbers = #tpu.dot_dimension_numbers<[1], [0], [0], [1], [0, 0, 1, 1], [], []>} : vector<32x32xbf16>, vector<32x64xbf16>, vector<32x64xf32> -> vector<32x64xf32>
    %224 = arith.truncf %223 : vector<32x64xf32> to vector<32x64xbf16>
    %c8_204 = arith.constant 8 : index
    %c0_205 = arith.constant 0 : index
    %c0_206 = arith.constant 0 : index
    %225 = vector.load %arg9[%c8_204, %c0_205, %c0_206] : memref<9x64x64xbf16, #tpu.memory_space<vmem>>, vector<1x64x64xbf16>
    %226 = vector.shape_cast %225 : vector<1x64x64xbf16> to vector<64x64xbf16>
    %cst_207 = arith.constant dense<0.000000e+00> : vector<32x64xf32>
    %227 = tpu.matmul %224, %226, %cst_207 {dimension_numbers = #tpu.dot_dimension_numbers<[1], [0], [0], [1], [0, 0, 1, 1], [], []>} : vector<32x64xbf16>, vector<64x64xbf16>, vector<32x64xf32> -> vector<32x64xf32>
    %228 = arith.addf %220, %227 : vector<32x64xf32>
    %c0_208 = arith.constant 0 : index
    %c0_209 = arith.constant 0 : index
    %229 = vector.load %arg10[%c0_208, %c0_209] : memref<1x64xf32, #tpu.memory_space<vmem>>, vector<1x64xf32>
    %230 = vector.broadcast %229 : vector<1x64xf32> to vector<32x64xf32>
    %231 = arith.addf %228, %230 : vector<32x64xf32>
    %232 = arith.addf %231, %79 : vector<32x64xf32>
    %cst_210 = arith.constant 0.000000e+00 : f32
    %233 = vector.broadcast %cst_210 : f32 to vector<32x64xf32>
    %234 = arith.maximumf %232, %233 : vector<32x64xf32>
    %235 = arith.truncf %234 : vector<32x64xf32> to vector<32x64xbf16>
    %c0_211 = arith.constant 0 : index
    %c0_212 = arith.constant 0 : index
    %c0_213 = arith.constant 0 : index
    %236 = vector.load %arg11[%c0_211, %c0_212, %c0_213] : memref<9x8x32xbf16, #tpu.memory_space<vmem>>, vector<1x8x32xbf16>
    %237 = vector.shape_cast %236 : vector<1x8x32xbf16> to vector<8x32xbf16>
    %cst_214 = arith.constant dense<0.000000e+00> : vector<8x64xf32>
    %238 = tpu.matmul %237, %235, %cst_214 {dimension_numbers = #tpu.dot_dimension_numbers<[1], [0], [0], [1], [0, 0, 1, 1], [], []>} : vector<8x32xbf16>, vector<32x64xbf16>, vector<8x64xf32> -> vector<8x64xf32>
    %239 = arith.truncf %238 : vector<8x64xf32> to vector<8x64xbf16>
    %c0_215 = arith.constant 0 : index
    %c0_216 = arith.constant 0 : index
    %c0_217 = arith.constant 0 : index
    %240 = vector.load %arg12[%c0_215, %c0_216, %c0_217] : memref<9x64x128xbf16, #tpu.memory_space<vmem>>, vector<1x64x128xbf16>
    %241 = vector.shape_cast %240 : vector<1x64x128xbf16> to vector<64x128xbf16>
    %cst_218 = arith.constant dense<0.000000e+00> : vector<8x128xf32>
    %242 = tpu.matmul %239, %241, %cst_218 {dimension_numbers = #tpu.dot_dimension_numbers<[1], [0], [0], [1], [0, 0, 1, 1], [], []>} : vector<8x64xbf16>, vector<64x128xbf16>, vector<8x128xf32> -> vector<8x128xf32>
    %c1_219 = arith.constant 1 : index
    %c0_220 = arith.constant 0 : index
    %c0_221 = arith.constant 0 : index
    %243 = vector.load %arg11[%c1_219, %c0_220, %c0_221] : memref<9x8x32xbf16, #tpu.memory_space<vmem>>, vector<1x8x32xbf16>
    %244 = vector.shape_cast %243 : vector<1x8x32xbf16> to vector<8x32xbf16>
    %cst_222 = arith.constant dense<0.000000e+00> : vector<8x64xf32>
    %245 = tpu.matmul %244, %235, %cst_222 {dimension_numbers = #tpu.dot_dimension_numbers<[1], [0], [0], [1], [0, 0, 1, 1], [], []>} : vector<8x32xbf16>, vector<32x64xbf16>, vector<8x64xf32> -> vector<8x64xf32>
    %246 = arith.truncf %245 : vector<8x64xf32> to vector<8x64xbf16>
    %c1_223 = arith.constant 1 : index
    %c0_224 = arith.constant 0 : index
    %c0_225 = arith.constant 0 : index
    %247 = vector.load %arg12[%c1_223, %c0_224, %c0_225] : memref<9x64x128xbf16, #tpu.memory_space<vmem>>, vector<1x64x128xbf16>
    %248 = vector.shape_cast %247 : vector<1x64x128xbf16> to vector<64x128xbf16>
    %cst_226 = arith.constant dense<0.000000e+00> : vector<8x128xf32>
    %249 = tpu.matmul %246, %248, %cst_226 {dimension_numbers = #tpu.dot_dimension_numbers<[1], [0], [0], [1], [0, 0, 1, 1], [], []>} : vector<8x64xbf16>, vector<64x128xbf16>, vector<8x128xf32> -> vector<8x128xf32>
    %250 = arith.addf %242, %249 : vector<8x128xf32>
    %c2_227 = arith.constant 2 : index
    %c0_228 = arith.constant 0 : index
    %c0_229 = arith.constant 0 : index
    %251 = vector.load %arg11[%c2_227, %c0_228, %c0_229] : memref<9x8x32xbf16, #tpu.memory_space<vmem>>, vector<1x8x32xbf16>
    %252 = vector.shape_cast %251 : vector<1x8x32xbf16> to vector<8x32xbf16>
    %cst_230 = arith.constant dense<0.000000e+00> : vector<8x64xf32>
    %253 = tpu.matmul %252, %235, %cst_230 {dimension_numbers = #tpu.dot_dimension_numbers<[1], [0], [0], [1], [0, 0, 1, 1], [], []>} : vector<8x32xbf16>, vector<32x64xbf16>, vector<8x64xf32> -> vector<8x64xf32>
    %254 = arith.truncf %253 : vector<8x64xf32> to vector<8x64xbf16>
    %c2_231 = arith.constant 2 : index
    %c0_232 = arith.constant 0 : index
    %c0_233 = arith.constant 0 : index
    %255 = vector.load %arg12[%c2_231, %c0_232, %c0_233] : memref<9x64x128xbf16, #tpu.memory_space<vmem>>, vector<1x64x128xbf16>
    %256 = vector.shape_cast %255 : vector<1x64x128xbf16> to vector<64x128xbf16>
    %cst_234 = arith.constant dense<0.000000e+00> : vector<8x128xf32>
    %257 = tpu.matmul %254, %256, %cst_234 {dimension_numbers = #tpu.dot_dimension_numbers<[1], [0], [0], [1], [0, 0, 1, 1], [], []>} : vector<8x64xbf16>, vector<64x128xbf16>, vector<8x128xf32> -> vector<8x128xf32>
    %258 = arith.addf %250, %257 : vector<8x128xf32>
    %c3_235 = arith.constant 3 : index
    %c0_236 = arith.constant 0 : index
    %c0_237 = arith.constant 0 : index
    %259 = vector.load %arg11[%c3_235, %c0_236, %c0_237] : memref<9x8x32xbf16, #tpu.memory_space<vmem>>, vector<1x8x32xbf16>
    %260 = vector.shape_cast %259 : vector<1x8x32xbf16> to vector<8x32xbf16>
    %cst_238 = arith.constant dense<0.000000e+00> : vector<8x64xf32>
    %261 = tpu.matmul %260, %235, %cst_238 {dimension_numbers = #tpu.dot_dimension_numbers<[1], [0], [0], [1], [0, 0, 1, 1], [], []>} : vector<8x32xbf16>, vector<32x64xbf16>, vector<8x64xf32> -> vector<8x64xf32>
    %262 = arith.truncf %261 : vector<8x64xf32> to vector<8x64xbf16>
    %c3_239 = arith.constant 3 : index
    %c0_240 = arith.constant 0 : index
    %c0_241 = arith.constant 0 : index
    %263 = vector.load %arg12[%c3_239, %c0_240, %c0_241] : memref<9x64x128xbf16, #tpu.memory_space<vmem>>, vector<1x64x128xbf16>
    %264 = vector.shape_cast %263 : vector<1x64x128xbf16> to vector<64x128xbf16>
    %cst_242 = arith.constant dense<0.000000e+00> : vector<8x128xf32>
    %265 = tpu.matmul %262, %264, %cst_242 {dimension_numbers = #tpu.dot_dimension_numbers<[1], [0], [0], [1], [0, 0, 1, 1], [], []>} : vector<8x64xbf16>, vector<64x128xbf16>, vector<8x128xf32> -> vector<8x128xf32>
    %266 = arith.addf %258, %265 : vector<8x128xf32>
    %c4_243 = arith.constant 4 : index
    %c0_244 = arith.constant 0 : index
    %c0_245 = arith.constant 0 : index
    %267 = vector.load %arg11[%c4_243, %c0_244, %c0_245] : memref<9x8x32xbf16, #tpu.memory_space<vmem>>, vector<1x8x32xbf16>
    %268 = vector.shape_cast %267 : vector<1x8x32xbf16> to vector<8x32xbf16>
    %cst_246 = arith.constant dense<0.000000e+00> : vector<8x64xf32>
    %269 = tpu.matmul %268, %235, %cst_246 {dimension_numbers = #tpu.dot_dimension_numbers<[1], [0], [0], [1], [0, 0, 1, 1], [], []>} : vector<8x32xbf16>, vector<32x64xbf16>, vector<8x64xf32> -> vector<8x64xf32>
    %270 = arith.truncf %269 : vector<8x64xf32> to vector<8x64xbf16>
    %c4_247 = arith.constant 4 : index
    %c0_248 = arith.constant 0 : index
    %c0_249 = arith.constant 0 : index
    %271 = vector.load %arg12[%c4_247, %c0_248, %c0_249] : memref<9x64x128xbf16, #tpu.memory_space<vmem>>, vector<1x64x128xbf16>
    %272 = vector.shape_cast %271 : vector<1x64x128xbf16> to vector<64x128xbf16>
    %cst_250 = arith.constant dense<0.000000e+00> : vector<8x128xf32>
    %273 = tpu.matmul %270, %272, %cst_250 {dimension_numbers = #tpu.dot_dimension_numbers<[1], [0], [0], [1], [0, 0, 1, 1], [], []>} : vector<8x64xbf16>, vector<64x128xbf16>, vector<8x128xf32> -> vector<8x128xf32>
    %274 = arith.addf %266, %273 : vector<8x128xf32>
    %c5_251 = arith.constant 5 : index
    %c0_252 = arith.constant 0 : index
    %c0_253 = arith.constant 0 : index
    %275 = vector.load %arg11[%c5_251, %c0_252, %c0_253] : memref<9x8x32xbf16, #tpu.memory_space<vmem>>, vector<1x8x32xbf16>
    %276 = vector.shape_cast %275 : vector<1x8x32xbf16> to vector<8x32xbf16>
    %cst_254 = arith.constant dense<0.000000e+00> : vector<8x64xf32>
    %277 = tpu.matmul %276, %235, %cst_254 {dimension_numbers = #tpu.dot_dimension_numbers<[1], [0], [0], [1], [0, 0, 1, 1], [], []>} : vector<8x32xbf16>, vector<32x64xbf16>, vector<8x64xf32> -> vector<8x64xf32>
    %278 = arith.truncf %277 : vector<8x64xf32> to vector<8x64xbf16>
    %c5_255 = arith.constant 5 : index
    %c0_256 = arith.constant 0 : index
    %c0_257 = arith.constant 0 : index
    %279 = vector.load %arg12[%c5_255, %c0_256, %c0_257] : memref<9x64x128xbf16, #tpu.memory_space<vmem>>, vector<1x64x128xbf16>
    %280 = vector.shape_cast %279 : vector<1x64x128xbf16> to vector<64x128xbf16>
    %cst_258 = arith.constant dense<0.000000e+00> : vector<8x128xf32>
    %281 = tpu.matmul %278, %280, %cst_258 {dimension_numbers = #tpu.dot_dimension_numbers<[1], [0], [0], [1], [0, 0, 1, 1], [], []>} : vector<8x64xbf16>, vector<64x128xbf16>, vector<8x128xf32> -> vector<8x128xf32>
    %282 = arith.addf %274, %281 : vector<8x128xf32>
    %c6_259 = arith.constant 6 : index
    %c0_260 = arith.constant 0 : index
    %c0_261 = arith.constant 0 : index
    %283 = vector.load %arg11[%c6_259, %c0_260, %c0_261] : memref<9x8x32xbf16, #tpu.memory_space<vmem>>, vector<1x8x32xbf16>
    %284 = vector.shape_cast %283 : vector<1x8x32xbf16> to vector<8x32xbf16>
    %cst_262 = arith.constant dense<0.000000e+00> : vector<8x64xf32>
    %285 = tpu.matmul %284, %235, %cst_262 {dimension_numbers = #tpu.dot_dimension_numbers<[1], [0], [0], [1], [0, 0, 1, 1], [], []>} : vector<8x32xbf16>, vector<32x64xbf16>, vector<8x64xf32> -> vector<8x64xf32>
    %286 = arith.truncf %285 : vector<8x64xf32> to vector<8x64xbf16>
    %c6_263 = arith.constant 6 : index
    %c0_264 = arith.constant 0 : index
    %c0_265 = arith.constant 0 : index
    %287 = vector.load %arg12[%c6_263, %c0_264, %c0_265] : memref<9x64x128xbf16, #tpu.memory_space<vmem>>, vector<1x64x128xbf16>
    %288 = vector.shape_cast %287 : vector<1x64x128xbf16> to vector<64x128xbf16>
    %cst_266 = arith.constant dense<0.000000e+00> : vector<8x128xf32>
    %289 = tpu.matmul %286, %288, %cst_266 {dimension_numbers = #tpu.dot_dimension_numbers<[1], [0], [0], [1], [0, 0, 1, 1], [], []>} : vector<8x64xbf16>, vector<64x128xbf16>, vector<8x128xf32> -> vector<8x128xf32>
    %290 = arith.addf %282, %289 : vector<8x128xf32>
    %c7_267 = arith.constant 7 : index
    %c0_268 = arith.constant 0 : index
    %c0_269 = arith.constant 0 : index
    %291 = vector.load %arg11[%c7_267, %c0_268, %c0_269] : memref<9x8x32xbf16, #tpu.memory_space<vmem>>, vector<1x8x32xbf16>
    %292 = vector.shape_cast %291 : vector<1x8x32xbf16> to vector<8x32xbf16>
    %cst_270 = arith.constant dense<0.000000e+00> : vector<8x64xf32>
    %293 = tpu.matmul %292, %235, %cst_270 {dimension_numbers = #tpu.dot_dimension_numbers<[1], [0], [0], [1], [0, 0, 1, 1], [], []>} : vector<8x32xbf16>, vector<32x64xbf16>, vector<8x64xf32> -> vector<8x64xf32>
    %294 = arith.truncf %293 : vector<8x64xf32> to vector<8x64xbf16>
    %c7_271 = arith.constant 7 : index
    %c0_272 = arith.constant 0 : index
    %c0_273 = arith.constant 0 : index
    %295 = vector.load %arg12[%c7_271, %c0_272, %c0_273] : memref<9x64x128xbf16, #tpu.memory_space<vmem>>, vector<1x64x128xbf16>
    %296 = vector.shape_cast %295 : vector<1x64x128xbf16> to vector<64x128xbf16>
    %cst_274 = arith.constant dense<0.000000e+00> : vector<8x128xf32>
    %297 = tpu.matmul %294, %296, %cst_274 {dimension_numbers = #tpu.dot_dimension_numbers<[1], [0], [0], [1], [0, 0, 1, 1], [], []>} : vector<8x64xbf16>, vector<64x128xbf16>, vector<8x128xf32> -> vector<8x128xf32>
    %298 = arith.addf %290, %297 : vector<8x128xf32>
    %c8_275 = arith.constant 8 : index
    %c0_276 = arith.constant 0 : index
    %c0_277 = arith.constant 0 : index
    %299 = vector.load %arg11[%c8_275, %c0_276, %c0_277] : memref<9x8x32xbf16, #tpu.memory_space<vmem>>, vector<1x8x32xbf16>
    %300 = vector.shape_cast %299 : vector<1x8x32xbf16> to vector<8x32xbf16>
    %cst_278 = arith.constant dense<0.000000e+00> : vector<8x64xf32>
    %301 = tpu.matmul %300, %235, %cst_278 {dimension_numbers = #tpu.dot_dimension_numbers<[1], [0], [0], [1], [0, 0, 1, 1], [], []>} : vector<8x32xbf16>, vector<32x64xbf16>, vector<8x64xf32> -> vector<8x64xf32>
    %302 = arith.truncf %301 : vector<8x64xf32> to vector<8x64xbf16>
    %c8_279 = arith.constant 8 : index
    %c0_280 = arith.constant 0 : index
    %c0_281 = arith.constant 0 : index
    %303 = vector.load %arg12[%c8_279, %c0_280, %c0_281] : memref<9x64x128xbf16, #tpu.memory_space<vmem>>, vector<1x64x128xbf16>
    %304 = vector.shape_cast %303 : vector<1x64x128xbf16> to vector<64x128xbf16>
    %cst_282 = arith.constant dense<0.000000e+00> : vector<8x128xf32>
    %305 = tpu.matmul %302, %304, %cst_282 {dimension_numbers = #tpu.dot_dimension_numbers<[1], [0], [0], [1], [0, 0, 1, 1], [], []>} : vector<8x64xbf16>, vector<64x128xbf16>, vector<8x128xf32> -> vector<8x128xf32>
    %306 = arith.addf %298, %305 : vector<8x128xf32>
    %c0_283 = arith.constant 0 : index
    %c0_284 = arith.constant 0 : index
    %307 = vector.load %arg13[%c0_283, %c0_284] : memref<1x128xf32, #tpu.memory_space<vmem>>, vector<1x128xf32>
    %308 = vector.broadcast %307 : vector<1x128xf32> to vector<8x128xf32>
    %309 = arith.addf %306, %308 : vector<8x128xf32>
    %cst_285 = arith.constant 0.000000e+00 : f32
    %310 = vector.broadcast %cst_285 : f32 to vector<8x128xf32>
    %311 = arith.maximumf %309, %310 : vector<8x128xf32>
    %312 = arith.truncf %311 : vector<8x128xf32> to vector<8x128xbf16>
    %c0_286 = arith.constant 0 : index
    %c0_287 = arith.constant 0 : index
    %c0_288 = arith.constant 0 : index
    %313 = vector.load %arg14[%c0_286, %c0_287, %c0_288] : memref<9x8x8xbf16, #tpu.memory_space<vmem>>, vector<1x8x8xbf16>
    %314 = vector.shape_cast %313 : vector<1x8x8xbf16> to vector<8x8xbf16>
    %cst_289 = arith.constant dense<0.000000e+00> : vector<8x128xf32>
    %315 = tpu.matmul %314, %312, %cst_289 {dimension_numbers = #tpu.dot_dimension_numbers<[1], [0], [0], [1], [0, 0, 1, 1], [], []>} : vector<8x8xbf16>, vector<8x128xbf16>, vector<8x128xf32> -> vector<8x128xf32>
    %316 = arith.truncf %315 : vector<8x128xf32> to vector<8x128xbf16>
    %c0_290 = arith.constant 0 : index
    %c0_291 = arith.constant 0 : index
    %c0_292 = arith.constant 0 : index
    %317 = vector.load %arg15[%c0_290, %c0_291, %c0_292] : memref<9x128x128xbf16, #tpu.memory_space<vmem>>, vector<1x128x128xbf16>
    %318 = vector.shape_cast %317 : vector<1x128x128xbf16> to vector<128x128xbf16>
    %cst_293 = arith.constant dense<0.000000e+00> : vector<8x128xf32>
    %319 = tpu.matmul %316, %318, %cst_293 {dimension_numbers = #tpu.dot_dimension_numbers<[1], [0], [0], [1], [0, 0, 1, 1], [], []>} : vector<8x128xbf16>, vector<128x128xbf16>, vector<8x128xf32> -> vector<8x128xf32>
    %c1_294 = arith.constant 1 : index
    %c0_295 = arith.constant 0 : index
    %c0_296 = arith.constant 0 : index
    %320 = vector.load %arg14[%c1_294, %c0_295, %c0_296] : memref<9x8x8xbf16, #tpu.memory_space<vmem>>, vector<1x8x8xbf16>
    %321 = vector.shape_cast %320 : vector<1x8x8xbf16> to vector<8x8xbf16>
    %cst_297 = arith.constant dense<0.000000e+00> : vector<8x128xf32>
    %322 = tpu.matmul %321, %312, %cst_297 {dimension_numbers = #tpu.dot_dimension_numbers<[1], [0], [0], [1], [0, 0, 1, 1], [], []>} : vector<8x8xbf16>, vector<8x128xbf16>, vector<8x128xf32> -> vector<8x128xf32>
    %323 = arith.truncf %322 : vector<8x128xf32> to vector<8x128xbf16>
    %c1_298 = arith.constant 1 : index
    %c0_299 = arith.constant 0 : index
    %c0_300 = arith.constant 0 : index
    %324 = vector.load %arg15[%c1_298, %c0_299, %c0_300] : memref<9x128x128xbf16, #tpu.memory_space<vmem>>, vector<1x128x128xbf16>
    %325 = vector.shape_cast %324 : vector<1x128x128xbf16> to vector<128x128xbf16>
    %cst_301 = arith.constant dense<0.000000e+00> : vector<8x128xf32>
    %326 = tpu.matmul %323, %325, %cst_301 {dimension_numbers = #tpu.dot_dimension_numbers<[1], [0], [0], [1], [0, 0, 1, 1], [], []>} : vector<8x128xbf16>, vector<128x128xbf16>, vector<8x128xf32> -> vector<8x128xf32>
    %327 = arith.addf %319, %326 : vector<8x128xf32>
    %c2_302 = arith.constant 2 : index
    %c0_303 = arith.constant 0 : index
    %c0_304 = arith.constant 0 : index
    %328 = vector.load %arg14[%c2_302, %c0_303, %c0_304] : memref<9x8x8xbf16, #tpu.memory_space<vmem>>, vector<1x8x8xbf16>
    %329 = vector.shape_cast %328 : vector<1x8x8xbf16> to vector<8x8xbf16>
    %cst_305 = arith.constant dense<0.000000e+00> : vector<8x128xf32>
    %330 = tpu.matmul %329, %312, %cst_305 {dimension_numbers = #tpu.dot_dimension_numbers<[1], [0], [0], [1], [0, 0, 1, 1], [], []>} : vector<8x8xbf16>, vector<8x128xbf16>, vector<8x128xf32> -> vector<8x128xf32>
    %331 = arith.truncf %330 : vector<8x128xf32> to vector<8x128xbf16>
    %c2_306 = arith.constant 2 : index
    %c0_307 = arith.constant 0 : index
    %c0_308 = arith.constant 0 : index
    %332 = vector.load %arg15[%c2_306, %c0_307, %c0_308] : memref<9x128x128xbf16, #tpu.memory_space<vmem>>, vector<1x128x128xbf16>
    %333 = vector.shape_cast %332 : vector<1x128x128xbf16> to vector<128x128xbf16>
    %cst_309 = arith.constant dense<0.000000e+00> : vector<8x128xf32>
    %334 = tpu.matmul %331, %333, %cst_309 {dimension_numbers = #tpu.dot_dimension_numbers<[1], [0], [0], [1], [0, 0, 1, 1], [], []>} : vector<8x128xbf16>, vector<128x128xbf16>, vector<8x128xf32> -> vector<8x128xf32>
    %335 = arith.addf %327, %334 : vector<8x128xf32>
    %c3_310 = arith.constant 3 : index
    %c0_311 = arith.constant 0 : index
    %c0_312 = arith.constant 0 : index
    %336 = vector.load %arg14[%c3_310, %c0_311, %c0_312] : memref<9x8x8xbf16, #tpu.memory_space<vmem>>, vector<1x8x8xbf16>
    %337 = vector.shape_cast %336 : vector<1x8x8xbf16> to vector<8x8xbf16>
    %cst_313 = arith.constant dense<0.000000e+00> : vector<8x128xf32>
    %338 = tpu.matmul %337, %312, %cst_313 {dimension_numbers = #tpu.dot_dimension_numbers<[1], [0], [0], [1], [0, 0, 1, 1], [], []>} : vector<8x8xbf16>, vector<8x128xbf16>, vector<8x128xf32> -> vector<8x128xf32>
    %339 = arith.truncf %338 : vector<8x128xf32> to vector<8x128xbf16>
    %c3_314 = arith.constant 3 : index
    %c0_315 = arith.constant 0 : index
    %c0_316 = arith.constant 0 : index
    %340 = vector.load %arg15[%c3_314, %c0_315, %c0_316] : memref<9x128x128xbf16, #tpu.memory_space<vmem>>, vector<1x128x128xbf16>
    %341 = vector.shape_cast %340 : vector<1x128x128xbf16> to vector<128x128xbf16>
    %cst_317 = arith.constant dense<0.000000e+00> : vector<8x128xf32>
    %342 = tpu.matmul %339, %341, %cst_317 {dimension_numbers = #tpu.dot_dimension_numbers<[1], [0], [0], [1], [0, 0, 1, 1], [], []>} : vector<8x128xbf16>, vector<128x128xbf16>, vector<8x128xf32> -> vector<8x128xf32>
    %343 = arith.addf %335, %342 : vector<8x128xf32>
    %c4_318 = arith.constant 4 : index
    %c0_319 = arith.constant 0 : index
    %c0_320 = arith.constant 0 : index
    %344 = vector.load %arg14[%c4_318, %c0_319, %c0_320] : memref<9x8x8xbf16, #tpu.memory_space<vmem>>, vector<1x8x8xbf16>
    %345 = vector.shape_cast %344 : vector<1x8x8xbf16> to vector<8x8xbf16>
    %cst_321 = arith.constant dense<0.000000e+00> : vector<8x128xf32>
    %346 = tpu.matmul %345, %312, %cst_321 {dimension_numbers = #tpu.dot_dimension_numbers<[1], [0], [0], [1], [0, 0, 1, 1], [], []>} : vector<8x8xbf16>, vector<8x128xbf16>, vector<8x128xf32> -> vector<8x128xf32>
    %347 = arith.truncf %346 : vector<8x128xf32> to vector<8x128xbf16>
    %c4_322 = arith.constant 4 : index
    %c0_323 = arith.constant 0 : index
    %c0_324 = arith.constant 0 : index
    %348 = vector.load %arg15[%c4_322, %c0_323, %c0_324] : memref<9x128x128xbf16, #tpu.memory_space<vmem>>, vector<1x128x128xbf16>
    %349 = vector.shape_cast %348 : vector<1x128x128xbf16> to vector<128x128xbf16>
    %cst_325 = arith.constant dense<0.000000e+00> : vector<8x128xf32>
    %350 = tpu.matmul %347, %349, %cst_325 {dimension_numbers = #tpu.dot_dimension_numbers<[1], [0], [0], [1], [0, 0, 1, 1], [], []>} : vector<8x128xbf16>, vector<128x128xbf16>, vector<8x128xf32> -> vector<8x128xf32>
    %351 = arith.addf %343, %350 : vector<8x128xf32>
    %c5_326 = arith.constant 5 : index
    %c0_327 = arith.constant 0 : index
    %c0_328 = arith.constant 0 : index
    %352 = vector.load %arg14[%c5_326, %c0_327, %c0_328] : memref<9x8x8xbf16, #tpu.memory_space<vmem>>, vector<1x8x8xbf16>
    %353 = vector.shape_cast %352 : vector<1x8x8xbf16> to vector<8x8xbf16>
    %cst_329 = arith.constant dense<0.000000e+00> : vector<8x128xf32>
    %354 = tpu.matmul %353, %312, %cst_329 {dimension_numbers = #tpu.dot_dimension_numbers<[1], [0], [0], [1], [0, 0, 1, 1], [], []>} : vector<8x8xbf16>, vector<8x128xbf16>, vector<8x128xf32> -> vector<8x128xf32>
    %355 = arith.truncf %354 : vector<8x128xf32> to vector<8x128xbf16>
    %c5_330 = arith.constant 5 : index
    %c0_331 = arith.constant 0 : index
    %c0_332 = arith.constant 0 : index
    %356 = vector.load %arg15[%c5_330, %c0_331, %c0_332] : memref<9x128x128xbf16, #tpu.memory_space<vmem>>, vector<1x128x128xbf16>
    %357 = vector.shape_cast %356 : vector<1x128x128xbf16> to vector<128x128xbf16>
    %cst_333 = arith.constant dense<0.000000e+00> : vector<8x128xf32>
    %358 = tpu.matmul %355, %357, %cst_333 {dimension_numbers = #tpu.dot_dimension_numbers<[1], [0], [0], [1], [0, 0, 1, 1], [], []>} : vector<8x128xbf16>, vector<128x128xbf16>, vector<8x128xf32> -> vector<8x128xf32>
    %359 = arith.addf %351, %358 : vector<8x128xf32>
    %c6_334 = arith.constant 6 : index
    %c0_335 = arith.constant 0 : index
    %c0_336 = arith.constant 0 : index
    %360 = vector.load %arg14[%c6_334, %c0_335, %c0_336] : memref<9x8x8xbf16, #tpu.memory_space<vmem>>, vector<1x8x8xbf16>
    %361 = vector.shape_cast %360 : vector<1x8x8xbf16> to vector<8x8xbf16>
    %cst_337 = arith.constant dense<0.000000e+00> : vector<8x128xf32>
    %362 = tpu.matmul %361, %312, %cst_337 {dimension_numbers = #tpu.dot_dimension_numbers<[1], [0], [0], [1], [0, 0, 1, 1], [], []>} : vector<8x8xbf16>, vector<8x128xbf16>, vector<8x128xf32> -> vector<8x128xf32>
    %363 = arith.truncf %362 : vector<8x128xf32> to vector<8x128xbf16>
    %c6_338 = arith.constant 6 : index
    %c0_339 = arith.constant 0 : index
    %c0_340 = arith.constant 0 : index
    %364 = vector.load %arg15[%c6_338, %c0_339, %c0_340] : memref<9x128x128xbf16, #tpu.memory_space<vmem>>, vector<1x128x128xbf16>
    %365 = vector.shape_cast %364 : vector<1x128x128xbf16> to vector<128x128xbf16>
    %cst_341 = arith.constant dense<0.000000e+00> : vector<8x128xf32>
    %366 = tpu.matmul %363, %365, %cst_341 {dimension_numbers = #tpu.dot_dimension_numbers<[1], [0], [0], [1], [0, 0, 1, 1], [], []>} : vector<8x128xbf16>, vector<128x128xbf16>, vector<8x128xf32> -> vector<8x128xf32>
    %367 = arith.addf %359, %366 : vector<8x128xf32>
    %c7_342 = arith.constant 7 : index
    %c0_343 = arith.constant 0 : index
    %c0_344 = arith.constant 0 : index
    %368 = vector.load %arg14[%c7_342, %c0_343, %c0_344] : memref<9x8x8xbf16, #tpu.memory_space<vmem>>, vector<1x8x8xbf16>
    %369 = vector.shape_cast %368 : vector<1x8x8xbf16> to vector<8x8xbf16>
    %cst_345 = arith.constant dense<0.000000e+00> : vector<8x128xf32>
    %370 = tpu.matmul %369, %312, %cst_345 {dimension_numbers = #tpu.dot_dimension_numbers<[1], [0], [0], [1], [0, 0, 1, 1], [], []>} : vector<8x8xbf16>, vector<8x128xbf16>, vector<8x128xf32> -> vector<8x128xf32>
    %371 = arith.truncf %370 : vector<8x128xf32> to vector<8x128xbf16>
    %c7_346 = arith.constant 7 : index
    %c0_347 = arith.constant 0 : index
    %c0_348 = arith.constant 0 : index
    %372 = vector.load %arg15[%c7_346, %c0_347, %c0_348] : memref<9x128x128xbf16, #tpu.memory_space<vmem>>, vector<1x128x128xbf16>
    %373 = vector.shape_cast %372 : vector<1x128x128xbf16> to vector<128x128xbf16>
    %cst_349 = arith.constant dense<0.000000e+00> : vector<8x128xf32>
    %374 = tpu.matmul %371, %373, %cst_349 {dimension_numbers = #tpu.dot_dimension_numbers<[1], [0], [0], [1], [0, 0, 1, 1], [], []>} : vector<8x128xbf16>, vector<128x128xbf16>, vector<8x128xf32> -> vector<8x128xf32>
    %375 = arith.addf %367, %374 : vector<8x128xf32>
    %c8_350 = arith.constant 8 : index
    %c0_351 = arith.constant 0 : index
    %c0_352 = arith.constant 0 : index
    %376 = vector.load %arg14[%c8_350, %c0_351, %c0_352] : memref<9x8x8xbf16, #tpu.memory_space<vmem>>, vector<1x8x8xbf16>
    %377 = vector.shape_cast %376 : vector<1x8x8xbf16> to vector<8x8xbf16>
    %cst_353 = arith.constant dense<0.000000e+00> : vector<8x128xf32>
    %378 = tpu.matmul %377, %312, %cst_353 {dimension_numbers = #tpu.dot_dimension_numbers<[1], [0], [0], [1], [0, 0, 1, 1], [], []>} : vector<8x8xbf16>, vector<8x128xbf16>, vector<8x128xf32> -> vector<8x128xf32>
    %379 = arith.truncf %378 : vector<8x128xf32> to vector<8x128xbf16>
    %c8_354 = arith.constant 8 : index
    %c0_355 = arith.constant 0 : index
    %c0_356 = arith.constant 0 : index
    %380 = vector.load %arg15[%c8_354, %c0_355, %c0_356] : memref<9x128x128xbf16, #tpu.memory_space<vmem>>, vector<1x128x128xbf16>
    %381 = vector.shape_cast %380 : vector<1x128x128xbf16> to vector<128x128xbf16>
    %cst_357 = arith.constant dense<0.000000e+00> : vector<8x128xf32>
    %382 = tpu.matmul %379, %381, %cst_357 {dimension_numbers = #tpu.dot_dimension_numbers<[1], [0], [0], [1], [0, 0, 1, 1], [], []>} : vector<8x128xbf16>, vector<128x128xbf16>, vector<8x128xf32> -> vector<8x128xf32>
    %383 = arith.addf %375, %382 : vector<8x128xf32>
    %c0_358 = arith.constant 0 : index
    %c0_359 = arith.constant 0 : index
    %384 = vector.load %arg16[%c0_358, %c0_359] : memref<1x128xf32, #tpu.memory_space<vmem>>, vector<1x128xf32>
    %385 = vector.broadcast %384 : vector<1x128xf32> to vector<8x128xf32>
    %386 = arith.addf %383, %385 : vector<8x128xf32>
    %c0_360 = arith.constant 0 : index
    %c0_361 = arith.constant 0 : index
    %c0_362 = arith.constant 0 : index
    %387 = vector.load %arg17[%c0_360, %c0_361, %c0_362] : memref<1x8x32xbf16, #tpu.memory_space<vmem>>, vector<1x8x32xbf16>
    %388 = vector.shape_cast %387 : vector<1x8x32xbf16> to vector<8x32xbf16>
    %cst_363 = arith.constant dense<0.000000e+00> : vector<8x64xf32>
    %389 = tpu.matmul %388, %235, %cst_363 {dimension_numbers = #tpu.dot_dimension_numbers<[1], [0], [0], [1], [0, 0, 1, 1], [], []>} : vector<8x32xbf16>, vector<32x64xbf16>, vector<8x64xf32> -> vector<8x64xf32>
    %390 = arith.truncf %389 : vector<8x64xf32> to vector<8x64xbf16>
    %c0_364 = arith.constant 0 : index
    %c0_365 = arith.constant 0 : index
    %c0_366 = arith.constant 0 : index
    %391 = vector.load %arg18[%c0_364, %c0_365, %c0_366] : memref<1x64x128xbf16, #tpu.memory_space<vmem>>, vector<1x64x128xbf16>
    %392 = vector.shape_cast %391 : vector<1x64x128xbf16> to vector<64x128xbf16>
    %cst_367 = arith.constant dense<0.000000e+00> : vector<8x128xf32>
    %393 = tpu.matmul %390, %392, %cst_367 {dimension_numbers = #tpu.dot_dimension_numbers<[1], [0], [0], [1], [0, 0, 1, 1], [], []>} : vector<8x64xbf16>, vector<64x128xbf16>, vector<8x128xf32> -> vector<8x128xf32>
    %c0_368 = arith.constant 0 : index
    %c0_369 = arith.constant 0 : index
    %394 = vector.load %arg19[%c0_368, %c0_369] : memref<1x128xf32, #tpu.memory_space<vmem>>, vector<1x128xf32>
    %395 = vector.broadcast %394 : vector<1x128xf32> to vector<8x128xf32>
    %396 = arith.addf %393, %395 : vector<8x128xf32>
    %397 = arith.addf %386, %396 : vector<8x128xf32>
    %cst_370 = arith.constant 0.000000e+00 : f32
    %398 = vector.broadcast %cst_370 : f32 to vector<8x128xf32>
    %399 = arith.maximumf %397, %398 : vector<8x128xf32>
    %400 = arith.truncf %399 : vector<8x128xf32> to vector<8x128xbf16>
    %c0_371 = arith.constant 0 : index
    %c0_372 = arith.constant 0 : index
    %c0_373 = arith.constant 0 : index
    %401 = vector.load %arg20[%c0_371, %c0_372, %c0_373] : memref<4x2x8xbf16, #tpu.memory_space<vmem>>, vector<1x2x8xbf16>
    %402 = vector.shape_cast %401 : vector<1x2x8xbf16> to vector<2x8xbf16>
    %cst_374 = arith.constant dense<0.000000e+00> : vector<2x128xf32>
    %403 = tpu.matmul %402, %400, %cst_374 {dimension_numbers = #tpu.dot_dimension_numbers<[1], [0], [0], [1], [0, 0, 1, 1], [], []>} : vector<2x8xbf16>, vector<8x128xbf16>, vector<2x128xf32> -> vector<2x128xf32>
    %404 = arith.truncf %403 : vector<2x128xf32> to vector<2x128xbf16>
    %c0_375 = arith.constant 0 : index
    %c0_376 = arith.constant 0 : index
    %c0_377 = arith.constant 0 : index
    %405 = vector.load %arg21[%c0_375, %c0_376, %c0_377] : memref<4x128x256xbf16, #tpu.memory_space<vmem>>, vector<1x128x256xbf16>
    %406 = vector.shape_cast %405 : vector<1x128x256xbf16> to vector<128x256xbf16>
    %cst_378 = arith.constant dense<0.000000e+00> : vector<2x256xf32>
    %407 = tpu.matmul %404, %406, %cst_378 {dimension_numbers = #tpu.dot_dimension_numbers<[1], [0], [0], [1], [0, 0, 1, 1], [], []>} : vector<2x128xbf16>, vector<128x256xbf16>, vector<2x256xf32> -> vector<2x256xf32>
    %c1_379 = arith.constant 1 : index
    %c0_380 = arith.constant 0 : index
    %c0_381 = arith.constant 0 : index
    %408 = vector.load %arg20[%c1_379, %c0_380, %c0_381] : memref<4x2x8xbf16, #tpu.memory_space<vmem>>, vector<1x2x8xbf16>
    %409 = vector.shape_cast %408 : vector<1x2x8xbf16> to vector<2x8xbf16>
    %cst_382 = arith.constant dense<0.000000e+00> : vector<2x128xf32>
    %410 = tpu.matmul %409, %400, %cst_382 {dimension_numbers = #tpu.dot_dimension_numbers<[1], [0], [0], [1], [0, 0, 1, 1], [], []>} : vector<2x8xbf16>, vector<8x128xbf16>, vector<2x128xf32> -> vector<2x128xf32>
    %411 = arith.truncf %410 : vector<2x128xf32> to vector<2x128xbf16>
    %c1_383 = arith.constant 1 : index
    %c0_384 = arith.constant 0 : index
    %c0_385 = arith.constant 0 : index
    %412 = vector.load %arg21[%c1_383, %c0_384, %c0_385] : memref<4x128x256xbf16, #tpu.memory_space<vmem>>, vector<1x128x256xbf16>
    %413 = vector.shape_cast %412 : vector<1x128x256xbf16> to vector<128x256xbf16>
    %cst_386 = arith.constant dense<0.000000e+00> : vector<2x256xf32>
    %414 = tpu.matmul %411, %413, %cst_386 {dimension_numbers = #tpu.dot_dimension_numbers<[1], [0], [0], [1], [0, 0, 1, 1], [], []>} : vector<2x128xbf16>, vector<128x256xbf16>, vector<2x256xf32> -> vector<2x256xf32>
    %415 = arith.addf %407, %414 : vector<2x256xf32>
    %c2_387 = arith.constant 2 : index
    %c0_388 = arith.constant 0 : index
    %c0_389 = arith.constant 0 : index
    %416 = vector.load %arg20[%c2_387, %c0_388, %c0_389] : memref<4x2x8xbf16, #tpu.memory_space<vmem>>, vector<1x2x8xbf16>
    %417 = vector.shape_cast %416 : vector<1x2x8xbf16> to vector<2x8xbf16>
    %cst_390 = arith.constant dense<0.000000e+00> : vector<2x128xf32>
    %418 = tpu.matmul %417, %400, %cst_390 {dimension_numbers = #tpu.dot_dimension_numbers<[1], [0], [0], [1], [0, 0, 1, 1], [], []>} : vector<2x8xbf16>, vector<8x128xbf16>, vector<2x128xf32> -> vector<2x128xf32>
    %419 = arith.truncf %418 : vector<2x128xf32> to vector<2x128xbf16>
    %c2_391 = arith.constant 2 : index
    %c0_392 = arith.constant 0 : index
    %c0_393 = arith.constant 0 : index
    %420 = vector.load %arg21[%c2_391, %c0_392, %c0_393] : memref<4x128x256xbf16, #tpu.memory_space<vmem>>, vector<1x128x256xbf16>
    %421 = vector.shape_cast %420 : vector<1x128x256xbf16> to vector<128x256xbf16>
    %cst_394 = arith.constant dense<0.000000e+00> : vector<2x256xf32>
    %422 = tpu.matmul %419, %421, %cst_394 {dimension_numbers = #tpu.dot_dimension_numbers<[1], [0], [0], [1], [0, 0, 1, 1], [], []>} : vector<2x128xbf16>, vector<128x256xbf16>, vector<2x256xf32> -> vector<2x256xf32>
    %423 = arith.addf %415, %422 : vector<2x256xf32>
    %c3_395 = arith.constant 3 : index
    %c0_396 = arith.constant 0 : index
    %c0_397 = arith.constant 0 : index
    %424 = vector.load %arg20[%c3_395, %c0_396, %c0_397] : memref<4x2x8xbf16, #tpu.memory_space<vmem>>, vector<1x2x8xbf16>
    %425 = vector.shape_cast %424 : vector<1x2x8xbf16> to vector<2x8xbf16>
    %cst_398 = arith.constant dense<0.000000e+00> : vector<2x128xf32>
    %426 = tpu.matmul %425, %400, %cst_398 {dimension_numbers = #tpu.dot_dimension_numbers<[1], [0], [0], [1], [0, 0, 1, 1], [], []>} : vector<2x8xbf16>, vector<8x128xbf16>, vector<2x128xf32> -> vector<2x128xf32>
    %427 = arith.truncf %426 : vector<2x128xf32> to vector<2x128xbf16>
    %c3_399 = arith.constant 3 : index
    %c0_400 = arith.constant 0 : index
    %c0_401 = arith.constant 0 : index
    %428 = vector.load %arg21[%c3_399, %c0_400, %c0_401] : memref<4x128x256xbf16, #tpu.memory_space<vmem>>, vector<1x128x256xbf16>
    %429 = vector.shape_cast %428 : vector<1x128x256xbf16> to vector<128x256xbf16>
    %cst_402 = arith.constant dense<0.000000e+00> : vector<2x256xf32>
    %430 = tpu.matmul %427, %429, %cst_402 {dimension_numbers = #tpu.dot_dimension_numbers<[1], [0], [0], [1], [0, 0, 1, 1], [], []>} : vector<2x128xbf16>, vector<128x256xbf16>, vector<2x256xf32> -> vector<2x256xf32>
    %431 = arith.addf %423, %430 : vector<2x256xf32>
    %c0_403 = arith.constant 0 : index
    %c0_404 = arith.constant 0 : index
    %432 = vector.load %arg22[%c0_403, %c0_404] : memref<1x256xf32, #tpu.memory_space<vmem>>, vector<1x256xf32>
    %433 = vector.broadcast %432 : vector<1x256xf32> to vector<2x256xf32>
    %434 = arith.addf %431, %433 : vector<2x256xf32>
    %cst_405 = arith.constant 0.000000e+00 : f32
    %435 = vector.broadcast %cst_405 : f32 to vector<2x256xf32>
    %436 = arith.maximumf %434, %435 : vector<2x256xf32>
    %437 = arith.truncf %436 : vector<2x256xf32> to vector<2x256xbf16>
    %c0_406 = arith.constant 0 : index
    %c0_407 = arith.constant 0 : index
    %c0_408 = arith.constant 0 : index
    %438 = vector.load %arg23[%c0_406, %c0_407, %c0_408] : memref<1x2x2xbf16, #tpu.memory_space<vmem>>, vector<1x2x2xbf16>
    %439 = vector.shape_cast %438 : vector<1x2x2xbf16> to vector<2x2xbf16>
    %cst_409 = arith.constant dense<0.000000e+00> : vector<2x256xf32>
    %440 = tpu.matmul %439, %437, %cst_409 {dimension_numbers = #tpu.dot_dimension_numbers<[1], [0], [0], [1], [0, 0, 1, 1], [], []>} : vector<2x2xbf16>, vector<2x256xbf16>, vector<2x256xf32> -> vector<2x256xf32>
    %441 = arith.truncf %440 : vector<2x256xf32> to vector<2x256xbf16>
    %c0_410 = arith.constant 0 : index
    %c0_411 = arith.constant 0 : index
    %c0_412 = arith.constant 0 : index
    %442 = vector.load %arg24[%c0_410, %c0_411, %c0_412] : memref<1x256x256xbf16, #tpu.memory_space<vmem>>, vector<1x256x256xbf16>
    %443 = vector.shape_cast %442 : vector<1x256x256xbf16> to vector<256x256xbf16>
    %cst_413 = arith.constant dense<0.000000e+00> : vector<2x256xf32>
    %444 = tpu.matmul %441, %443, %cst_413 {dimension_numbers = #tpu.dot_dimension_numbers<[1], [0], [0], [1], [0, 0, 1, 1], [], []>} : vector<2x256xbf16>, vector<256x256xbf16>, vector<2x256xf32> -> vector<2x256xf32>
    %c0_414 = arith.constant 0 : index
    %c0_415 = arith.constant 0 : index
    %445 = vector.load %arg25[%c0_414, %c0_415] : memref<1x256xf32, #tpu.memory_space<vmem>>, vector<1x256xf32>
    %446 = vector.broadcast %445 : vector<1x256xf32> to vector<2x256xf32>
    %447 = arith.addf %444, %446 : vector<2x256xf32>
    %c0_416 = arith.constant 0 : index
    %c0_417 = arith.constant 0 : index
    %c0_418 = arith.constant 0 : index
    %448 = vector.load %arg26[%c0_416, %c0_417, %c0_418] : memref<1x2x8xbf16, #tpu.memory_space<vmem>>, vector<1x2x8xbf16>
    %449 = vector.shape_cast %448 : vector<1x2x8xbf16> to vector<2x8xbf16>
    %cst_419 = arith.constant dense<0.000000e+00> : vector<2x128xf32>
    %450 = tpu.matmul %449, %400, %cst_419 {dimension_numbers = #tpu.dot_dimension_numbers<[1], [0], [0], [1], [0, 0, 1, 1], [], []>} : vector<2x8xbf16>, vector<8x128xbf16>, vector<2x128xf32> -> vector<2x128xf32>
    %451 = arith.truncf %450 : vector<2x128xf32> to vector<2x128xbf16>
    %c0_420 = arith.constant 0 : index
    %c0_421 = arith.constant 0 : index
    %c0_422 = arith.constant 0 : index
    %452 = vector.load %arg27[%c0_420, %c0_421, %c0_422] : memref<1x128x256xbf16, #tpu.memory_space<vmem>>, vector<1x128x256xbf16>
    %453 = vector.shape_cast %452 : vector<1x128x256xbf16> to vector<128x256xbf16>
    %cst_423 = arith.constant dense<0.000000e+00> : vector<2x256xf32>
    %454 = tpu.matmul %451, %453, %cst_423 {dimension_numbers = #tpu.dot_dimension_numbers<[1], [0], [0], [1], [0, 0, 1, 1], [], []>} : vector<2x128xbf16>, vector<128x256xbf16>, vector<2x256xf32> -> vector<2x256xf32>
    %c0_424 = arith.constant 0 : index
    %c0_425 = arith.constant 0 : index
    %455 = vector.load %arg28[%c0_424, %c0_425] : memref<1x256xf32, #tpu.memory_space<vmem>>, vector<1x256xf32>
    %456 = vector.broadcast %455 : vector<1x256xf32> to vector<2x256xf32>
    %457 = arith.addf %454, %456 : vector<2x256xf32>
    %458 = arith.addf %447, %457 : vector<2x256xf32>
    %cst_426 = arith.constant 0.000000e+00 : f32
    %459 = vector.broadcast %cst_426 : f32 to vector<2x256xf32>
    %460 = arith.maximumf %458, %459 : vector<2x256xf32>
    %c0_427 = arith.constant 0 : index
    %c0_428 = arith.constant 0 : index
    %461 = vector.load %arg29[%c0_427, %c0_428] : memref<2x256xf32, #tpu.memory_space<vmem>>, vector<2x256xf32>
    tpu.vector_store %arg29[%c0_427, %c0_428], %460 {strides = array<i32>} : memref<2x256xf32, #tpu.memory_space<vmem>>, vector<2x256xf32>,
    return
  }
}

</mosaic_0001>

<bundles_post_ra>
// kernel: forward.1
= control target key start
LH: loop header
LB: loop body
LE: loop exit
PB: predicated region body
PF: predicated region fallthrough
CT: control target
= control target key end

     0   :  { %s8192_s6 = smov 1   ;;  %s8193_s10 = smov 2   ;;  %s9402_s0 = inlined_call_operand.smem [shape: u32[30], index: -1, kind: input, shape index: {}] }
   0x1   :  { %s8231_s5 = sld [smem:[%s9402_s0]]   ;;  %s8194_s14 = smov 3  }
   0x2   :  { %s8236_s9 = sld [smem:[%s9402_s0 + %s8192_s6]]   ;;  %s8195_s18 = smov 4  }
   0x3   :  { %s8241_s13 = sld [smem:[%s9402_s0 + %s8193_s10]]   ;;  %s8196_s22 = smov 5  }
   0x4   :  { %s8246_s17 = sld [smem:[%s9402_s0 + %s8194_s14]]   ;;  %s8197_s26 = smov 6  }
   0x5   :  { %s8251_s21 = sld [smem:[%s9402_s0 + %s8195_s18]]   ;;  %s8198_s30 = smov 7  }
   0x6   :  { %s8256_s25 = sld [smem:[%s9402_s0 + %s8196_s22]]   ;;  %s8199_s4 = smov 8  }
   0x7   :  { %s8261_s29 = sld [smem:[%s9402_s0 + %s8197_s26]]   ;;  %s8200_s10 = smov 9  }
   0x8   :  { %s8266_s3 = sld [smem:[%s9402_s0 + %s8198_s30]]   ;;  %s8201_s15 = smov 10  }
   0x9   :  { %s8271_s8 = sld [smem:[%s9402_s0 + %s8199_s4]]   ;;  %s8202_s20 = smov 11  }
   0xa   :  { %s8276_s14 = sld [smem:[%s9402_s0 + %s8200_s10]]   ;;  %s8203_s26 = smov 12  }
   0xb   :  { %s8281_s19 = sld [smem:[%s9402_s0 + %s8201_s15]]   ;;  %s8204_s1 = smov 13  }
   0xc   :  { %s8286_s24 = sld [smem:[%s9402_s0 + %s8202_s20]]   ;;  %s8205_s7 = smov 14  }
   0xd   :  { %s8291_s30 = sld [smem:[%s9402_s0 + %s8203_s26]]   ;;  %s8206_s15 = smov 15  }
   0xe   :  { %s8296_s6 = sld [smem:[%s9402_s0 + %s8204_s1]]   ;;  %s8207_s22 = smov 16  }
   0xf   :  { %s8301_s12 = sld [smem:[%s9402_s0 + %s8205_s7]]   ;;  %s8208_s28 = smov 17  }
  0x10   :  { %s8306_s20 = sld [smem:[%s9402_s0 + %s8206_s15]]   ;;  %s8209_s7 = smov 18  }
  0x11   :  { %s8311_s27 = sld [smem:[%s9402_s0 + %s8207_s22]]   ;;  %s8210_s15 = smov 19  }
  0x12   :  { %s8316_s4 = sld [smem:[%s9402_s0 + %s8208_s28]]   ;;  %s8211_s22 = smov 20  }
  0x13   :  { %s8212_s28 = smov 21  }
  0x14   :  { %9408 = sst [smem:[#allocation5_spill]] %s8296_s6 }
  0x15   :  { %9409 = sst [smem:[#allocation6_spill]] %s8301_s12 }
  0x16   :  { %s8321_s12 = sld [smem:[%s9402_s0 + %s8209_s7]]   ;;  %s8213_s7 = smov 22  }
  0x17   :  { %9410 = sst [smem:[#allocation7_spill]] %s8311_s27 }
  0x18   :  { %9411 = sst [smem:[#allocation8_spill]] %s8316_s4 }
  0x19   :  { %s8326_s6 = sld [smem:[%s9402_s0 + %s8210_s15]]   ;;  %s8214_s15 = smov 23  }
  0x1a   :  { %s8331_s27 = sld [smem:[%s9402_s0 + %s8211_s22]]   ;;  %s8215_s22 = smov 24  }
  0x1b   :  { %s8336_s4 = sld [smem:[%s9402_s0 + %s8212_s28]]   ;;  %s8216_s28 = smov 25  }
  0x1c   :  { %9412 = sst [smem:[#allocation9_spill]] %s8321_s12 }
  0x1d   :  { %s8341_s12 = sld [smem:[%s9402_s0 + %s8213_s7]]   ;;  %s8217_s7 = smov 26  }
  0x1f   :  { %9413 = sst [smem:[#allocation10_spill]] %s8326_s6 }
  0x20   :  { %9414 = sst [smem:[#allocation11_spill]] %s8331_s27 }
  0x21   :  { %9415 = sst [smem:[#allocation12_spill]] %s8336_s4 }
  0x22   :  { %s8346_s6 = sld [smem:[%s9402_s0 + %s8214_s15]]   ;;  %s8218_s15 = smov 27  }
  0x23   :  { %9416 = sst [smem:[#allocation13_spill]] %s8341_s12 }
  0x24   :  { %s8351_s27 = sld [smem:[%s9402_s0 + %s8215_s22]]   ;;  %s8219_s22 = smov 28  }
  0x25   :  { %s8356_s4 = sld [smem:[%s9402_s0 + %s8216_s28]]   ;;  %s8220_s28 = smov 29  }
  0x26   :  { %s8361_s12 = sld [smem:[%s9402_s0 + %s8217_s7]]  }
  0x28   :  { %9417 = sst [smem:[#allocation14_spill]] %s8346_s6 }
  0x29   :  { %s8366_s6 = sld [smem:[%s9402_s0 + %s8218_s15]]  }
  0x2a   :  { %9418 = sst [smem:[#allocation15_spill]] %s8351_s27 }
  0x2b   :  { %9419 = sst [smem:[#allocation16_spill]] %s8356_s4 }
  0x2c   :  { %s8371_s27 = sld [smem:[%s9402_s0 + %s8219_s22]]  }
  0x2d   :  { %s8376_s4 = sld [smem:[%s9402_s0 + %s8220_s28]]  }
  0x2e   :  { %v7761_v0 = vld [vmem:[%s8236_s9 + $0x38] sm:$0xff]  ;;  %v164_v1 = vld [vmem:[%s8236_s9 + $0x60] sm:$0x3]  ;;  %v7760_v3 = vld [vmem:[%s8236_s9 + $0x30] sm:$0xff]  ;;  %vm341_vm0 = vcmask 1041408  }
  0x2f   :  { %v290_v2 = vunpack.c.l.b16 %v164_v1  ;;  %345 = vmatpush.bf16.msra.mxu0 %v7761_v0  ;;  %v7759_v6 = vld [vmem:[%s8236_s9 + $0x28] sm:$0xff]  ;;  %v7765_v7 = vld [vmem:[%s8236_s9 + $0x58] sm:$0xff] }
  0x31   :  { %v303_v4 = vpack.c.b16 %v290_v2, %v290_v2 }
  0x33   :  { %v343_v5 = vsel %vm341_vm0, %v303_v4, 0  ;;  %346 = vmatpush.bf16.msra.mxu0 %v7760_v3 }
  0x34   :  { %397 = vmatpush.bf16.msra.mxu1 %v343_v5 }
  0x35   :  { %64 = vsyncpa [#allocation3], 0  ;;  %v7758_v8 = vld [vmem:[%s8236_s9 + $0x20] sm:$0xff]  ;;  %v7764_v9 = vld [vmem:[%s8236_s9 + $0x50] sm:$0xff]  ;;  %vm316_vm1 = vcmask 556032   ;;  %vm1062_vm2 = vcmask 261120  }
  0x36   :  { %v7757_v10 = vld [vmem:[%s8236_s9 + $0x18] sm:$0xff]  ;;  %v7763_v11 = vld [vmem:[%s8236_s9 + $0x48] sm:$0xff]  ;;  %v7756_v12 = vld [vmem:[%s8236_s9 + $0x10] sm:$0xff]  ;;  %vm1173_vm3 = vcmask 523264   ;;  %s9420_s0 = sld [smem:[#allocation5_spill]]  ;;  %vm3563_vm4 = vcmask 1043456  }
  0x37   :  { %347 = vmatpush.bf16.msra.mxu0 %v7759_v6  ;;  %v7762_v13 = vld [vmem:[%s8236_s9 + $0x40] sm:$0xff]  ;;  %v5599_v15 = vld [vmem:[%s8231_s5 + $0x8] sm:$0xf0]  ;;  %v7739_v20 = vld [vmem:[%s8231_s5 + $0x4] sm:$0xf0]  ;;  %vm3559_vm5 = vcmask 64512  }
  0x38   :  { %398 = vmatpush.bf16.msra.mxu1 %v7765_v7  ;;  %v7738_v14 = vld [vmem:[%s8231_s5 + $0x4] sm:$0xf]  ;;  %v7755_v17 = vld [vmem:[%s8236_s9 + $0x8] sm:$0xff]  ;;  %v5597_v19 = vld [vmem:[%s8231_s5] sm:$0xf]  ;;  %vm5109_vm6 = vcmask 1040384  }
  0x39   :  { %v5602_v16 = vor.u32 %v7738_v14, %v5599_v15  ;;  %v7754_v18 = vld [vmem:[%s8236_s9] sm:$0xff]  ;;  %v5598_v21 = vor.u32 %v7739_v20, %v5597_v19  ;;  %v7740_v22 = vld [vmem:[%s8231_s5 + $0x14] sm:$0xf]  ;;  %v5607_v23 = vld [vmem:[%s8231_s5 + $0x18] sm:$0xf0]  ;;  %s9422_s9 = sld [smem:[#allocation8_spill]] }
  0x3a   :  { %v5610_v24 = vor.u32 %v7740_v22, %v5607_v23  ;;  %v5605_v25 = vld [vmem:[%s8231_s5 + $0x10] sm:$0xf]  ;;  %v7741_v26 = vld [vmem:[%s8231_s5 + $0x14] sm:$0xf0]  ;;  %v7742_v28 = vld [vmem:[%s8231_s5 + $0x24] sm:$0xf] }
  0x3b   :  { %348 = vmatpush.bf16.msra.mxu0 %v7758_v8  ;;  %v5606_v27 = vor.u32 %v7741_v26, %v5605_v25  ;;  %v5615_v29 = vld [vmem:[%s8231_s5 + $0x28] sm:$0xf0]  ;;  %v5613_v31 = vld [vmem:[%s8231_s5 + $0x20] sm:$0xf]  ;;  %v7743_v32 = vld [vmem:[%s8231_s5 + $0x24] sm:$0xf0] }
  0x3c   :  { %399 = vmatpush.bf16.msra.mxu1 %v7764_v9  ;;  %v5618_v30 = vor.u32 %v7742_v28, %v5615_v29  ;;  %v5614_v33 = vor.u32 %v7743_v32, %v5613_v31  ;;  %v7744_v34 = vld [vmem:[%s8231_s5 + $0x34] sm:$0xf]  ;;  %v5623_v35 = vld [vmem:[%s8231_s5 + $0x38] sm:$0xf0]  ;;  %v5621_v37 = vld [vmem:[%s8231_s5 + $0x30] sm:$0xf] }
  0x3d   :  { %v5626_v36 = vor.u32 %v7744_v34, %v5623_v35  ;;  %v7745_v38 = vld [vmem:[%s8231_s5 + $0x34] sm:$0xf0]  ;;  %v7746_v40 = vld [vmem:[%s8231_s5 + $0x44] sm:$0xf]  ;;  %v5631_v41 = vld [vmem:[%s8231_s5 + $0x48] sm:$0xf0] }
  0x3e   :  { %v5622_v39 = vor.u32 %v7745_v38, %v5621_v37  ;;  %v5634_v42 = vor.u32 %v7746_v40, %v5631_v41  ;;  %v5629_v43 = vld [vmem:[%s8231_s5 + $0x40] sm:$0xf]  ;;  %v7747_v44 = vld [vmem:[%s8231_s5 + $0x44] sm:$0xf0]  ;;  %v7748_v46 = vld [vmem:[%s8231_s5 + $0x54] sm:$0xf] }
  0x3f   :  { %349 = vmatpush.bf16.msra.mxu0 %v7757_v10  ;;  %v5630_v45 = vor.u32 %v7747_v44, %v5629_v43  ;;  %v5639_v47 = vld [vmem:[%s8231_s5 + $0x58] sm:$0xf0]  ;;  %v5637_v49 = vld [vmem:[%s8231_s5 + $0x50] sm:$0xf]  ;;  %v7749_v50 = vld [vmem:[%s8231_s5 + $0x54] sm:$0xf0] }
  0x40   :  { %400 = vmatpush.bf16.msra.mxu1 %v7763_v11  ;;  %v5642_v48 = vor.u32 %v7748_v46, %v5639_v47  ;;  %v5638_v51 = vor.u32 %v7749_v50, %v5637_v49  ;;  %v7750_v52 = vld [vmem:[%s8231_s5 + $0x64] sm:$0xf]  ;;  %v5647_v53 = vld [vmem:[%s8231_s5 + $0x68] sm:$0xf0]  ;;  %v5645_v55 = vld [vmem:[%s8231_s5 + $0x60] sm:$0xf] }
  0x41   :  { %v5650_v54 = vor.u32 %v7750_v52, %v5647_v53  ;;  %v7751_v56 = vld [vmem:[%s8231_s5 + $0x64] sm:$0xf0]  ;;  %v7752_v58 = vld [vmem:[%s8231_s5 + $0x74] sm:$0xf]  ;;  %v5655_v59 = vld [vmem:[%s8231_s5 + $0x78] sm:$0xf0] }
  0x42   :  { %v5646_v57 = vor.u32 %v7751_v56, %v5645_v55  ;;  %v5658_v60 = vor.u32 %v7752_v58, %v5655_v59  ;;  %v5653_v61 = vld [vmem:[%s8231_s5 + $0x70] sm:$0xf]  ;;  %v7753_v62 = vld [vmem:[%s8231_s5 + $0x74] sm:$0xf0]  ;;  %v8433_v1 = vld [vmem:[%s8241_s13] ss:$0 sm:$0xff] }
  0x43   :  { %350 = vmatpush.bf16.msra.mxu0 %v7756_v12  ;;  %v5654_v63 = vor.u32 %v7753_v62, %v5653_v61  ;;  %v5729_v40 = vld [vmem:[%s8251_s21 + $0x30] sm:$0xff]  ;;  %v8221_v41 = vmov 0   ;;  %v474_v44 = vld [vmem:[%s8251_s21 + $0x18] sm:$0xff]  ;;  %v471_v53 = vld [vmem:[%s8251_s21] sm:$0xff]  ;;  %s9421_s5 = sld [smem:[#allocation6_spill]]  ;;  %vm5105_vm7 = vcmask 15360  }
  0x44   :  { %401 = vmatpush.bf16.msra.mxu1 %v7762_v13  ;;  %8157 = vset.pattern.permute.xlu0 %v8221_v41  ;;  %s9423_s13 = sld [smem:[#allocation9_spill]] }
  0x45   :  { %8158 = vset.pattern.permute.xlu1 %v8221_v41  ;;  %8159 = vset.pattern.permute.xlu2 %v8221_v41 }
  0x46   :  { %548 = vperm.xlu1 %8158, %v5729_v40   ;;  %v5778_v40 = vld [vmem:[%s8251_s21 + $0x98] sm:$0xff] }
  0x47   :  { %5707 = vmatmul.msk.bf16.vlgmr.msra.gmra.mxu1 %vm316_vm1, %v5602_v16  ;;  %351 = vmatpush.bf16.msra.mxu0 %v7755_v17 }
  0x4b   :  { %352 = vmatpush.bf16.msra.mxu0 %v7754_v18 }
  0x4e   :  { %353 = vmatmul.bf16.vlgmr.msra.gmra.mxu0 %v5598_v21 }
  0x57   :  { %5708 = vmatmul.msk.bf16.gmra.mxu1 %vm316_vm1, %v5610_v24 }
  0x5e   :  { %358 = vmatmul.bf16.gmra.mxu0 %v5606_v27 }
  0x67   :  { %5709 = vmatmul.msk.bf16.gmra.mxu1 %vm316_vm1, %v5618_v30 }
  0x6e   :  { %363 = vmatmul.bf16.gmra.mxu0 %v5614_v33 }
  0x77   :  { %5710 = vmatmul.msk.bf16.gmra.mxu1 %vm316_vm1, %v5626_v36 }
  0x7e   :  { %368 = vmatmul.bf16.gmra.mxu0 %v5622_v39  ;;  %v473_v39 = vld [vmem:[%s8251_s21 + $0x10] sm:$0xff] }
  0x7f   :  { %487 = vperm.xlu0 %8157, %v473_v39  }
  0x87   :  { %5711 = vmatmul.msk.bf16.gmra.mxu1 %vm316_vm1, %v5634_v42  ;;  %492 = vperm.xlu0 %8157, %v474_v44   ;;  %v7768_v44 = vld [vmem:[%s8246_s17 + $0x10] sm:$0xff] }
  0x8e   :  { %373 = vmatmul.bf16.gmra.mxu0 %v5630_v45  ;;  %v5730_v45 = vld [vmem:[%s8251_s21 + $0x38] sm:$0xff] }
  0x8f   :  { %553 = vperm.xlu1 %8158, %v5730_v45   ;;  %477 = vperm.xlu0 %8157, %v471_v53   ;;  %v5762_v45 = vld [vmem:[%s8251_s21 + $0x78] sm:$0xff]  ;;  %v5792_v53 = vld [vmem:[%s8251_s21 + $0xa8] sm:$0xff] }
  0x97   :  { %5712 = vmatmul.msk.bf16.gmra.mxu1 %vm316_vm1, %v5642_v48 }
  0x9e   :  { %378 = vmatmul.bf16.gmra.mxu0 %v5638_v51 }
  0xa7   :  { %5713 = vmatmul.msk.bf16.gmra.mxu1 %vm316_vm1, %v5650_v54  ;;  %v472_v54 = vld [vmem:[%s8251_s21 + $0x8] sm:$0xff] }
  0xa8   :  { %482 = vperm.xlu1 %8158, %v472_v54   ;;  %v7782_v54 = vld [vmem:[%s8246_s17 + $0x80] sm:$0xff] }
  0xae   :  { %383 = vmatmul.bf16.gmra.mxu0 %v5646_v57 }
  0xb7   :  { %5714 = vmatmul.msk.bf16.gmra.mxu1 %vm316_vm1, %v5658_v60 }
  0xbe   :  { %388 = vmatmul.bf16.gmra.mxu0 %v5654_v63 }
  0xc4   :  { %v403_v0 = vpop.f32.mrf.mxu1 }
  0xcb   :  { %v354_v2 = vpop.f32.mrf.mxu0 }
  0xcc   :  { %v8435_v3 = vpop.f32.mrf.mxu1  ;;  %v355_v4 = vadd.f32 %v8433_v1, %v354_v2 }
  0xce   :  { %v8438_v5 = vadd.f32 %v403_v0, %v355_v4 }
  0xd0   :  { %v443_v41 = vmax.f32 %v8438_v5, 0.0  ;;  %v5794_v5 = vld [vmem:[%s8251_s21 + $0xb8] sm:$0xff] }
  0xd3   :  { %v8440_v6 = vpop.f32.mrf.mxu0 }
  0xd4   :  { %v408_v7 = vpop.f32.mrf.mxu1 }
  0xdb   :  { %v359_v8 = vpop.f32.mrf.mxu0 }
  0xdc   :  { %v8442_v9 = vpop.f32.mrf.mxu1  ;;  %v360_v10 = vadd.f32 %v8433_v1, %v359_v8 }
  0xde   :  { %v8445_v11 = vadd.f32 %v408_v7, %v360_v10 }
  0xe3   :  { %v8447_v12 = vpop.f32.mrf.mxu0 }
  0xe4   :  { %v413_v13 = vpop.f32.mrf.mxu1 }
  0xeb   :  { %v364_v14 = vpop.f32.mrf.mxu0 }
  0xec   :  { %v8449_v15 = vpop.f32.mrf.mxu1  ;;  %v365_v16 = vadd.f32 %v8433_v1, %v364_v14 }
  0xee   :  { %v8452_v17 = vadd.f32 %v413_v13, %v365_v16  ;;  %v5728_v16 = vld [vmem:[%s8251_s21 + $0x28] sm:$0xff] }
  0xef   :  { %543 = vperm.xlu0 %8157, %v5728_v16   ;;  %v7774_v16 = vld [vmem:[%s8246_s17 + $0x40] sm:$0xff] }
  0xf3   :  { %v8454_v18 = vpop.f32.mrf.mxu0 }
  0xf4   :  { %v418_v19 = vpop.f32.mrf.mxu1 }
  0xfb   :  { %v369_v20 = vpop.f32.mrf.mxu0 }
  0xfc   :  { %v8456_v21 = vpop.f32.mrf.mxu1  ;;  %v370_v22 = vadd.f32 %v8433_v1, %v369_v20  ;;  %v5761_v20 = vld [vmem:[%s8251_s21 + $0x70] sm:$0xff] }
  0xfd   :  { %678 = vperm.xlu1 %8158, %v5761_v20   ;;  %v7776_v20 = vld [vmem:[%s8246_s17 + $0x50] sm:$0xff] }
  0xfe   :  { %v8459_v23 = vadd.f32 %v418_v19, %v370_v22  ;;  %v5745_v19 = vld [vmem:[%s8251_s21 + $0x50] sm:$0xff] }
  0xff   :  { %613 = vperm.xlu2 %8159, %v5745_v19   ;;  %v5840_v19 = vld [vmem:[%s8251_s21 + $0x108] sm:$0xff] }
 0x103   :  { %v371_v24 = vpop.f32.mrf.mxu0 }
 0x104   :  { %v423_v25 = vpop.f32.mrf.mxu1  ;;  %v372_v8 = vadd.f32 %v8433_v1, %v371_v24  ;;  %v367_v24 = vadd.f32 %v8433_v1, %v8454_v18 }
 0x10b   :  { %v374_v26 = vpop.f32.mrf.mxu0 }
 0x10c   :  { %v425_v27 = vpop.f32.mrf.mxu1  ;;  %v375_v28 = vadd.f32 %v8433_v1, %v374_v26 }
 0x10e   :  { %v8462_v29 = vadd.f32 %v423_v25, %v375_v28  ;;  %v421_v25 = vadd.f32 %v8456_v21, %v372_v8  ;;  %v5743_v21 = vld [vmem:[%s8251_s21 + $0x40] sm:$0xff]  ;;  %v7773_v8 = vld [vmem:[%s8246_s17 + $0x38] sm:$0xff] }
 0x10f   :  { %603 = vperm.xlu0 %8157, %v5743_v21  }
 0x110   :  { %v451_v28 = vmax.f32 %v8462_v29, 0.0  ;;  %v449_v29 = vmax.f32 %v8459_v23, 0.0  ;;  %v447_v23 = vmax.f32 %v8452_v17, 0.0 }
 0x113   :  { %v376_v30 = vpop.f32.mrf.mxu0 }
 0x114   :  { %v428_v31 = vpop.f32.mrf.mxu1  ;;  %v377_v62 = vadd.f32 %v8433_v1, %v376_v30  ;;  %v362_v30 = vadd.f32 %v8433_v1, %v8447_v12  ;;  %v357_v12 = vadd.f32 %v8433_v1, %v8440_v6  ;;  %v5759_v6 = vld [vmem:[%s8251_s21 + $0x60] sm:$0xff] }
 0x116   :  { %v426_v10 = vadd.f32 %v425_v27, %v377_v62  ;;  %v5842_v62 = vld [vmem:[%s8251_s21 + $0x118] sm:$0xff] }
 0x117   :  { %748 = vperm.xlu0 %8157, %v5778_v40  }
 0x118   :  { %v452_v26 = vmax.f32 %v426_v10, 0.0  ;;  %v5808_v10 = vld [vmem:[%s8251_s21 + $0xc8] sm:$0xff] }
 0x11a   :  { %v8503_v18 = vpack.c.bf16 %v452_v26, %v451_v28  ;;  %v7780_v26 = vld [vmem:[%s8246_s17 + $0x70] sm:$0xff]  ;;  %v7779_v28 = vld [vmem:[%s8246_s17 + $0x68] sm:$0xff] }
 0x11b   :  { %v379_v32 = vpop.f32.mrf.mxu0 }
 0x11c   :  { %v430_v33 = vpop.f32.mrf.mxu1  ;;  %v380_v58 = vadd.f32 %v8433_v1, %v379_v32  ;;  %v450_v32 = vmax.f32 %v421_v25, 0.0  ;;  %v7778_v25 = vld [vmem:[%s8246_s17 + $0x60] sm:$0xff] }
 0x11e   :  { %v429_v4 = vadd.f32 %v428_v31, %v380_v58  ;;  %v416_v31 = vadd.f32 %v8449_v15, %v367_v24  ;;  %v411_v15 = vadd.f32 %v8442_v9, %v362_v30  ;;  %v445_v9 = vmax.f32 %v8445_v11, 0.0  ;;  %v5841_v58 = vld [vmem:[%s8251_s21 + $0x110] sm:$0xff]  ;;  %v7777_v24 = vld [vmem:[%s8246_s17 + $0x58] sm:$0xff] }
 0x11f   :  { %v7781_v30 = vld [vmem:[%s8246_s17 + $0x78] sm:$0xff] }
 0x120   :  { %v453_v22 = vmax.f32 %v429_v4, 0.0  ;;  %v5839_v4 = vld [vmem:[%s8251_s21 + $0x100] sm:$0xff] }
 0x123   :  { %v381_v34 = vpop.f32.mrf.mxu0 }
 0x124   :  { %v433_v35 = vpop.f32.mrf.mxu1  ;;  %v382_v55 = vadd.f32 %v8433_v1, %v381_v34  ;;  %v5744_v34 = vld [vmem:[%s8251_s21 + $0x48] sm:$0xff] }
 0x125   :  { %608 = vperm.xlu1 %8158, %v5744_v34  }
 0x126   :  { %v431_v63 = vadd.f32 %v430_v33, %v382_v55  ;;  %v5746_v33 = vld [vmem:[%s8251_s21 + $0x58] sm:$0xff] }
 0x127   :  { %618 = vperm.xlu2 %8159, %v5746_v33   ;;  %v5826_v55 = vld [vmem:[%s8251_s21 + $0xf8] sm:$0xff]  ;;  %v7783_v33 = vld [vmem:[%s8246_s17 + $0x88] sm:$0xff] }
 0x128   :  { %v454_v13 = vmax.f32 %v431_v63, 0.0  ;;  %v5824_v63 = vld [vmem:[%s8251_s21 + $0xe8] sm:$0xff] }
 0x12a   :  { %v8494_v27 = vpack.c.bf16 %v454_v13, %v453_v22  ;;  %v5823_v13 = vld [vmem:[%s8251_s21 + $0xe0] sm:$0xff]  ;;  %v7775_v22 = vld [vmem:[%s8246_s17 + $0x48] sm:$0xff] }
 0x12b   :  { %v384_v36 = vpop.f32.mrf.mxu0 }
 0x12c   :  { %v435_v37 = vpop.f32.mrf.mxu1  ;;  %v385_v49 = vadd.f32 %v8433_v1, %v384_v36  ;;  %v8515_v36 = vpack.c.bf16 %v450_v32, %v449_v29 }
 0x12d   :  { %668 = vperm.xlu1 %8158, %v5759_v6  }
 0x12e   :  { %v434_v59 = vadd.f32 %v433_v35, %v385_v49  ;;  %v448_v35 = vmax.f32 %v416_v31, 0.0  ;;  %v5791_v49 = vld [vmem:[%s8251_s21 + $0xa0] sm:$0xff]  ;;  %v488_v31 = vpop.permute.xlu0 %487 }
 0x130   :  { %v455_v7 = vmax.f32 %v434_v59, 0.0  ;;  %v8522_v39 = vpack.c.bf16 %v448_v35, %v447_v23  ;;  %v7770_v59 = vld [vmem:[%s8246_s17 + $0x20] sm:$0xff] }
 0x133   :  { %v386_v38 = vpop.f32.mrf.mxu0 }
 0x134   :  { %v438_v42 = vpop.f32.mrf.mxu1  ;;  %v387_v47 = vadd.f32 %v8433_v1, %v386_v38  ;;  %v446_v38 = vmax.f32 %v411_v15, 0.0 }
 0x135   :  { %813 = vperm.xlu1 %8158, %v5794_v5  }
 0x136   :  { %v436_v56 = vadd.f32 %v435_v37, %v387_v47  ;;  %v406_v37 = vadd.f32 %v8435_v3, %v357_v12  ;;  %v8531_v17 = vpack.c.bf16 %v446_v38, %v445_v9  ;;  %v5777_v47 = vld [vmem:[%s8251_s21 + $0x90] sm:$0xff] }
 0x138   :  { %v456_v0 = vmax.f32 %v436_v56, 0.0  ;;  %v444_v3 = vmax.f32 %v406_v37, 0.0  ;;  %v5775_v56 = vld [vmem:[%s8251_s21 + $0x80] sm:$0xff] }
 0x13a   :  { %v8483_v14 = vpack.c.bf16 %v456_v0, %v455_v7  ;;  %v8537_v11 = vpack.c.bf16 %v444_v3, %v443_v41  ;;  %v5825_v0 = vld [vmem:[%s8251_s21 + $0xf0] sm:$0xff]  ;;  %v7771_v7 = vld [vmem:[%s8246_s17 + $0x28] sm:$0xff] }
 0x13b   :  { %v389_v43 = vpop.f32.mrf.mxu0 }
 0x13c   :  { %v390_v46 = vadd.f32 %v8433_v1, %v389_v43  ;;  %v440_v52 = vpop.f32.mrf.mxu1  ;;  %v7766_v43 = vld [vmem:[%s8246_s17] sm:$0xff] }
 0x13e   :  { %v439_v50 = vadd.f32 %v438_v42, %v390_v46  ;;  %v5793_v42 = vld [vmem:[%s8251_s21 + $0xb0] sm:$0xff]  ;;  %v5776_v46 = vld [vmem:[%s8251_s21 + $0x88] sm:$0xff] }
 0x13f   :  { %808 = vperm.xlu0 %8157, %v5793_v42  }
 0x140   :  { %v457_v60 = vmax.f32 %v439_v50, 0.0  ;;  %v7767_v50 = vld [vmem:[%s8246_s17 + $0x8] sm:$0xff] }
 0x143   :  { %v391_v48 = vpop.f32.mrf.mxu0 }
 0x144   :  { %v392_v51 = vadd.f32 %v8433_v1, %v391_v48  ;;  %v5727_v1 = vld [vmem:[%s8251_s21 + $0x20] sm:$0xff]  ;;  %v5809_v48 = vld [vmem:[%s8251_s21 + $0xd0] sm:$0xff] }
 0x145   :  { %538 = vperm.xlu2 %8159, %v5727_v1   ;;  %873 = vperm.xlu1 %8158, %v5809_v48  }
 0x146   :  { %v441_v57 = vadd.f32 %v440_v52, %v392_v51  ;;  %v7769_v51 = vld [vmem:[%s8246_s17 + $0x18] sm:$0xff]  ;;  %v5760_v52 = vld [vmem:[%s8251_s21 + $0x68] sm:$0xff] }
 0x147   :  { %738 = vperm.xlu0 %8157, %v5776_v46  }
 0x148   :  { %v458_v61 = vmax.f32 %v441_v57, 0.0  ;;  %v5807_v57 = vld [vmem:[%s8251_s21 + $0xc0] sm:$0xff] }
 0x14a   :  { %v8477_v2 = vpack.c.bf16 %v458_v61, %v457_v60  ;;  %v7772_v60 = vld [vmem:[%s8246_s17 + $0x30] sm:$0xff]  ;;  %v5810_v61 = vld [vmem:[%s8251_s21 + $0xd8] sm:$0xff]  ;;  %s9424_s17 = sld [smem:[#allocation12_spill]] }
 0x14b   :  { %s9425_s21 = sld [smem:[#allocation7_spill]] }
 0x14c   :  { %507 = vmatpush.bf16.msra.mxu2 %v8477_v2  ;;  %568 = vmatpush.bf16.msra.mxu3 %v8477_v2 }
 0x14d   :  { %1023 = vmatpush.bf16.msrb.mxu1 %v8477_v2  ;;  %683 = vperm.xlu2 %8159, %v5762_v45  }
 0x14e   :  { %803 = vperm.xlu1 %8158, %v5792_v53  }
 0x14f   :  { %798 = vperm.xlu0 %8157, %v5791_v49  }
 0x150   :  { %508 = vmatpush.bf16.msra.mxu2 %v8483_v14  ;;  %569 = vmatpush.bf16.msra.mxu3 %v8483_v14 }
 0x151   :  { %1024 = vmatpush.bf16.msrb.mxu1 %v8483_v14 }
 0x154   :  { %509 = vmatpush.bf16.msra.mxu2 %v8494_v27  ;;  %570 = vmatpush.bf16.msra.mxu3 %v8494_v27 }
 0x155   :  { %1025 = vmatpush.bf16.msrb.mxu1 %v8494_v27  ;;  %743 = vperm.xlu2 %8159, %v5777_v47  }
 0x156   :  { %863 = vperm.xlu1 %8158, %v5807_v57  }
 0x157   :  { %943 = vperm.xlu0 %8157, %v5826_v55  }
 0x158   :  { %510 = vmatpush.bf16.msra.mxu2 %v8503_v18  ;;  %571 = vmatpush.bf16.msra.mxu3 %v8503_v18 }
 0x159   :  { %1026 = vmatpush.bf16.msrb.mxu1 %v8503_v18  ;;  %v614_v32 = vpop.permute.xlu2 %613 }
 0x15c   :  { %511 = vmatpush.bf16.msra.mxu2 %v8515_v36  ;;  %572 = vmatpush.bf16.msra.mxu3 %v8515_v36 }
 0x15d   :  { %1027 = vmatpush.bf16.msrb.mxu1 %v8515_v36  ;;  %673 = vperm.xlu2 %8159, %v5760_v52  }
 0x15e   :  { %1008 = vperm.xlu1 %8158, %v5842_v62  }
 0x15f   :  { %1003 = vperm.xlu0 %8157, %v5841_v58  }
 0x160   :  { %512 = vmatpush.bf16.msra.mxu2 %v8522_v39  ;;  %573 = vmatpush.bf16.msra.mxu3 %v8522_v39 }
 0x161   :  { %1028 = vmatpush.bf16.msrb.mxu1 %v8522_v39 }
 0x164   :  { %513 = vmatpush.bf16.msra.mxu2 %v8531_v17  ;;  %574 = vmatpush.bf16.msra.mxu3 %v8531_v17 }
 0x165   :  { %1029 = vmatpush.bf16.msrb.mxu1 %v8531_v17  ;;  %733 = vperm.xlu2 %8159, %v5775_v56  }
 0x166   :  { %993 = vperm.xlu1 %8158, %v5839_v4  }
 0x167   :  { %933 = vperm.xlu0 %8157, %v5824_v63  }
 0x168   :  { %514 = vmatpush.bf16.msra.mxu2 %v8537_v11  ;;  %575 = vmatpush.bf16.msra.mxu3 %v8537_v11 }
 0x169   :  { %1030 = vmatpush.bf16.msrb.mxu1 %v8537_v11 }
 0x16b   :  { %515 = vmatmul.bf16.vlgmr.msra.gmra.mxu2 %v7766_v43  ;;  %576 = vmatmul.bf16.vlgmr.msra.gmra.mxu3 %v7768_v44 }
 0x16c   :  { %633 = vmatpush.bf16.msrb.mxu2 %v8477_v2  ;;  %698 = vmatpush.bf16.msrb.mxu3 %v8477_v2 }
 0x16d   :  { %1031 = vmatmul.bf16.vlgmr.msrb.gmra.mxu1 %v7782_v54  ;;  %878 = vperm.xlu2 %8159, %v5810_v61  }
 0x170   :  { %634 = vmatpush.bf16.msrb.mxu2 %v8483_v14  ;;  %699 = vmatpush.bf16.msrb.mxu3 %v8483_v14 }
 0x174   :  { %635 = vmatpush.bf16.msrb.mxu2 %v8494_v27  ;;  %700 = vmatpush.bf16.msrb.mxu3 %v8494_v27 }
 0x175   :  { %938 = vperm.xlu2 %8159, %v5825_v0  }
 0x178   :  { %636 = vmatpush.bf16.msrb.mxu2 %v8503_v18  ;;  %701 = vmatpush.bf16.msrb.mxu3 %v8503_v18 }
 0x17b   :  { %520 = vmatmul.bf16.gmra.mxu2 %v7767_v50  ;;  %581 = vmatmul.bf16.gmra.mxu3 %v7769_v51 }
 0x17c   :  { %637 = vmatpush.bf16.msrb.mxu2 %v8515_v36  ;;  %702 = vmatpush.bf16.msrb.mxu3 %v8515_v36 }
 0x17d   :  { %868 = vperm.xlu2 %8159, %v5808_v10  }
 0x180   :  { %638 = vmatpush.bf16.msrb.mxu2 %v8522_v39  ;;  %703 = vmatpush.bf16.msrb.mxu3 %v8522_v39 }
 0x184   :  { %639 = vmatpush.bf16.msrb.mxu2 %v8531_v17  ;;  %704 = vmatpush.bf16.msrb.mxu3 %v8531_v17 }
 0x185   :  { %928 = vperm.xlu2 %8159, %v5823_v13  }
 0x188   :  { %640 = vmatpush.bf16.msrb.mxu2 %v8537_v11  ;;  %705 = vmatpush.bf16.msrb.mxu3 %v8537_v11 }
 0x18b   :  { %641 = vmatmul.bf16.vlgmr.msrb.gmra.mxu2 %v7770_v59  ;;  %706 = vmatmul.bf16.vlgmr.msrb.gmra.mxu3 %v7772_v60 }
 0x18c   :  { %763 = vmatpush.bf16.msra.mxu2 %v8477_v2  ;;  %828 = vmatpush.bf16.msra.mxu3 %v8477_v2 }
 0x18d   :  { %998 = vperm.xlu2 %8159, %v5840_v19  }
 0x190   :  { %764 = vmatpush.bf16.msra.mxu2 %v8483_v14  ;;  %829 = vmatpush.bf16.msra.mxu3 %v8483_v14 }
 0x194   :  { %765 = vmatpush.bf16.msra.mxu2 %v8494_v27  ;;  %830 = vmatpush.bf16.msra.mxu3 %v8494_v27 }
 0x198   :  { %766 = vmatpush.bf16.msra.mxu2 %v8503_v18  ;;  %831 = vmatpush.bf16.msra.mxu3 %v8503_v18 }
 0x19b   :  { %646 = vmatmul.bf16.gmra.mxu2 %v7771_v7  ;;  %711 = vmatmul.bf16.gmra.mxu3 %v7773_v8 }
 0x19c   :  { %767 = vmatpush.bf16.msra.mxu2 %v8515_v36  ;;  %832 = vmatpush.bf16.msra.mxu3 %v8515_v36 }
 0x1a0   :  { %768 = vmatpush.bf16.msra.mxu2 %v8522_v39  ;;  %833 = vmatpush.bf16.msra.mxu3 %v8522_v39 }
 0x1a4   :  { %769 = vmatpush.bf16.msra.mxu2 %v8531_v17  ;;  %834 = vmatpush.bf16.msra.mxu3 %v8531_v17 }
 0x1a8   :  { %770 = vmatpush.bf16.msra.mxu2 %v8537_v11  ;;  %835 = vmatpush.bf16.msra.mxu3 %v8537_v11 }
 0x1ab   :  { %771 = vmatmul.bf16.vlgmr.msra.gmra.mxu2 %v7774_v16  ;;  %836 = vmatmul.bf16.vlgmr.msra.gmra.mxu3 %v7776_v20 }
 0x1ac   :  { %893 = vmatpush.bf16.msrb.mxu2 %v8477_v2  ;;  %958 = vmatpush.bf16.msrb.mxu3 %v8477_v2 }
 0x1b0   :  { %894 = vmatpush.bf16.msrb.mxu2 %v8483_v14  ;;  %959 = vmatpush.bf16.msrb.mxu3 %v8483_v14 }
 0x1b4   :  { %895 = vmatpush.bf16.msrb.mxu2 %v8494_v27  ;;  %960 = vmatpush.bf16.msrb.mxu3 %v8494_v27 }
 0x1b8   :  { %896 = vmatpush.bf16.msrb.mxu2 %v8503_v18  ;;  %961 = vmatpush.bf16.msrb.mxu3 %v8503_v18 }
 0x1bb   :  { %776 = vmatmul.bf16.gmra.mxu2 %v7775_v22  ;;  %841 = vmatmul.bf16.gmra.mxu3 %v7777_v24 }
 0x1bc   :  { %897 = vmatpush.bf16.msrb.mxu2 %v8515_v36  ;;  %962 = vmatpush.bf16.msrb.mxu3 %v8515_v36 }
 0x1c0   :  { %898 = vmatpush.bf16.msrb.mxu2 %v8522_v39  ;;  %963 = vmatpush.bf16.msrb.mxu3 %v8522_v39 }
 0x1c4   :  { %899 = vmatpush.bf16.msrb.mxu2 %v8531_v17  ;;  %964 = vmatpush.bf16.msrb.mxu3 %v8531_v17 }
 0x1c8   :  { %900 = vmatpush.bf16.msrb.mxu2 %v8537_v11  ;;  %965 = vmatpush.bf16.msrb.mxu3 %v8537_v11 }
 0x1cb   :  { %901 = vmatmul.bf16.vlgmr.msrb.gmra.mxu2 %v7778_v25  ;;  %966 = vmatmul.bf16.vlgmr.msrb.gmra.mxu3 %v7780_v26 }
 0x1cc   :  { %8116 = vmatpush.bf16.msra.mxu3 %v8477_v2  ;;  %v549_v2 = vpop.permute.xlu1 %548 }
 0x1d0   :  { %8117 = vmatpush.bf16.msra.mxu3 %v8483_v14  ;;  %v493_v14 = vpop.permute.xlu0 %492 }
 0x1d4   :  { %8118 = vmatpush.bf16.msra.mxu3 %v8494_v27  ;;  %v619_v27 = vpop.permute.xlu2 %618  ;;  %v554_v21 = vpop.permute.xlu1 %553 }
 0x1d8   :  { %8119 = vmatpush.bf16.msra.mxu3 %v8503_v18  ;;  %v478_v18 = vpop.permute.xlu0 %477 }
 0x1db   :  { %906 = vmatmul.bf16.gmra.mxu2 %v7779_v28  ;;  %971 = vmatmul.bf16.gmra.mxu3 %v7781_v30 }
 0x1dc   :  { %8120 = vmatpush.bf16.msra.mxu3 %v8515_v36  ;;  %v539_v34 = vpop.permute.xlu2 %538  ;;  %v8637_v36 = vpop.permute.xlu1 %482 }
 0x1e0   :  { %8121 = vmatpush.bf16.msra.mxu3 %v8522_v39  ;;  %v8643_v40 = vpop.permute.xlu0 %543 }
 0x1e4   :  { %8122 = vmatpush.bf16.msra.mxu3 %v8531_v17  ;;  %v679_v39 = vpop.permute.xlu1 %678  ;;  %v8647_v46 = vpop.permute.xlu2 %683 }
 0x1e8   :  { %8123 = vmatpush.bf16.msra.mxu3 %v8537_v11  ;;  %v604_v43 = vpop.permute.xlu0 %603 }
 0x1eb   :  { %1036 = vmatmul.bf16.vlgmr.msra.gmra.mxu3 %v7783_v33 }
 0x1ec   :  { %v8645_v41 = vpop.permute.xlu1 %608  ;;  %v744_v54 = vpop.permute.xlu2 %743 }
 0x1ee   :  { %v516_v29 = vpop.f32.mrf.mxu2  ;;  %v577_v12 = vpop.f32.mrf.mxu3 }
 0x1ef   :  { %v517_v15 = vadd.f32 %v516_v29, %v478_v18  ;;  %v578_v35 = vadd.f32 %v577_v12, %v539_v34  ;;  %v7795_v12 = vld [vmem:[%s8261_s29 + $0x38] sm:$0xff] }
 0x1f0   :  { %v8649_v50 = vpop.permute.xlu0 %748  ;;  %1184 = vmatpush.bf16.msrb.mxu3 %v7795_v12 }
 0x1f1   :  { %v587_v23 = vmax.f32 %v517_v15, %v578_v35  ;;  %v7794_v35 = vld [vmem:[%s8261_s29 + $0x30] sm:$0xff] }
 0x1f4   :  { %v669_v47 = vpop.permute.xlu1 %668  ;;  %v674_v0 = vpop.permute.xlu2 %673  ;;  %1185 = vmatpush.bf16.msrb.mxu3 %v7794_v35 }
 0x1f6   :  { %v8639_v37 = vpop.f32.mrf.mxu2  ;;  %v8641_v38 = vpop.f32.mrf.mxu3 }
 0x1f8   :  { %v8651_v55 = vpop.permute.xlu0 %808 }
 0x1fc   :  { %v734_v19 = vpop.permute.xlu2 %733 }
 0x1fe   :  { %v521_v1 = vpop.f32.mrf.mxu2  ;;  %v582_v6 = vpop.f32.mrf.mxu3 }
 0x1ff   :  { %v522_v9 = vadd.f32 %v521_v1, %v488_v31  ;;  %v583_v3 = vadd.f32 %v582_v6, %v549_v2 }
 0x200   :  { %v739_v4 = vpop.permute.xlu0 %738 }
 0x201   :  { %v589_v17 = vmax.f32 %v522_v9, %v583_v3  ;;  %v7792_v3 = vld [vmem:[%s8261_s29 + $0x20] sm:$0xff] }
 0x204   :  { %v879_v18 = vpop.permute.xlu2 %878 }
 0x206   :  { %v523_v11 = vpop.f32.mrf.mxu2  ;;  %v584_v42 = vpop.f32.mrf.mxu3 }
 0x207   :  { %v524_v61 = vadd.f32 %v523_v11, %v493_v14  ;;  %v585_v62 = vadd.f32 %v584_v42, %v554_v21  ;;  %v814_v21 = vpop.permute.xlu1 %813  ;;  %v519_v42 = vadd.f32 %v8639_v37, %v8637_v36  ;;  %v1032_v37 = vpop.f32.mrf.mxu1 }
 0x208   :  { %v799_v25 = vpop.permute.xlu0 %798 }
 0x209   :  { %v590_v8 = vmax.f32 %v524_v61, %v585_v62 }
 0x20c   :  { %v939_v1 = vpop.permute.xlu2 %938 }
 0x20e   :  { %v642_v44 = vpop.f32.mrf.mxu2  ;;  %v707_v5 = vpop.f32.mrf.mxu3 }
 0x20f   :  { %v643_v45 = vadd.f32 %v642_v44, %v604_v43  ;;  %v708_v49 = vadd.f32 %v707_v5, %v669_v47  ;;  %v874_v15 = vpop.permute.xlu1 %873  ;;  %v580_v43 = vadd.f32 %v8641_v38, %v8643_v40 }
 0x210   :  { %v944_v11 = vpop.permute.xlu0 %943 }
 0x211   :  { %v652_v48 = vmax.f32 %v587_v23, %v643_v45 }
 0x213   :  { %v717_v51 = vmax.f32 %v652_v48, %v708_v49  ;;  %v588_v48 = vmax.f32 %v519_v42, %v580_v43  ;;  %v7790_v42 = vld [vmem:[%s8256_s25 + $0x10] sm:$0xff]  ;;  %v7796_v43 = vld [vmem:[%s8256_s25 + $0x20] sm:$0xff] }
 0x214   :  { %v869_v44 = vpop.permute.xlu2 %868 }
 0x216   :  { %v644_v52 = vpop.f32.mrf.mxu2  ;;  %v709_v53 = vpop.f32.mrf.mxu3 }
 0x217   :  { %v804_v9 = vpop.permute.xlu1 %803  ;;  %v645_v5 = vadd.f32 %v644_v52, %v8645_v41 }
 0x218   :  { %v1004_v61 = vpop.permute.xlu0 %1003 }
 0x21c   :  { %v929_v38 = vpop.permute.xlu2 %928 }
 0x21e   :  { %v647_v56 = vpop.f32.mrf.mxu2  ;;  %v712_v58 = vpop.f32.mrf.mxu3 }
 0x21f   :  { %v648_v57 = vadd.f32 %v647_v56, %v614_v32  ;;  %v8655_v60 = vadd.f32 %v712_v58, %v679_v39  ;;  %v7793_v39 = vld [vmem:[%s8261_s29 + $0x28] sm:$0xff]  ;;  %v864_v47 = vpop.permute.xlu1 %863  ;;  %v710_v56 = vadd.f32 %v709_v53, %v674_v0 }
 0x220   :  { %1186 = vmatpush.bf16.msrb.mxu3 %v7793_v39 }
 0x221   :  { %v8653_v59 = vmax.f32 %v589_v17, %v648_v57 }
 0x223   :  { %v719_v63 = vmax.f32 %v8653_v59, %v8655_v60 }
 0x224   :  { %1187 = vmatpush.bf16.msrb.mxu3 %v7792_v3 }
 0x226   :  { %v649_v7 = vpop.f32.mrf.mxu2  ;;  %v714_v13 = vpop.f32.mrf.mxu3 }
 0x227   :  { %v650_v10 = vadd.f32 %v649_v7, %v619_v27  ;;  %v715_v57 = vadd.f32 %v714_v13, %v8647_v46  ;;  %v1009_v52 = vpop.permute.xlu1 %1008 }
 0x229   :  { %v655_v16 = vmax.f32 %v590_v8, %v650_v10 }
 0x22b   :  { %v720_v62 = vmax.f32 %v655_v16, %v715_v57  ;;  %v7800_v57 = vld [vmem:[%s8261_s29 + $0x50] sm:$0xff] }
 0x22e   :  { %v772_v20 = vpop.f32.mrf.mxu2  ;;  %v837_v24 = vpop.f32.mrf.mxu3 }
 0x22f   :  { %v773_v22 = vadd.f32 %v772_v20, %v734_v19  ;;  %v8661_v28 = vadd.f32 %v837_v24, %v799_v25  ;;  %v994_v39 = vpop.permute.xlu1 %993 }
 0x231   :  { %v8659_v26 = vmax.f32 %v717_v51, %v773_v22  ;;  %v653_v51 = vmax.f32 %v588_v48, %v645_v5  ;;  %v7797_v5 = vld [vmem:[%s8256_s25 + $0x28] sm:$0xff]  ;;  %v7788_v48 = vld [vmem:[%s8261_s29 + $0x10] sm:$0xff] }
 0x233   :  { %v847_v30 = vmax.f32 %v8659_v26, %v8661_v28  ;;  %v718_v36 = vmax.f32 %v653_v51, %v710_v56  ;;  %v1033_v28 = vadd.f32 %v1032_v37, %v994_v39  ;;  %v7786_v51 = vld [vmem:[%s8261_s29] sm:$0xff]  ;;  %v7801_v56 = vld [vmem:[%s8261_s29 + $0x58] sm:$0xff] }
 0x236   :  { %v774_v31 = vpop.f32.mrf.mxu2  ;;  %v839_v32 = vpop.f32.mrf.mxu3 }
 0x237   :  { %v775_v58 = vadd.f32 %v774_v31, %v739_v4  ;;  %v840_v10 = vadd.f32 %v839_v32, %v804_v9  ;;  %v934_v31 = vpop.permute.xlu0 %933  ;;  %v1034_v32 = vpop.f32.mrf.mxu1 }
 0x239   :  { %v783_v7 = vmax.f32 %v718_v36, %v775_v58  ;;  %v7799_v58 = vld [vmem:[%s8261_s29 + $0x48] sm:$0xff] }
 0x23e   :  { %v777_v2 = vpop.f32.mrf.mxu2  ;;  %v842_v14 = vpop.f32.mrf.mxu3 }
 0x23f   :  { %v778_v59 = vadd.f32 %v777_v2, %v744_v54  ;;  %v843_v19 = vadd.f32 %v842_v14, %v8651_v55 }
 0x241   :  { %v784_v8 = vmax.f32 %v719_v63, %v778_v59  ;;  %v7798_v59 = vld [vmem:[%s8261_s29 + $0x40] sm:$0xff] }
 0x243   :  { %v849_v20 = vmax.f32 %v784_v8, %v843_v19 }
 0x246   :  { %v779_v27 = vpop.f32.mrf.mxu2  ;;  %v844_v33 = vpop.f32.mrf.mxu3 }
 0x247   :  { %v780_v60 = vadd.f32 %v779_v27, %v8649_v50  ;;  %v845_v0 = vadd.f32 %v844_v33, %v814_v21  ;;  %v848_v50 = vmax.f32 %v783_v7, %v840_v10  ;;  %v999_v21 = vpop.permute.xlu2 %998 }
 0x249   :  { %v785_v41 = vmax.f32 %v720_v62, %v780_v60 }
 0x24b   :  { %v850_v22 = vmax.f32 %v785_v41, %v845_v0 }
 0x24e   :  { %v902_v34 = vpop.f32.mrf.mxu2  ;;  %v967_v29 = vpop.f32.mrf.mxu3 }
 0x24f   :  { %v903_v13 = vadd.f32 %v902_v34, %v864_v47  ;;  %v968_v33 = vadd.f32 %v967_v29, %v929_v38  ;;  %v7808_v47 = vld [vmem:[%s8256_s25 + $0x40] sm:$0xff] }
 0x251   :  { %v912_v63 = vmax.f32 %v847_v30, %v903_v13 }
 0x253   :  { %v977_v9 = vmax.f32 %v912_v63, %v968_v33  ;;  %v7815_v63 = vld [vmem:[%s8256_s25 + $0x58] sm:$0xff] }
 0x256   :  { %v969_v23 = vpop.f32.mrf.mxu3  ;;  %v904_v6 = vpop.f32.mrf.mxu2 }
 0x257   :  { %v905_v46 = vadd.f32 %v904_v6, %v869_v44  ;;  %v970_v2 = vadd.f32 %v969_v23, %v934_v31  ;;  %v1035_v6 = vadd.f32 %v1034_v32, %v999_v21  ;;  %v8690_v23 = vmax.f32 %v977_v9, %v1033_v28  ;;  %v7789_v44 = vld [vmem:[%s8261_s29 + $0x18] sm:$0xff]  ;;  %v7833_v31 = vld [vmem:[%s8256_s25 + $0x88] sm:$0xff]  ;;  %v7826_v32 = vld [vmem:[%s8256_s25 + $0x70] sm:$0xff] }
 0x258   :  { %1233 = vmatpush.bf16.msra.mxu1 %v7789_v44  ;;  %v7811_v21 = vld [vmem:[%s8261_s29 + $0x88] sm:$0xff]  ;;  %v7804_v44 = vld [vmem:[%s8261_s29 + $0x60] sm:$0xff] }
 0x259   :  { %v913_v24 = vmax.f32 %v848_v50, %v905_v46  ;;  %v7820_v50 = vld [vmem:[%s8256_s25 + $0x60] sm:$0xff] }
 0x25b   :  { %v978_v34 = vmax.f32 %v913_v24, %v970_v2  ;;  %v7803_v24 = vld [vmem:[%s8256_s25 + $0x38] sm:$0xff] }
 0x25c   :  { %1234 = vmatpush.bf16.msra.mxu1 %v7788_v48  ;;  %v7813_v2 = vld [vmem:[%s8261_s29 + $0x98] sm:$0xff] }
 0x25d   :  { %v8684_v30 = vmax.f32 %v978_v34, %v1035_v6  ;;  %v7806_v6 = vld [vmem:[%s8261_s29 + $0x70] sm:$0xff] }
 0x25e   :  { %v972_v17 = vpop.f32.mrf.mxu3  ;;  %v907_v45 = vpop.f32.mrf.mxu2 }
 0x25f   :  { %v908_v4 = vadd.f32 %v907_v45, %v874_v15  ;;  %v973_v55 = vadd.f32 %v972_v17, %v939_v1  ;;  %v8697_v1 = vpack.c.bf16 %v8684_v30, %v8690_v23  ;;  %v7784_v17 = vld [vmem:[%s8256_s25] sm:$0xff]  ;;  %v7791_v45 = vld [vmem:[%s8256_s25 + $0x18] sm:$0xff] }
 0x261   :  { %v914_v16 = vmax.f32 %v849_v20, %v908_v4  ;;  %v7802_v20 = vld [vmem:[%s8256_s25 + $0x30] sm:$0xff] }
 0x263   :  { %v979_v12 = vmax.f32 %v914_v16, %v973_v55  ;;  %v7832_v16 = vld [vmem:[%s8256_s25 + $0x80] sm:$0xff]  ;;  %v7827_v55 = vld [vmem:[%s8256_s25 + $0x78] sm:$0xff] }
 0x266   :  { %v974_v49 = vpop.f32.mrf.mxu3  ;;  %v909_v40 = vpop.f32.mrf.mxu2 }
 0x267   :  { %v910_v54 = vadd.f32 %v909_v40, %v879_v18  ;;  %v975_v14 = vadd.f32 %v974_v49, %v944_v11  ;;  %v7785_v11 = vld [vmem:[%s8256_s25 + $0x8] sm:$0xff] }
 0x268   :  { %v7787_v49 = vld [vmem:[%s8261_s29 + $0x8] sm:$0xff] }
 0x269   :  { %v915_v25 = vmax.f32 %v850_v22, %v910_v54  ;;  %1235 = vmatpush.bf16.msra.mxu1 %v7787_v49  ;;  %v7821_v22 = vld [vmem:[%s8256_s25 + $0x68] sm:$0xff] }
 0x26b   :  { %v980_v15 = vmax.f32 %v915_v25, %v975_v14  ;;  %v7814_v25 = vld [vmem:[%s8256_s25 + $0x50] sm:$0xff] }
 0x26d   :  { %1236 = vmatpush.bf16.msra.mxu1 %v7786_v51  ;;  %v7823_v51 = vld [vmem:[%s8261_s29 + $0xc8] sm:$0xff] }
 0x26e   :  { %v1037_v53 = vpop.f32.mrf.mxu3 }
 0x26f   :  { %v1038_v27 = vadd.f32 %v1037_v53, %v1004_v61  ;;  %v7809_v53 = vld [vmem:[%s8256_s25 + $0x48] sm:$0xff]  ;;  %s9426_s25 = sld [smem:[#allocation10_spill]] }
 0x271   :  { %v8680_v3 = vmax.f32 %v979_v12, %v1038_v27  ;;  %v7812_v27 = vld [vmem:[%s8261_s29 + $0x90] sm:$0xff] }
 0x276   :  { %v1039_v18 = vpop.f32.mrf.mxu3 }
 0x277   :  { %v1040_v35 = vadd.f32 %v1039_v18, %v1009_v52  ;;  %v7810_v18 = vld [vmem:[%s8261_s29 + $0x80] sm:$0xff] }
 0x279   :  { %v8682_v26 = vmax.f32 %v980_v15, %v1040_v35  ;;  %v7807_v15 = vld [vmem:[%s8261_s29 + $0x78] sm:$0xff] }
 0x27a   :  { %1437 = vmatpush.bf16.msrb.mxu1 %v7807_v15 }
 0x27b   :  { %v8688_v29 = vpack.c.bf16 %v8682_v26, %v8680_v3 }
 0x27d   :  { %1075 = vmatpush.bf16.msrb.mxu0 %v8688_v29  ;;  %8124 = vmatpush.bf16.msra.mxu2 %v8688_v29 }
 0x27e   :  { %1379 = vmatpush.bf16.msra.mxu3 %v8688_v29  ;;  %1438 = vmatpush.bf16.msrb.mxu1 %v7806_v6 }
 0x281   :  { %1076 = vmatpush.bf16.msrb.mxu0 %v8697_v1  ;;  %8125 = vmatpush.bf16.msra.mxu2 %v8697_v1 }
 0x282   :  { %1380 = vmatpush.bf16.msra.mxu3 %v8697_v1 }
 0x284   :  { %5859 = vmatmul.msk.bf16.vlgmr.msrb.gmra.mxu0 %vm1062_vm2, %v7784_v17  ;;  %5860 = vmatmul.msk.bf16.vlgmr.msra.gmra.mxu2 %vm1062_vm2, %v7785_v11 }
 0x285   :  { %1125 = vmatpush.bf16.msrb.mxu2 %v8688_v29  ;;  %1275 = vmatpush.bf16.msra.mxu0 %v8688_v29 }
 0x289   :  { %1126 = vmatpush.bf16.msrb.mxu2 %v8697_v1  ;;  %1276 = vmatpush.bf16.msra.mxu0 %v8697_v1 }
 0x28d   :  { %1483 = vmatpush.bf16.msrb.mxu0 %v8688_v29  ;;  %1333 = vmatpush.bf16.msra.mxu2 %v7801_v56 }
 0x291   :  { %1484 = vmatpush.bf16.msrb.mxu0 %v8697_v1  ;;  %1334 = vmatpush.bf16.msra.mxu2 %v7800_v57 }
 0x294   :  { %5873 = vmatmul.msk.bf16.vlgmr.msrb.gmra.mxu2 %vm1062_vm2, %v7790_v42  ;;  %5931 = vmatmul.msk.bf16.vlgmr.msra.gmra.mxu0 %vm1062_vm2, %v7796_v43 }
 0x295   :  { %1691 = vmatpush.bf16.msra.mxu0 %v8688_v29  ;;  %1335 = vmatpush.bf16.msra.mxu2 %v7799_v58 }
 0x299   :  { %1692 = vmatpush.bf16.msra.mxu0 %v8697_v1  ;;  %1336 = vmatpush.bf16.msra.mxu2 %v7798_v59  ;;  %v7822_v59 = vld [vmem:[%s8261_s29 + $0xc0] sm:$0xff] }
 0x29d   :  { %1541 = vmatpush.bf16.msrb.mxu2 %v7813_v2  ;;  %v7829_v2 = vld [vmem:[%s8261_s29 + $0xe8] sm:$0xff] }
 0x2a1   :  { %1542 = vmatpush.bf16.msrb.mxu2 %v7812_v27  ;;  %v7828_v27 = vld [vmem:[%s8261_s29 + $0xe0] sm:$0xff] }
 0x2a4   :  { %5874 = vmatmul.msk.bf16.gmra.mxu2 %vm1062_vm2, %v7791_v45  ;;  %5932 = vmatmul.msk.bf16.gmra.mxu0 %vm1062_vm2, %v7797_v5  ;;  %v7825_v45 = vld [vmem:[%s8261_s29 + $0xd8] sm:$0xff] }
 0x2a5   :  { %1543 = vmatpush.bf16.msrb.mxu2 %v7811_v21 }
 0x2a9   :  { %1544 = vmatpush.bf16.msrb.mxu2 %v7810_v18 }
 0x2b4   :  { %6011 = vmatmul.msk.bf16.vlgmr.msrb.gmra.mxu0 %vm1062_vm2, %v7808_v47  ;;  %v7824_v47 = vld [vmem:[%s8261_s29 + $0xd0] sm:$0xff] }
 0x2b5   :  { %1899 = vmatpush.bf16.msrb.mxu0 %v8688_v29 }
 0x2b9   :  { %1900 = vmatpush.bf16.msrb.mxu0 %v8697_v1 }
 0x2c4   :  { %6012 = vmatmul.msk.bf16.gmra.mxu0 %vm1062_vm2, %v7809_v53 }
 0x2d4   :  { %6091 = vmatmul.msk.bf16.vlgmr.msra.gmra.mxu0 %vm1062_vm2, %v7820_v50  ;;  %v7834_v50 = vld [vmem:[%s8261_s29 + $0x100] sm:$0xff] }
 0x2e4   :  { %6092 = vmatmul.msk.bf16.gmra.mxu0 %vm1062_vm2, %v7821_v22 }
 0x2f4   :  { %6171 = vmatmul.msk.bf16.vlgmr.msrb.gmra.mxu0 %vm1062_vm2, %v7832_v16 }
 0x301   :  { %v1078_v60 = vpop.f32.mrf.mxu0 }
 0x304   :  { %6172 = vmatmul.msk.bf16.gmra.mxu0 %vm1062_vm2, %v7833_v31 }
 0x307   :  { %v1083_v61 = vpop.f32.mrf.mxu2 }
 0x309   :  { %v1080_v36 = vpop.f32.mrf.mxu0 }
 0x30a   :  { %v1088_v37 = vpack.c.bf16 %v1080_v36, %v1078_v60 }
 0x30c   :  { %5917 = vmatmul.msk.bf16.vlgmr.msra.gmra.mxu1 %vm1173_vm3, %v1088_v37 }
 0x30f   :  { %v1085_v62 = vpop.f32.mrf.mxu2 }
 0x310   :  { %v1089_v8 = vpack.c.bf16 %v1085_v62, %v1083_v61  ;;  %v7819_v62 = vld [vmem:[%s8261_s29 + $0xb8] sm:$0xff] }
 0x311   :  { %v1278_v38 = vpop.f32.mrf.mxu0 }
 0x317   :  { %v1128_v40 = vpop.f32.mrf.mxu2 }
 0x319   :  { %v1280_v7 = vpop.f32.mrf.mxu0 }
 0x31a   :  { %v1288_v41 = vpack.c.bf16 %v1280_v7, %v1278_v38 }
 0x31c   :  { %5918 = vmatmul.msk.bf16.gmra.mxu1 %vm1173_vm3, %v1089_v8  ;;  %5957 = vmatmul.msk.bf16.vlgmr.msra.gmra.mxu2 %vm1173_vm3, %v1288_v41  ;;  %v7817_v8 = vld [vmem:[%s8261_s29 + $0xa8] sm:$0xff] }
 0x31d   :  { %1749 = vmatpush.bf16.msra.mxu2 %v7825_v45 }
 0x31f   :  { %v1130_v52 = vpop.f32.mrf.mxu2 }
 0x320   :  { %v1138_v10 = vpack.c.bf16 %v1130_v52, %v1128_v40  ;;  %v7818_v40 = vld [vmem:[%s8261_s29 + $0xb0] sm:$0xff] }
 0x321   :  { %v1283_v19 = vpop.f32.mrf.mxu0  ;;  %1750 = vmatpush.bf16.msra.mxu2 %v7824_v47 }
 0x322   :  { %5899 = vmatmul.msk.bf16.vlgmr.msrb.gmra.mxu3 %vm1173_vm3, %v1138_v10  ;;  %v7816_v10 = vld [vmem:[%s8261_s29 + $0xa0] sm:$0xff] }
 0x323   :  { %1587 = vmatpush.bf16.msrb.mxu3 %v8688_v29 }
 0x325   :  { %1751 = vmatpush.bf16.msra.mxu2 %v7823_v51 }
 0x327   :  { %1588 = vmatpush.bf16.msrb.mxu3 %v8697_v1  ;;  %v1133_v0 = vpop.f32.mrf.mxu2 }
 0x329   :  { %v1285_v46 = vpop.f32.mrf.mxu0  ;;  %1752 = vmatpush.bf16.msra.mxu2 %v7822_v59 }
 0x32a   :  { %v1289_v4 = vpack.c.bf16 %v1285_v46, %v1283_v19  ;;  %v7837_v19 = vld [vmem:[%s8261_s29 + $0x118] sm:$0xff]  ;;  %v7836_v46 = vld [vmem:[%s8261_s29 + $0x110] sm:$0xff] }
 0x32c   :  { %5958 = vmatmul.msk.bf16.gmra.mxu2 %vm1173_vm3, %v1289_v4 }
 0x32f   :  { %v1135_v54 = vpop.f32.mrf.mxu2 }
 0x330   :  { %v1139_v13 = vpack.c.bf16 %v1135_v54, %v1133_v0  ;;  %v7835_v54 = vld [vmem:[%s8261_s29 + $0x108] sm:$0xff] }
 0x331   :  { %v1486_v14 = vpop.f32.mrf.mxu0 }
 0x332   :  { %5900 = vmatmul.msk.bf16.gmra.mxu3 %vm1173_vm3, %v1139_v13 }
 0x339   :  { %v1488_v33 = vpop.f32.mrf.mxu0 }
 0x33a   :  { %v1496_v34 = vpack.c.bf16 %v1488_v33, %v1486_v14 }
 0x33c   :  { %6037 = vmatmul.msk.bf16.vlgmr.msrb.gmra.mxu2 %vm1173_vm3, %v1496_v34 }
 0x33d   :  { %1957 = vmatpush.bf16.msrb.mxu2 %v7837_v19 }
 0x341   :  { %v1491_v39 = vpop.f32.mrf.mxu0  ;;  %1958 = vmatpush.bf16.msrb.mxu2 %v7836_v46 }
 0x342   :  { %5971 = vmatmul.msk.bf16.vlgmr.msra.gmra.mxu3 %vm1062_vm2, %v7802_v20 }
 0x343   :  { %1795 = vmatpush.bf16.msra.mxu3 %v8688_v29  ;;  %v7805_v29 = vld [vmem:[%s8261_s29 + $0x68] sm:$0xff] }
 0x344   :  { %1439 = vmatpush.bf16.msrb.mxu1 %v7805_v29 }
 0x345   :  { %1959 = vmatpush.bf16.msrb.mxu2 %v7835_v54 }
 0x347   :  { %1796 = vmatpush.bf16.msra.mxu3 %v8697_v1 }
 0x348   :  { %1440 = vmatpush.bf16.msrb.mxu1 %v7804_v44 }
 0x349   :  { %v1493_v11 = vpop.f32.mrf.mxu0  ;;  %1960 = vmatpush.bf16.msrb.mxu2 %v7834_v50 }
 0x34a   :  { %v1497_v43 = vpack.c.bf16 %v1493_v11, %v1491_v39 }
 0x34c   :  { %6038 = vmatmul.msk.bf16.gmra.mxu2 %vm1173_vm3, %v1497_v43  ;;  %1645 = vmatpush.bf16.msra.mxu1 %v7819_v62 }
 0x350   :  { %1646 = vmatpush.bf16.msra.mxu1 %v7818_v40 }
 0x351   :  { %v1694_v48 = vpop.f32.mrf.mxu0 }
 0x352   :  { %5972 = vmatmul.msk.bf16.gmra.mxu3 %vm1062_vm2, %v7803_v24 }
 0x354   :  { %1647 = vmatpush.bf16.msra.mxu1 %v7817_v8 }
 0x358   :  { %1648 = vmatpush.bf16.msra.mxu1 %v7816_v10  ;;  %v7848_v10 = vld [vmem:[%s8276_s14 + $0x30] sm:$0xff] }
 0x359   :  { %v1696_v61 = vpop.f32.mrf.mxu0 }
 0x35a   :  { %v1704_v36 = vpack.c.bf16 %v1696_v61, %v1694_v48 }
 0x35c   :  { %6117 = vmatmul.msk.bf16.vlgmr.msra.gmra.mxu2 %vm1173_vm3, %v1704_v36 }
 0x361   :  { %v1699_v38 = vpop.f32.mrf.mxu0 }
 0x362   :  { %6051 = vmatmul.msk.bf16.vlgmr.msrb.gmra.mxu3 %vm1062_vm2, %v7814_v25  ;;  %v7831_v25 = vld [vmem:[%s8261_s29 + $0xf8] sm:$0xff] }
 0x369   :  { %v1701_v41 = vpop.f32.mrf.mxu0 }
 0x36a   :  { %v1705_v52 = vpack.c.bf16 %v1701_v41, %v1699_v38 }
 0x36c   :  { %6118 = vmatmul.msk.bf16.gmra.mxu2 %vm1173_vm3, %v1705_v52  ;;  %v7849_v52 = vld [vmem:[%s8276_s14 + $0x38] sm:$0xff] }
 0x36d   :  { %2124 = vmatpush.bf16.msra.mxu0 %v7849_v52  ;;  %v7855_v52 = vld [vmem:[%s8276_s14 + $0x58] sm:$0xff] }
 0x371   :  { %v1902_v4 = vpop.f32.mrf.mxu0  ;;  %2125 = vmatpush.bf16.msra.mxu0 %v7848_v10 }
 0x372   :  { %6052 = vmatmul.msk.bf16.gmra.mxu3 %vm1062_vm2, %v7815_v63  ;;  %v7830_v63 = vld [vmem:[%s8261_s29 + $0xf0] sm:$0xff]  ;;  %s9427_s29 = sld [smem:[#allocation11_spill]] }
 0x379   :  { %v1904_v20 = vpop.f32.mrf.mxu0 }
 0x37a   :  { %v1912_v22 = vpack.c.bf16 %v1904_v20, %v1902_v4 }
 0x37c   :  { %6197 = vmatmul.msk.bf16.vlgmr.msrb.gmra.mxu2 %vm1173_vm3, %v1912_v22 }
 0x381   :  { %v1907_v31 = vpop.f32.mrf.mxu0 }
 0x382   :  { %6131 = vmatmul.msk.bf16.vlgmr.msra.gmra.mxu3 %vm1062_vm2, %v7826_v32 }
 0x389   :  { %v1238_v12 = vpop.f32.mrf.mxu1 }
 0x391   :  { %v8776_v17 = vpop.f32.mrf.mxu1 }
 0x392   :  { %6132 = vmatmul.msk.bf16.gmra.mxu3 %vm1062_vm2, %v7827_v55  ;;  %v1909_v55 = vpop.f32.mrf.mxu0 }
 0x393   :  { %v1913_v14 = vpack.c.bf16 %v1909_v55, %v1907_v31 }
 0x395   :  { %6198 = vmatmul.msk.bf16.gmra.mxu2 %vm1173_vm3, %v1913_v14 }
 0x399   :  { %v1243_v49 = vpop.f32.mrf.mxu1 }
 0x39f   :  { %v1338_v35 = vpop.f32.mrf.mxu2 }
 0x3a1   :  { %v1245_v44 = vpop.f32.mrf.mxu1 }
 0x3a5   :  { %v1189_v9 = vpop.f32.mrf.mxu3 }
 0x3a6   :  { %v1239_v28 = vadd.f32 %v1238_v12, %v1189_v9 }
 0x3a7   :  { %v8778_v42 = vpop.f32.mrf.mxu2 }
 0x3a8   :  { %v8774_v1 = vadd.f32 %v1338_v35, %v1239_v28 }
 0x3ad   :  { %v8782_v5 = vpop.f32.mrf.mxu3 }
 0x3ae   :  { %v1241_v46 = vadd.f32 %v8776_v17, %v8782_v5 }
 0x3af   :  { %v1343_v57 = vpop.f32.mrf.mxu2 }
 0x3b0   :  { %v1349_v54 = vadd.f32 %v8778_v42, %v1241_v46  ;;  %v7852_v46 = vld [vmem:[%s8276_s14 + $0x40] sm:$0xff] }
 0x3b5   :  { %v1194_v56 = vpop.f32.mrf.mxu3 }
 0x3b6   :  { %v1244_v58 = vadd.f32 %v1243_v49, %v1194_v56 }
 0x3b7   :  { %v1345_v29 = vpop.f32.mrf.mxu2 }
 0x3b8   :  { %v8788_v60 = vadd.f32 %v1343_v57, %v1244_v58 }
 0x3bd   :  { %v8790_v37 = vpop.f32.mrf.mxu3 }
 0x3bf   :  { %v1546_v11 = vpop.f32.mrf.mxu2 }
 0x3c5   :  { %v1382_v7 = vpop.f32.mrf.mxu3 }
 0x3c7   :  { %v1548_v43 = vpop.f32.mrf.mxu2 }
 0x3cd   :  { %v1384_v53 = vpop.f32.mrf.mxu3 }
 0x3ce   :  { %v1392_v0 = vpack.c.bf16 %v1384_v53, %v1382_v7  ;;  %v7847_v53 = vld [vmem:[%s8276_s14 + $0x28] sm:$0xff] }
 0x3cf   :  { %v1551_v47 = vpop.f32.mrf.mxu2  ;;  %2126 = vmatpush.bf16.msra.mxu0 %v7847_v53 }
 0x3d0   :  { %5997 = vmatmul.msk.bf16.vlgmr.msrb.gmra.mxu1 %vm1173_vm3, %v1392_v0  ;;  %v7846_v0 = vld [vmem:[%s8276_s14 + $0x20] sm:$0xff] }
 0x3d1   :  { %1853 = vmatpush.bf16.msrb.mxu1 %v7831_v25 }
 0x3d3   :  { %2127 = vmatpush.bf16.msra.mxu0 %v7846_v0  ;;  %v7863_v0 = vld [vmem:[%s8271_s8 + $0x48] sm:$0xff] }
 0x3d5   :  { %v1387_v13 = vpop.f32.mrf.mxu3  ;;  %1854 = vmatpush.bf16.msrb.mxu1 %v7830_v63 }
 0x3d7   :  { %v1553_v56 = vpop.f32.mrf.mxu2 }
 0x3d9   :  { %1855 = vmatpush.bf16.msrb.mxu1 %v7829_v2 }
 0x3dd   :  { %v1389_v24 = vpop.f32.mrf.mxu3  ;;  %1856 = vmatpush.bf16.msrb.mxu1 %v7828_v27 }
 0x3de   :  { %v1393_v16 = vpack.c.bf16 %v1389_v24, %v1387_v13  ;;  %v1246_v13 = vadd.f32 %v1245_v44, %v8790_v37 }
 0x3df   :  { %v1754_v61 = vpop.f32.mrf.mxu2 }
 0x3e0   :  { %5998 = vmatmul.msk.bf16.gmra.mxu1 %vm1173_vm3, %v1393_v16  ;;  %v1351_v22 = vadd.f32 %v1345_v29, %v1246_v13 }
 0x3e5   :  { %v1590_v32 = vpop.f32.mrf.mxu3 }
 0x3e7   :  { %v1756_v62 = vpop.f32.mrf.mxu2 }
 0x3ed   :  { %v1592_v21 = vpop.f32.mrf.mxu3 }
 0x3ee   :  { %v1600_v33 = vpack.c.bf16 %v1592_v21, %v1590_v32 }
 0x3ef   :  { %v1759_v40 = vpop.f32.mrf.mxu2 }
 0x3f0   :  { %6077 = vmatmul.msk.bf16.vlgmr.msra.gmra.mxu1 %vm1173_vm3, %v1600_v33 }
 0x3f5   :  { %v1595_v18 = vpop.f32.mrf.mxu3 }
 0x3f7   :  { %v1761_v41 = vpop.f32.mrf.mxu2 }
 0x3fd   :  { %v1597_v34 = vpop.f32.mrf.mxu3 }
 0x3fe   :  { %v1601_v12 = vpack.c.bf16 %v1597_v34, %v1595_v18 }
 0x3ff   :  { %v1962_v19 = vpop.f32.mrf.mxu2 }
 0x400   :  { %6078 = vmatmul.msk.bf16.gmra.mxu1 %vm1173_vm3, %v1601_v12  ;;  %v8161_v12 = vld [vmem:[%s8266_s3] ss:$0 sm:$0xff]  ;;  %s9428_s3 = sld [smem:[#allocation15_spill]] }
 0x405   :  { %v1798_v15 = vpop.f32.mrf.mxu3 }
 0x407   :  { %v1964_v4 = vpop.f32.mrf.mxu2 }
 0x40d   :  { %v1800_v35 = vpop.f32.mrf.mxu3 }
 0x40e   :  { %v1808_v39 = vpack.c.bf16 %v1800_v35, %v1798_v15 }
 0x410   :  { %6157 = vmatmul.msk.bf16.vlgmr.msrb.gmra.mxu1 %vm1173_vm3, %v1808_v39 }
 0x415   :  { %v1803_v6 = vpop.f32.mrf.mxu3 }
 0x418   :  { %v1967_v63 = vpop.f32.mrf.mxu2 }
 0x41d   :  { %v1805_v9 = vpop.f32.mrf.mxu3 }
 0x41e   :  { %v1809_v28 = vpack.c.bf16 %v1805_v9, %v1803_v6 }
 0x420   :  { %6158 = vmatmul.msk.bf16.gmra.mxu1 %vm1173_vm3, %v1809_v28  ;;  %v1969_v39 = vpop.f32.mrf.mxu2 }
 0x44d   :  { %v1442_v45 = vpop.f32.mrf.mxu1 }
 0x44e   :  { %v1452_v48 = vadd.f32 %v1442_v45, %v8774_v1 }
 0x450   :  { %v1556_v49 = vadd.f32 %v1546_v11, %v1452_v48 }
 0x455   :  { %v1444_v51 = vpop.f32.mrf.mxu1 }
 0x456   :  { %v1453_v20 = vadd.f32 %v1444_v51, %v1349_v54 }
 0x458   :  { %v1557_v16 = vadd.f32 %v1548_v43, %v1453_v20 }
 0x45d   :  { %v1447_v57 = vpop.f32.mrf.mxu1 }
 0x45e   :  { %v1454_v58 = vadd.f32 %v1447_v57, %v8788_v60  ;;  %v7844_v57 = vld [vmem:[%s8271_s8 + $0x10] sm:$0xff] }
 0x460   :  { %v1558_v59 = vadd.f32 %v1551_v47, %v1454_v58  ;;  %v7839_v58 = vld [vmem:[%s8271_s8 + $0x8] sm:$0xff] }
 0x465   :  { %v1449_v36 = vpop.f32.mrf.mxu1 }
 0x466   :  { %v1455_v24 = vadd.f32 %v1449_v36, %v1351_v22  ;;  %v7851_v36 = vld [vmem:[%s8271_s8 + $0x28] sm:$0xff] }
 0x468   :  { %v1559_v55 = vadd.f32 %v1553_v56, %v1455_v24  ;;  %v7838_v56 = vld [vmem:[%s8271_s8] sm:$0xff] }
 0x469   :  { %v7874_v24 = vld [vmem:[%s8271_s8 + $0x60] sm:$0xff] }
 0x46d   :  { %v1650_v38 = vpop.f32.mrf.mxu1 }
 0x46e   :  { %v1660_v2 = vadd.f32 %v1650_v38, %v1556_v49  ;;  %v7843_v38 = vld [vmem:[%s8276_s14 + $0x18] sm:$0xff] }
 0x46f   :  { %2173 = vmatpush.bf16.msra.mxu2 %v7843_v38 }
 0x470   :  { %v1764_v21 = vadd.f32 %v1754_v61, %v1660_v2  ;;  %v7850_v61 = vld [vmem:[%s8271_s8 + $0x20] sm:$0xff] }
 0x475   :  { %v1652_v7 = vpop.f32.mrf.mxu1 }
 0x476   :  { %v1661_v31 = vadd.f32 %v1652_v7, %v1557_v16  ;;  %v7841_v7 = vld [vmem:[%s8276_s14 + $0x8] sm:$0xff] }
 0x478   :  { %v1765_v5 = vadd.f32 %v1756_v62, %v1661_v31  ;;  %v7862_v62 = vld [vmem:[%s8271_s8 + $0x40] sm:$0xff] }
 0x47d   :  { %v1655_v8 = vpop.f32.mrf.mxu1 }
 0x47e   :  { %v1662_v25 = vadd.f32 %v1655_v8, %v1558_v59  ;;  %v7845_v59 = vld [vmem:[%s8271_s8 + $0x18] sm:$0xff]  ;;  %v7840_v8 = vld [vmem:[%s8276_s14] sm:$0xff] }
 0x480   :  { %v1766_v14 = vadd.f32 %v1759_v40, %v1662_v25  ;;  %v7842_v40 = vld [vmem:[%s8276_s14 + $0x10] sm:$0xff] }
 0x481   :  { %2174 = vmatpush.bf16.msra.mxu2 %v7842_v40  ;;  %v7873_v40 = vld [vmem:[%s8276_s14 + $0xb8] sm:$0xff] }
 0x485   :  { %v1657_v1 = vpop.f32.mrf.mxu1  ;;  %2175 = vmatpush.bf16.msra.mxu2 %v7841_v7  ;;  %v7877_v7 = vld [vmem:[%s8276_s14 + $0xc8] sm:$0xff] }
 0x486   :  { %v1663_v17 = vadd.f32 %v1657_v1, %v1559_v55  ;;  %v7854_v1 = vld [vmem:[%s8276_s14 + $0x50] sm:$0xff] }
 0x488   :  { %v1767_v18 = vadd.f32 %v1761_v41, %v1663_v17  ;;  %v7857_v17 = vld [vmem:[%s8271_s8 + $0x38] sm:$0xff] }
 0x489   :  { %2176 = vmatpush.bf16.msra.mxu2 %v7840_v8 }
 0x48d   :  { %v1858_v60 = vpop.f32.mrf.mxu1 }
 0x48e   :  { %v1868_v33 = vadd.f32 %v1858_v60, %v1764_v21 }
 0x490   :  { %v1972_v6 = vadd.f32 %v1962_v19, %v1868_v33  ;;  %v7853_v19 = vld [vmem:[%s8276_s14 + $0x48] sm:$0xff] }
 0x491   :  { %v7887_v33 = vld [vmem:[%s8271_s8 + $0x88] sm:$0xff] }
 0x492   :  { %v1980_v43 = vadd.f32 %v8161_v12, %v1972_v6  ;;  %v7865_v6 = vld [vmem:[%s8276_s14 + $0x88] sm:$0xff] }
 0x494   :  { %v1984_v49 = vmax.f32 %v1980_v43, 0.0 }
 0x495   :  { %v1860_v50 = vpop.f32.mrf.mxu1 }
 0x496   :  { %v1869_v42 = vadd.f32 %v1860_v50, %v1765_v5  ;;  %v7886_v5 = vld [vmem:[%s8271_s8 + $0x80] sm:$0xff] }
 0x498   :  { %v1973_v15 = vadd.f32 %v1964_v4, %v1869_v42  ;;  %v7868_v42 = vld [vmem:[%s8271_s8 + $0x50] sm:$0xff] }
 0x49a   :  { %v1981_v29 = vadd.f32 %v8161_v12, %v1973_v15  ;;  %v7866_v15 = vld [vmem:[%s8276_s14 + $0x90] sm:$0xff] }
 0x49c   :  { %v1985_v47 = vmax.f32 %v1981_v29, 0.0 }
 0x49d   :  { %v1863_v32 = vpop.f32.mrf.mxu1 }
 0x49e   :  { %v1870_v27 = vadd.f32 %v1863_v32, %v1766_v14  ;;  %v8830_v51 = vpack.c.bf16 %v1985_v47, %v1984_v49  ;;  %v7875_v32 = vld [vmem:[%s8271_s8 + $0x68] sm:$0xff] }
 0x4a0   :  { %v1974_v37 = vadd.f32 %v1967_v63, %v1870_v27  ;;  %v7856_v63 = vld [vmem:[%s8271_s8 + $0x30] sm:$0xff] }
 0x4a2   :  { %v1982_v9 = vadd.f32 %v8161_v12, %v1974_v37  ;;  %v7869_v37 = vld [vmem:[%s8271_s8 + $0x58] sm:$0xff] }
 0x4a4   :  { %v1986_v44 = vmax.f32 %v1982_v9, 0.0  ;;  %v7860_v9 = vld [vmem:[%s8276_s14 + $0x70] sm:$0xff] }
 0x4a5   :  { %v1865_v34 = vpop.f32.mrf.mxu1 }
 0x4a6   :  { %v1871_v35 = vadd.f32 %v1865_v34, %v1767_v18  ;;  %v7880_v18 = vld [vmem:[%s8271_s8 + $0x70] sm:$0xff]  ;;  %v7881_v34 = vld [vmem:[%s8271_s8 + $0x78] sm:$0xff]  ;;  %s9429_s8 = sld [smem:[#allocation13_spill]] }
 0x4a8   :  { %v1975_v28 = vadd.f32 %v1969_v39, %v1871_v35  ;;  %v7861_v39 = vld [vmem:[%s8276_s14 + $0x78] sm:$0xff] }
 0x4a9   :  { %2377 = vmatpush.bf16.msrb.mxu2 %v7861_v39 }
 0x4aa   :  { %v1983_v11 = vadd.f32 %v8161_v12, %v1975_v28  ;;  %v7867_v12 = vld [vmem:[%s8276_s14 + $0x98] sm:$0xff]  ;;  %v7864_v28 = vld [vmem:[%s8276_s14 + $0x80] sm:$0xff] }
 0x4ac   :  { %v1987_v45 = vmax.f32 %v1983_v11, 0.0 }
 0x4ad   :  { %2378 = vmatpush.bf16.msrb.mxu2 %v7860_v9 }
 0x4ae   :  { %v8825_v48 = vpack.c.bf16 %v1987_v45, %v1986_v44  ;;  %v7859_v44 = vld [vmem:[%s8276_s14 + $0x68] sm:$0xff]  ;;  %v7858_v45 = vld [vmem:[%s8276_s14 + $0x60] sm:$0xff] }
 0x4b0   :  { %2016 = vmatpush.bf16.msrb.mxu3 %v8825_v48  ;;  %2066 = vmatpush.bf16.msra.mxu1 %v8825_v48 }
 0x4b1   :  { %2319 = vmatpush.bf16.msrb.mxu0 %v8825_v48  ;;  %2379 = vmatpush.bf16.msrb.mxu2 %v7859_v44 }
 0x4b4   :  { %2017 = vmatpush.bf16.msrb.mxu3 %v8830_v51  ;;  %2067 = vmatpush.bf16.msra.mxu1 %v8830_v51 }
 0x4b5   :  { %2320 = vmatpush.bf16.msrb.mxu0 %v8830_v51  ;;  %2380 = vmatpush.bf16.msrb.mxu2 %v7858_v45 }
 0x4b7   :  { %6207 = vmatmul.msk.bf16.vlgmr.msrb.gmra.mxu3 %vm1062_vm2, %v7838_v56  ;;  %6221 = vmatmul.msk.bf16.vlgmr.msra.gmra.mxu1 %vm1062_vm2, %v7844_v57  ;;  %v7879_v57 = vld [vmem:[%s8276_s14 + $0xd8] sm:$0xff] }
 0x4b8   :  { %2215 = vmatpush.bf16.msra.mxu3 %v8825_v48  ;;  %2273 = vmatpush.bf16.msrb.mxu1 %v7855_v52  ;;  %v7872_v52 = vld [vmem:[%s8276_s14 + $0xb0] sm:$0xff] }
 0x4bc   :  { %2216 = vmatpush.bf16.msra.mxu3 %v8830_v51  ;;  %2274 = vmatpush.bf16.msrb.mxu1 %v7854_v1  ;;  %v7876_v1 = vld [vmem:[%s8276_s14 + $0xc0] sm:$0xff] }
 0x4c0   :  { %2423 = vmatpush.bf16.msrb.mxu3 %v8825_v48  ;;  %2275 = vmatpush.bf16.msrb.mxu1 %v7853_v19 }
 0x4c4   :  { %2424 = vmatpush.bf16.msrb.mxu3 %v8830_v51  ;;  %2276 = vmatpush.bf16.msrb.mxu1 %v7852_v46 }
 0x4c7   :  { %6208 = vmatmul.msk.bf16.gmra.mxu3 %vm1062_vm2, %v7839_v58  ;;  %6222 = vmatmul.msk.bf16.gmra.mxu1 %vm1062_vm2, %v7845_v59 }
 0x4c8   :  { %2481 = vmatpush.bf16.msra.mxu1 %v7867_v12 }
 0x4cc   :  { %2482 = vmatpush.bf16.msra.mxu1 %v7866_v15 }
 0x4d0   :  { %2483 = vmatpush.bf16.msra.mxu1 %v7865_v6 }
 0x4d4   :  { %2484 = vmatpush.bf16.msra.mxu1 %v7864_v28 }
 0x4d7   :  { %6279 = vmatmul.msk.bf16.vlgmr.msra.gmra.mxu3 %vm1062_vm2, %v7850_v61 }
 0x4d8   :  { %2631 = vmatpush.bf16.msra.mxu3 %v8825_v48 }
 0x4dc   :  { %2632 = vmatpush.bf16.msra.mxu3 %v8830_v51 }
 0x4e7   :  { %6280 = vmatmul.msk.bf16.gmra.mxu3 %vm1062_vm2, %v7851_v36  ;;  %v7878_v36 = vld [vmem:[%s8276_s14 + $0xd0] sm:$0xff] }
 0x4f7   :  { %6359 = vmatmul.msk.bf16.vlgmr.msrb.gmra.mxu3 %vm1062_vm2, %v7862_v62 }
 0x4f8   :  { %2839 = vmatpush.bf16.msrb.mxu3 %v8825_v48 }
 0x4fc   :  { %2840 = vmatpush.bf16.msrb.mxu3 %v8830_v51 }
 0x507   :  { %6360 = vmatmul.msk.bf16.gmra.mxu3 %vm1062_vm2, %v7863_v0 }
 0x517   :  { %6439 = vmatmul.msk.bf16.vlgmr.msra.gmra.mxu3 %vm1062_vm2, %v7874_v24  ;;  %v7891_v24 = vld [vmem:[%s8276_s14 + $0x118] sm:$0xff] }
 0x527   :  { %6440 = vmatmul.msk.bf16.gmra.mxu3 %vm1062_vm2, %v7875_v32  ;;  %v7890_v32 = vld [vmem:[%s8276_s14 + $0x110] sm:$0xff] }
 0x534   :  { %v2069_v41 = vpop.f32.mrf.mxu1 }
 0x537   :  { %6519 = vmatmul.msk.bf16.vlgmr.msrb.gmra.mxu3 %vm1062_vm2, %v7886_v5  ;;  %v7889_v5 = vld [vmem:[%s8276_s14 + $0x108] sm:$0xff] }
 0x53a   :  { %v2019_v10 = vpop.f32.mrf.mxu3 }
 0x53c   :  { %v2071_v53 = vpop.f32.mrf.mxu1 }
 0x53d   :  { %v2079_v60 = vpack.c.bf16 %v2071_v53, %v2069_v41  ;;  %v7871_v53 = vld [vmem:[%s8276_s14 + $0xa8] sm:$0xff] }
 0x53f   :  { %6247 = vmatmul.msk.bf16.vlgmr.msra.gmra.mxu0 %vm1173_vm3, %v2079_v60 }
 0x540   :  { %2527 = vmatpush.bf16.msra.mxu0 %v8825_v48 }
 0x542   :  { %v2021_v4 = vpop.f32.mrf.mxu3 }
 0x543   :  { %v2029_v54 = vpack.c.bf16 %v2021_v4, %v2019_v10  ;;  %v7870_v4 = vld [vmem:[%s8276_s14 + $0xa0] sm:$0xff] }
 0x544   :  { %2528 = vmatpush.bf16.msra.mxu0 %v8830_v51  ;;  %v2074_v13 = vpop.f32.mrf.mxu1 }
 0x545   :  { %6265 = vmatmul.msk.bf16.vlgmr.msra.gmra.mxu2 %vm1173_vm3, %v2029_v54 }
 0x546   :  { %2585 = vmatpush.bf16.msra.mxu2 %v7873_v40 }
 0x547   :  { %6520 = vmatmul.msk.bf16.gmra.mxu3 %vm1062_vm2, %v7887_v33 }
 0x54a   :  { %v2024_v50 = vpop.f32.mrf.mxu3  ;;  %2586 = vmatpush.bf16.msra.mxu2 %v7872_v52 }
 0x54c   :  { %v2076_v20 = vpop.f32.mrf.mxu1 }
 0x54d   :  { %v2080_v22 = vpack.c.bf16 %v2076_v20, %v2074_v13 }
 0x54e   :  { %2587 = vmatpush.bf16.msra.mxu2 %v7871_v53 }
 0x54f   :  { %6248 = vmatmul.msk.bf16.gmra.mxu0 %vm1173_vm3, %v2080_v22 }
 0x552   :  { %v2026_v16 = vpop.f32.mrf.mxu3  ;;  %2588 = vmatpush.bf16.msra.mxu2 %v7870_v4 }
 0x553   :  { %v2030_v25 = vpack.c.bf16 %v2026_v16, %v2024_v50 }
 0x555   :  { %6266 = vmatmul.msk.bf16.gmra.mxu2 %vm1173_vm3, %v2030_v25 }
 0x55a   :  { %v2218_v31 = vpop.f32.mrf.mxu3 }
 0x55f   :  { %6319 = vmatmul.msk.bf16.vlgmr.msrb.gmra.mxu0 %vm1062_vm2, %v7856_v63 }
 0x560   :  { %2735 = vmatpush.bf16.msrb.mxu0 %v8825_v48 }
 0x562   :  { %v2220_v2 = vpop.f32.mrf.mxu3 }
 0x563   :  { %v2228_v55 = vpack.c.bf16 %v2220_v2, %v2218_v31 }
 0x564   :  { %2736 = vmatpush.bf16.msrb.mxu0 %v8830_v51 }
 0x565   :  { %6305 = vmatmul.msk.bf16.vlgmr.msrb.gmra.mxu1 %vm1173_vm3, %v2228_v55 }
 0x566   :  { %2689 = vmatpush.bf16.msrb.mxu1 %v7879_v57 }
 0x56a   :  { %v2223_v14 = vpop.f32.mrf.mxu3  ;;  %2690 = vmatpush.bf16.msrb.mxu1 %v7878_v36 }
 0x56e   :  { %2691 = vmatpush.bf16.msrb.mxu1 %v7877_v7 }
 0x56f   :  { %6320 = vmatmul.msk.bf16.gmra.mxu0 %vm1062_vm2, %v7857_v17  ;;  %v7885_v17 = vld [vmem:[%s8276_s14 + $0xf8] sm:$0xff] }
 0x572   :  { %v2225_v27 = vpop.f32.mrf.mxu3  ;;  %2692 = vmatpush.bf16.msrb.mxu1 %v7876_v1 }
 0x573   :  { %v2229_v21 = vpack.c.bf16 %v2225_v27, %v2223_v14  ;;  %v7884_v27 = vld [vmem:[%s8276_s14 + $0xf0] sm:$0xff] }
 0x575   :  { %6306 = vmatmul.msk.bf16.gmra.mxu1 %vm1173_vm3, %v2229_v21  ;;  %v7888_v21 = vld [vmem:[%s8276_s14 + $0x100] sm:$0xff] }
 0x57a   :  { %v2426_v35 = vpop.f32.mrf.mxu3 }
 0x57f   :  { %6399 = vmatmul.msk.bf16.vlgmr.msra.gmra.mxu0 %vm1062_vm2, %v7868_v42 }
 0x582   :  { %v2428_v11 = vpop.f32.mrf.mxu3 }
 0x583   :  { %v2436_v43 = vpack.c.bf16 %v2428_v11, %v2426_v35 }
 0x585   :  { %6385 = vmatmul.msk.bf16.vlgmr.msra.gmra.mxu1 %vm1173_vm3, %v2436_v43 }
 0x586   :  { %2897 = vmatpush.bf16.msra.mxu1 %v7891_v24 }
 0x58a   :  { %v2431_v48 = vpop.f32.mrf.mxu3  ;;  %2898 = vmatpush.bf16.msra.mxu1 %v7890_v32 }
 0x58e   :  { %2899 = vmatpush.bf16.msra.mxu1 %v7889_v5 }
 0x58f   :  { %6400 = vmatmul.msk.bf16.gmra.mxu0 %vm1062_vm2, %v7869_v37  ;;  %v7883_v37 = vld [vmem:[%s8276_s14 + $0xe8] sm:$0xff] }
 0x592   :  { %v2433_v58 = vpop.f32.mrf.mxu3  ;;  %2900 = vmatpush.bf16.msra.mxu1 %v7888_v21 }
 0x593   :  { %v2437_v59 = vpack.c.bf16 %v2433_v58, %v2431_v48 }
 0x595   :  { %6386 = vmatmul.msk.bf16.gmra.mxu1 %vm1173_vm3, %v2437_v59 }
 0x59a   :  { %v2634_v38 = vpop.f32.mrf.mxu3 }
 0x59f   :  { %6479 = vmatmul.msk.bf16.vlgmr.msrb.gmra.mxu0 %vm1062_vm2, %v7880_v18 }
 0x5a2   :  { %v2636_v19 = vpop.f32.mrf.mxu3 }
 0x5a3   :  { %v2644_v60 = vpack.c.bf16 %v2636_v19, %v2634_v38 }
 0x5a5   :  { %6465 = vmatmul.msk.bf16.vlgmr.msrb.gmra.mxu1 %vm1173_vm3, %v2644_v60 }
 0x5aa   :  { %v2639_v50 = vpop.f32.mrf.mxu3 }
 0x5af   :  { %6480 = vmatmul.msk.bf16.gmra.mxu0 %vm1062_vm2, %v7881_v34  ;;  %v7882_v34 = vld [vmem:[%s8276_s14 + $0xe0] sm:$0xff]  ;;  %s9430_s14 = sld [smem:[#allocation14_spill]] }
 0x5b2   :  { %v2641_v16 = vpop.f32.mrf.mxu3 }
 0x5b3   :  { %v2645_v25 = vpack.c.bf16 %v2641_v16, %v2639_v50 }
 0x5b5   :  { %6466 = vmatmul.msk.bf16.gmra.mxu1 %vm1173_vm3, %v2645_v25 }
 0x5ba   :  { %v2842_v14 = vpop.f32.mrf.mxu3 }
 0x5bc   :  { %v2129_v29 = vpop.f32.mrf.mxu0 }
 0x5c2   :  { %v2844_v33 = vpop.f32.mrf.mxu3 }
 0x5c3   :  { %v2852_v18 = vpack.c.bf16 %v2844_v33, %v2842_v14 }
 0x5c4   :  { %v8906_v47 = vpop.f32.mrf.mxu0 }
 0x5c5   :  { %6545 = vmatmul.msk.bf16.vlgmr.msra.gmra.mxu1 %vm1173_vm3, %v2852_v18 }
 0x5c8   :  { %v2178_v49 = vpop.f32.mrf.mxu2 }
 0x5c9   :  { %v2179_v51 = vadd.f32 %v2178_v49, %v2129_v29 }
 0x5ca   :  { %v2847_v35 = vpop.f32.mrf.mxu3 }
 0x5cc   :  { %v2134_v56 = vpop.f32.mrf.mxu0 }
 0x5d0   :  { %v8909_v61 = vpop.f32.mrf.mxu2 }
 0x5d2   :  { %v2849_v6 = vpop.f32.mrf.mxu3 }
 0x5d3   :  { %v2853_v9 = vpack.c.bf16 %v2849_v6, %v2847_v35  ;;  %v8162_v35 = vld [vmem:[%s8281_s19] ss:$0 sm:$0xff]  ;;  %s9431_s19 = sld [smem:[#allocation16_spill]] }
 0x5d4   :  { %v8913_v62 = vpop.f32.mrf.mxu0 }
 0x5d5   :  { %6546 = vmatmul.msk.bf16.gmra.mxu1 %vm1173_vm3, %v2853_v9 }
 0x5d8   :  { %v2183_v8 = vpop.f32.mrf.mxu2 }
 0x5d9   :  { %v2184_v41 = vadd.f32 %v2183_v8, %v2134_v56 }
 0x5dc   :  { %v2322_v10 = vpop.f32.mrf.mxu0 }
 0x5e0   :  { %v2185_v58 = vpop.f32.mrf.mxu2 }
 0x5e1   :  { %v2186_v32 = vadd.f32 %v2185_v58, %v8913_v62 }
 0x5e2   :  { %v2278_v0 = vpop.f32.mrf.mxu1 }
 0x5e3   :  { %v8921_v46 = vadd.f32 %v2278_v0, %v2179_v51 }
 0x5e4   :  { %v2324_v54 = vpop.f32.mrf.mxu0 }
 0x5e5   :  { %v2332_v13 = vpack.c.bf16 %v2324_v54, %v2322_v10 }
 0x5e7   :  { %6345 = vmatmul.msk.bf16.vlgmr.msrb.gmra.mxu2 %vm1173_vm3, %v2332_v13 }
 0x5e8   :  { %2793 = vmatpush.bf16.msrb.mxu2 %v7885_v17 }
 0x5ea   :  { %v8925_v20 = vpop.f32.mrf.mxu1 }
 0x5ec   :  { %v2327_v22 = vpop.f32.mrf.mxu0  ;;  %2794 = vmatpush.bf16.msrb.mxu2 %v7884_v27 }
 0x5f0   :  { %2795 = vmatpush.bf16.msrb.mxu2 %v7883_v37 }
 0x5f2   :  { %v2283_v31 = vpop.f32.mrf.mxu1 }
 0x5f3   :  { %v2290_v63 = vadd.f32 %v2283_v31, %v2184_v41 }
 0x5f4   :  { %v2329_v2 = vpop.f32.mrf.mxu0  ;;  %2796 = vmatpush.bf16.msrb.mxu2 %v7882_v34 }
 0x5f5   :  { %v2333_v55 = vpack.c.bf16 %v2329_v2, %v2327_v22 }
 0x5f7   :  { %6346 = vmatmul.msk.bf16.gmra.mxu2 %vm1173_vm3, %v2333_v55 }
 0x5fa   :  { %v2285_v51 = vpop.f32.mrf.mxu1 }
 0x5fb   :  { %v2291_v2 = vadd.f32 %v2285_v51, %v2186_v32  ;;  %v7904_v32 = vld [vmem:[%s8291_s30 + $0x60] sm:$0xff] }
 0x5fc   :  { %v2530_v42 = vpop.f32.mrf.mxu0 }
 0x602   :  { %v2486_v56 = vpop.f32.mrf.mxu1 }
 0x604   :  { %v2532_v12 = vpop.f32.mrf.mxu0 }
 0x605   :  { %v2540_v15 = vpack.c.bf16 %v2532_v12, %v2530_v42 }
 0x607   :  { %6425 = vmatmul.msk.bf16.vlgmr.msra.gmra.mxu2 %vm1173_vm3, %v2540_v15 }
 0x60a   :  { %v2488_v57 = vpop.f32.mrf.mxu1 }
 0x60c   :  { %v2535_v39 = vpop.f32.mrf.mxu0 }
 0x612   :  { %v2491_v36 = vpop.f32.mrf.mxu1 }
 0x614   :  { %v2537_v28 = vpop.f32.mrf.mxu0 }
 0x615   :  { %v2541_v29 = vpack.c.bf16 %v2537_v28, %v2535_v39 }
 0x617   :  { %6426 = vmatmul.msk.bf16.gmra.mxu2 %vm1173_vm3, %v2541_v29 }
 0x61a   :  { %v2493_v8 = vpop.f32.mrf.mxu1 }
 0x61c   :  { %v2738_v11 = vpop.f32.mrf.mxu0 }
 0x622   :  { %v2694_v10 = vpop.f32.mrf.mxu1 }
 0x624   :  { %v2740_v43 = vpop.f32.mrf.mxu0 }
 0x625   :  { %v2748_v44 = vpack.c.bf16 %v2740_v43, %v2738_v11 }
 0x627   :  { %6505 = vmatmul.msk.bf16.vlgmr.msrb.gmra.mxu2 %vm1173_vm3, %v2748_v44 }
 0x62a   :  { %v2696_v53 = vpop.f32.mrf.mxu1 }
 0x62c   :  { %v2743_v45 = vpop.f32.mrf.mxu0 }
 0x632   :  { %v2699_v0 = vpop.f32.mrf.mxu1 }
 0x634   :  { %v2745_v48 = vpop.f32.mrf.mxu0 }
 0x635   :  { %v2749_v49 = vpack.c.bf16 %v2745_v48, %v2743_v45 }
 0x637   :  { %6506 = vmatmul.msk.bf16.gmra.mxu2 %vm1173_vm3, %v2749_v49 }
 0x63a   :  { %v2701_v13 = vpop.f32.mrf.mxu1 }
 0x642   :  { %v2902_v22 = vpop.f32.mrf.mxu1 }
 0x64a   :  { %v2904_v25 = vpop.f32.mrf.mxu1 }
 0x652   :  { %v2907_v42 = vpop.f32.mrf.mxu1 }
 0x65a   :  { %v2909_v11 = vpop.f32.mrf.mxu1 }
 0x66a   :  { %v2382_v59 = vpop.f32.mrf.mxu2 }
 0x66b   :  { %v2392_v38 = vadd.f32 %v2382_v59, %v8921_v46  ;;  %v2181_v46 = vadd.f32 %v8909_v61, %v8906_v47 }
 0x66d   :  { %v2496_v40 = vadd.f32 %v2486_v56, %v2392_v38  ;;  %v2289_v16 = vadd.f32 %v8925_v20, %v2181_v46  ;;  %v7907_v46 = vld [vmem:[%s8291_s30 + $0x78] sm:$0xff] }
 0x672   :  { %v2384_v7 = vpop.f32.mrf.mxu2 }
 0x673   :  { %v2393_v31 = vadd.f32 %v2384_v7, %v2289_v16  ;;  %v6592_v7 = vld [vmem:[%s8286_s24 + $0x8] sm:$0xf] }
 0x674   :  { %v7901_v16 = vld [vmem:[%s8291_s30 + $0x48] sm:$0xff] }
 0x675   :  { %v2497_v55 = vadd.f32 %v2488_v57, %v2393_v31  ;;  %v7906_v31 = vld [vmem:[%s8291_s30 + $0x70] sm:$0xff] }
 0x67a   :  { %v2387_v41 = vpop.f32.mrf.mxu2 }
 0x67b   :  { %v2394_v52 = vadd.f32 %v2387_v41, %v2290_v63  ;;  %v6646_v41 = vld [vmem:[%s8286_s24 + $0x10] sm:$0xf] }
 0x67d   :  { %v2498_v1 = vadd.f32 %v2491_v36, %v2394_v52  ;;  %v6727_v52 = vld [vmem:[%s8286_s24 + $0x1c] sm:$0xf] }
 0x682   :  { %v2389_v19 = vpop.f32.mrf.mxu2 }
 0x683   :  { %v2395_v17 = vadd.f32 %v2389_v19, %v2291_v2  ;;  %v7898_v19 = vld [vmem:[%s8291_s30 + $0x30] sm:$0xff] }
 0x685   :  { %v2499_v37 = vadd.f32 %v2493_v8, %v2395_v17  ;;  %v6673_v8 = vld [vmem:[%s8286_s24 + $0x14] sm:$0xf] }
 0x68a   :  { %v2590_v60 = vpop.f32.mrf.mxu2 }
 0x68b   :  { %v2600_v27 = vadd.f32 %v2590_v60, %v2496_v40  ;;  %v6700_v60 = vld [vmem:[%s8286_s24 + $0x18] sm:$0xf] }
 0x68d   :  { %v2704_v20 = vadd.f32 %v2694_v10, %v2600_v27  ;;  %v7895_v10 = vld [vmem:[%s8291_s30 + $0x18] sm:$0xff] }
 0x692   :  { %v2592_v4 = vpop.f32.mrf.mxu2 }
 0x693   :  { %v2601_v5 = vadd.f32 %v2592_v4, %v2497_v55  ;;  %v7894_v4 = vld [vmem:[%s8291_s30 + $0x10] sm:$0xff]  ;;  %v7915_v55 = vld [vmem:[%s8291_s30 + $0xb8] sm:$0xff] }
 0x695   :  { %v2705_v18 = vadd.f32 %v2696_v53, %v2601_v5  ;;  %v7897_v53 = vld [vmem:[%s8291_s30 + $0x28] sm:$0xff]  ;;  %v7914_v5 = vld [vmem:[%s8291_s30 + $0xb0] sm:$0xff] }
 0x69a   :  { %v2595_v54 = vpop.f32.mrf.mxu2 }
 0x69b   :  { %v2602_v14 = vadd.f32 %v2595_v54, %v2498_v1  ;;  %v7899_v1 = vld [vmem:[%s8291_s30 + $0x38] sm:$0xff]  ;;  %v7896_v54 = vld [vmem:[%s8291_s30 + $0x20] sm:$0xff] }
 0x69c   :  { %3019 = vmatpush.bf16.msra.mxu3 %v7899_v1 }
 0x69d   :  { %v2706_v21 = vadd.f32 %v2699_v0, %v2602_v14  ;;  %v6754_v0 = vld [vmem:[%s8286_s24 + $0x20] sm:$0xf] }
 0x6a0   :  { %3020 = vmatpush.bf16.msra.mxu3 %v7898_v19 }
 0x6a2   :  { %v2597_v50 = vpop.f32.mrf.mxu2 }
 0x6a3   :  { %v2603_v61 = vadd.f32 %v2597_v50, %v2499_v37  ;;  %v7903_v50 = vld [vmem:[%s8291_s30 + $0x58] sm:$0xff] }
 0x6a4   :  { %3021 = vmatpush.bf16.msra.mxu3 %v7897_v53 }
 0x6a5   :  { %v2707_v39 = vadd.f32 %v2701_v13, %v2603_v61  ;;  %v7893_v13 = vld [vmem:[%s8291_s30 + $0x8] sm:$0xff]  ;;  %v7912_v61 = vld [vmem:[%s8291_s30 + $0xa0] sm:$0xff] }
 0x6a8   :  { %3022 = vmatpush.bf16.msra.mxu3 %v7896_v54 }
 0x6aa   :  { %v2798_v24 = vpop.f32.mrf.mxu2 }
 0x6ab   :  { %v2808_v12 = vadd.f32 %v2798_v24, %v2704_v20  ;;  %v7902_v24 = vld [vmem:[%s8291_s30 + $0x50] sm:$0xff] }
 0x6ac   :  { %3127 = vmatpush.bf16.msrb.mxu3 %v7903_v50 }
 0x6ad   :  { %v2912_v9 = vadd.f32 %v2902_v22, %v2808_v12  ;;  %v7892_v22 = vld [vmem:[%s8291_s30] sm:$0xff] }
 0x6af   :  { %v2920_v45 = vadd.f32 %v8162_v35, %v2912_v9  ;;  %v7919_v9 = vld [vmem:[%s8291_s30 + $0xd8] sm:$0xff] }
 0x6b0   :  { %3128 = vmatpush.bf16.msrb.mxu3 %v7902_v24  ;;  %v7934_v24 = vld [vmem:[%s8306_s20 + $0x30] sm:$0xff] }
 0x6b1   :  { %v2924_v57 = vadd.f32 %v2920_v45, %v8690_v23  ;;  %v6619_v23 = vld [vmem:[%s8286_s24 + $0xc] sm:$0xf] }
 0x6b2   :  { %v2800_v63 = vpop.f32.mrf.mxu2 }
 0x6b3   :  { %v2809_v34 = vadd.f32 %v2800_v63, %v2705_v18  ;;  %v2928_v40 = vmax.f32 %v2924_v57, 0.0  ;;  %v7905_v63 = vld [vmem:[%s8291_s30 + $0x68] sm:$0xff] }
 0x6b4   :  { %3129 = vmatpush.bf16.msrb.mxu3 %v7901_v16  ;;  %v7913_v18 = vld [vmem:[%s8291_s30 + $0xa8] sm:$0xff] }
 0x6b5   :  { %v2913_v62 = vadd.f32 %v2904_v25, %v2809_v34  ;;  %v7900_v25 = vld [vmem:[%s8291_s30 + $0x40] sm:$0xff]  ;;  %v7909_v34 = vld [vmem:[%s8291_s30 + $0x88] sm:$0xff] }
 0x6b7   :  { %v2921_v43 = vadd.f32 %v8162_v35, %v2913_v62  ;;  %v7908_v62 = vld [vmem:[%s8291_s30 + $0x80] sm:$0xff] }
 0x6b8   :  { %3130 = vmatpush.bf16.msrb.mxu3 %v7900_v25 }
 0x6b9   :  { %v2925_v51 = vadd.f32 %v2921_v43, %v8684_v30  ;;  %v2934_v30 = vld [vmem:[%s8286_s24] sm:$0xf]  ;;  %v7918_v43 = vld [vmem:[%s8291_s30 + $0xd0] sm:$0xff] }
 0x6ba   :  { %v2803_v33 = vpop.f32.mrf.mxu2 }
 0x6bb   :  { %v2810_v47 = vadd.f32 %v2803_v33, %v2706_v21  ;;  %v2929_v36 = vmax.f32 %v2925_v51, 0.0  ;;  %v7911_v21 = vld [vmem:[%s8291_s30 + $0x98] sm:$0xff] }
 0x6bd   :  { %v2914_v15 = vadd.f32 %v2907_v42, %v2810_v47  ;;  %v7910_v47 = vld [vmem:[%s8291_s30 + $0x90] sm:$0xff] }
 0x6bf   :  { %v2922_v28 = vadd.f32 %v8162_v35, %v2914_v15  ;;  %v7923_v15 = vld [vmem:[%s8291_s30 + $0xf8] sm:$0xff] }
 0x6c1   :  { %v2926_v48 = vadd.f32 %v2922_v28, %v8680_v3  ;;  %v8958_v3 = vpack.c.bf16 %v2929_v36, %v2928_v40  ;;  %v7926_v40 = vld [vmem:[%s8291_s30 + $0x110] sm:$0xff] }
 0x6c2   :  { %v2805_v6 = vpop.f32.mrf.mxu2 }
 0x6c3   :  { %v2811_v29 = vadd.f32 %v2805_v6, %v2707_v39  ;;  %v2930_v58 = vmax.f32 %v2926_v48, 0.0  ;;  %v7922_v39 = vld [vmem:[%s8291_s30 + $0xf0] sm:$0xff]  ;;  %v7917_v48 = vld [vmem:[%s8291_s30 + $0xc8] sm:$0xff] }
 0x6c5   :  { %v2915_v44 = vadd.f32 %v2909_v11, %v2811_v29  ;;  %v7921_v11 = vld [vmem:[%s8291_s30 + $0xe8] sm:$0xff] }
 0x6c7   :  { %v2923_v49 = vadd.f32 %v8162_v35, %v2915_v44  ;;  %v7920_v44 = vld [vmem:[%s8291_s30 + $0xe0] sm:$0xff] }
 0x6c9   :  { %v2927_v56 = vadd.f32 %v2923_v49, %v8682_v26  ;;  %v6548_v26 = vld [vmem:[%s8286_s24 + $0x4] sm:$0xf]  ;;  %s8222_s24 = smov [#allocation2]  }
 0x6cb   :  { %v2931_v59 = vmax.f32 %v2927_v56, 0.0  ;;  %v7916_v56 = vld [vmem:[%s8291_s30 + $0xc0] sm:$0xff] }
 0x6cd   :  { %v8953_v38 = vpack.c.bf16 %v2931_v59, %v2930_v58  ;;  %v7927_v58 = vld [vmem:[%s8291_s30 + $0x118] sm:$0xff] }
 0x6cf   :  { %2944 = vmatpush.bf16.msra.mxu0 %v8953_v38  ;;  %2971 = vmatpush.bf16.msra.mxu2 %v8953_v38 }
 0x6d0   :  { %3148 = vmatpush.bf16.msrb.mxu1 %v8953_v38 }
 0x6d3   :  { %2945 = vmatpush.bf16.msra.mxu0 %v8958_v3  ;;  %2972 = vmatpush.bf16.msra.mxu2 %v8958_v3 }
 0x6d4   :  { %3149 = vmatpush.bf16.msrb.mxu1 %v8958_v3 }
 0x6d6   :  { %6549 = vmatmul.msk.bf16.vlgmr.msra.gmra.mxu2 %vm1062_vm2, %v6548_v26  ;;  %6547 = vmatmul.msk.bf16.vlgmr.msra.gmra.mxu0 %vm1062_vm2, %v2934_v30  ;;  %v7925_v30 = vld [vmem:[%s8291_s30 + $0x108] sm:$0xff] }
 0x6d7   :  { %3079 = vmatpush.bf16.msrb.mxu2 %v8953_v38  ;;  %6620 = vmatmul.msk.bf16.vlgmr.msrb.gmra.mxu1 %vm1062_vm2, %v6619_v23 }
 0x6d8   :  { %3286 = vmatpush.bf16.msra.mxu1 %v8953_v38  ;;  %3059 = vmatpush.bf16.msrb.mxu0 %v7895_v10 }
 0x6db   :  { %3080 = vmatpush.bf16.msrb.mxu2 %v8958_v3 }
 0x6dc   :  { %3287 = vmatpush.bf16.msra.mxu1 %v8958_v3  ;;  %3060 = vmatpush.bf16.msrb.mxu0 %v7894_v4 }
 0x6df   :  { %3217 = vmatpush.bf16.msra.mxu2 %v8953_v38 }
 0x6e0   :  { %3424 = vmatpush.bf16.msrb.mxu1 %v8953_v38  ;;  %3061 = vmatpush.bf16.msrb.mxu0 %v7893_v13  ;;  %v7935_v13 = vld [vmem:[%s8306_s20 + $0x38] sm:$0xff] }
 0x6e3   :  { %3218 = vmatpush.bf16.msra.mxu2 %v8958_v3 }
 0x6e4   :  { %3425 = vmatpush.bf16.msrb.mxu1 %v8958_v3  ;;  %3062 = vmatpush.bf16.msrb.mxu0 %v7892_v22 }
 0x6e6   :  { %6593 = vmatmul.msk.bf16.vlgmr.msrb.gmra.mxu2 %vm1062_vm2, %v6592_v7  ;;  %v7924_v7 = vld [vmem:[%s8291_s30 + $0x100] sm:$0xff]  ;;  %s5555_s30 = sshll.u32 %s8222_s24, 4  ;;  %s5556_s30 = int_to_ptr.vmem [resolvable:$true] %s5555_s30 }
 0x6e7   :  { %3355 = vmatpush.bf16.msrb.mxu2 %v8953_v38  ;;  %6674 = vmatmul.msk.bf16.vlgmr.msra.gmra.mxu1 %vm1062_vm2, %v6673_v8 }
 0x6e8   :  { %3196 = vmatpush.bf16.msra.mxu0 %v7907_v46  ;;  %v7933_v46 = vld [vmem:[%s8306_s20 + $0x28] sm:$0xff] }
 0x6eb   :  { %3356 = vmatpush.bf16.msrb.mxu2 %v8958_v3 }
 0x6ec   :  { %3197 = vmatpush.bf16.msra.mxu0 %v7906_v31  ;;  %v7932_v31 = vld [vmem:[%s8306_s20 + $0x20] sm:$0xff] }
 0x6f0   :  { %3198 = vmatpush.bf16.msra.mxu0 %v7905_v63  ;;  %v7931_v63 = vld [vmem:[%s8306_s20 + $0x18] sm:$0xff] }
 0x6f4   :  { %3199 = vmatpush.bf16.msra.mxu0 %v7904_v32 }
 0x6f6   :  { %6647 = vmatmul.msk.bf16.vlgmr.msra.gmra.mxu2 %vm1062_vm2, %v6646_v41 }
 0x6f7   :  { %3493 = vmatpush.bf16.msra.mxu2 %v8953_v38  ;;  %6728 = vmatmul.msk.bf16.vlgmr.msrb.gmra.mxu1 %vm1062_vm2, %v6727_v52 }
 0x6fb   :  { %3494 = vmatpush.bf16.msra.mxu2 %v8958_v3 }
 0x706   :  { %6701 = vmatmul.msk.bf16.vlgmr.msrb.gmra.mxu2 %vm1062_vm2, %v6700_v60 }
 0x716   :  { %6755 = vmatmul.msk.bf16.vlgmr.msra.gmra.mxu2 %vm1062_vm2, %v6754_v0 }
 0x753   :  { %v2947_v2 = vpop.f32.mrf.mxu0 }
 0x754   :  { %v2951_v14 = vpack.c.bf16 %v2947_v2, %v2947_v2  ;;  %v3151_v17 = vpop.f32.mrf.mxu1 }
 0x755   :  { %v3155_v12 = vpack.c.bf16 %v3151_v17, %v3151_v17  ;;  %v7929_v17 = vld [vmem:[%s8306_s20 + $0x8] sm:$0xff] }
 0x756   :  { %6591 = vmatmul.msk.bf16.vlgmr.msrb.gmra.mxu0 %vm1173_vm3, %v2951_v14 }
 0x757   :  { %3334 = vmatpush.bf16.msrb.mxu0 %v7915_v55  ;;  %v7930_v55 = vld [vmem:[%s8306_s20 + $0x10] sm:$0xff] }
 0x759   :  { %v2974_v27 = vpop.f32.mrf.mxu2 }
 0x75a   :  { %v2978_v42 = vpack.c.bf16 %v2974_v27, %v2974_v27  ;;  %v7928_v27 = vld [vmem:[%s8306_s20] sm:$0xff] }
 0x75b   :  { %v2949_v33 = vpop.f32.mrf.mxu0  ;;  %3335 = vmatpush.bf16.msrb.mxu0 %v7914_v5 }
 0x75c   :  { %6574 = vmatmul.msk.bf16.vlgmr.msra.gmra.mxu3 %vm1173_vm3, %v2978_v42  ;;  %v3153_v37 = vpop.f32.mrf.mxu1 }
 0x75d   :  { %3265 = vmatpush.bf16.msra.mxu3 %v7911_v21 }
 0x75f   :  { %3336 = vmatpush.bf16.msrb.mxu0 %v7913_v18 }
 0x761   :  { %v2976_v20 = vpop.f32.mrf.mxu2  ;;  %3266 = vmatpush.bf16.msra.mxu3 %v7910_v47 }
 0x763   :  { %3337 = vmatpush.bf16.msrb.mxu0 %v7912_v61 }
 0x764   :  { %v3289_v35 = vpop.f32.mrf.mxu1 }
 0x765   :  { %3267 = vmatpush.bf16.msra.mxu3 %v7909_v34  ;;  %v3293_v49 = vpack.c.bf16 %v3289_v35, %v3289_v35 }
 0x766   :  { %6645 = vmatmul.msk.bf16.vlgmr.msra.gmra.mxu0 %vm1173_vm3, %v3155_v12 }
 0x767   :  { %3472 = vmatpush.bf16.msra.mxu0 %v7923_v15  ;;  %v8163_v15 = vld [vmem:[%s9420_s0] ss:$0 sm:$0xff] }
 0x769   :  { %v3082_v6 = vpop.f32.mrf.mxu2  ;;  %3268 = vmatpush.bf16.msra.mxu3 %v7908_v62 }
 0x76a   :  { %v3086_v28 = vpack.c.bf16 %v3082_v6, %v3082_v6 }
 0x76b   :  { %3473 = vmatpush.bf16.msra.mxu0 %v7922_v39 }
 0x76c   :  { %6618 = vmatmul.msk.bf16.vlgmr.msrb.gmra.mxu3 %vm1173_vm3, %v3086_v28  ;;  %v3291_v29 = vpop.f32.mrf.mxu1  ;;  %v7951_v28 = vld [vmem:[%s8306_s20 + $0xb8] sm:$0xff] }
 0x76d   :  { %3403 = vmatpush.bf16.msrb.mxu3 %v7919_v9 }
 0x76f   :  { %3474 = vmatpush.bf16.msra.mxu0 %v7921_v11 }
 0x771   :  { %v3084_v45 = vpop.f32.mrf.mxu2  ;;  %3404 = vmatpush.bf16.msrb.mxu3 %v7918_v43  ;;  %v3558_v43 = vld [vmem:[%s9421_s5] sm:$0xf] }
 0x772   :  { %v7950_v45 = vld [vmem:[%s8306_s20 + $0xb0] sm:$0xff] }
 0x773   :  { %3475 = vmatpush.bf16.msra.mxu0 %v7920_v44  ;;  %v6782_v44 = vld [vmem:[%s9421_s5 + $0x4] sm:$0xf] }
 0x774   :  { %v3427_v51 = vpop.f32.mrf.mxu1 }
 0x775   :  { %3405 = vmatpush.bf16.msrb.mxu3 %v7917_v48  ;;  %v3431_v23 = vpack.c.bf16 %v3427_v51, %v3427_v51  ;;  %v7949_v48 = vld [vmem:[%s8306_s20 + $0xa8] sm:$0xff]  ;;  %v7947_v51 = vld [vmem:[%s8306_s20 + $0x98] sm:$0xff] }
 0x776   :  { %6699 = vmatmul.msk.bf16.vlgmr.msrb.gmra.mxu0 %vm1173_vm3, %v3293_v49  ;;  %v7948_v49 = vld [vmem:[%s8306_s20 + $0xa0] sm:$0xff] }
 0x779   :  { %v3220_v57 = vpop.f32.mrf.mxu2  ;;  %3406 = vmatpush.bf16.msrb.mxu3 %v7916_v56  ;;  %v6864_v56 = vld [vmem:[%s9421_s5 + $0x8] sm:$0xf] }
 0x77a   :  { %v3224_v59 = vpack.c.bf16 %v3220_v57, %v3220_v57  ;;  %v7967_v57 = vld [vmem:[%s8306_s20 + $0x138] sm:$0xff] }
 0x77c   :  { %6672 = vmatmul.msk.bf16.vlgmr.msra.gmra.mxu3 %vm1173_vm3, %v3224_v59  ;;  %v3429_v36 = vpop.f32.mrf.mxu1  ;;  %v7946_v59 = vld [vmem:[%s8306_s20 + $0x90] sm:$0xff] }
 0x77d   :  { %3541 = vmatpush.bf16.msra.mxu3 %v7927_v58  ;;  %v7943_v58 = vld [vmem:[%s8306_s20 + $0x78] sm:$0xff]  ;;  %v7942_v36 = vld [vmem:[%s8306_s20 + $0x70] sm:$0xff] }
 0x77e   :  { %3681 = vmatpush.bf16.msrb.mxu2 %v7943_v58 }
 0x781   :  { %v3222_v26 = vpop.f32.mrf.mxu2  ;;  %3542 = vmatpush.bf16.msra.mxu3 %v7926_v40  ;;  %v7966_v40 = vld [vmem:[%s8306_s20 + $0x130] sm:$0xff] }
 0x782   :  { %v7945_v26 = vld [vmem:[%s8306_s20 + $0x88] sm:$0xff]  ;;  %3682 = vmatpush.bf16.msrb.mxu2 %v7942_v36 }
 0x785   :  { %3543 = vmatpush.bf16.msra.mxu3 %v7925_v30  ;;  %v7941_v30 = vld [vmem:[%s8306_s20 + $0x68] sm:$0xff] }
 0x786   :  { %6753 = vmatmul.msk.bf16.vlgmr.msra.gmra.mxu0 %vm1173_vm3, %v3431_v23  ;;  %v7965_v23 = vld [vmem:[%s8306_s20 + $0x128] sm:$0xff]  ;;  %3683 = vmatpush.bf16.msrb.mxu2 %v7941_v30 }
 0x789   :  { %v3358_v8 = vpop.f32.mrf.mxu2  ;;  %3544 = vmatpush.bf16.msra.mxu3 %v7924_v7  ;;  %v7944_v7 = vld [vmem:[%s8306_s20 + $0x80] sm:$0xff] }
 0x78a   :  { %v3362_v41 = vpack.c.bf16 %v3358_v8, %v3358_v8  ;;  %v7940_v8 = vld [vmem:[%s8306_s20 + $0x60] sm:$0xff] }
 0x78b   :  { %3684 = vmatpush.bf16.msrb.mxu2 %v7940_v8  ;;  %v7990_v8 = vld [vmem:[%s8306_s20 + $0x1f0] sm:$0xff] }
 0x78c   :  { %6726 = vmatmul.msk.bf16.vlgmr.msrb.gmra.mxu3 %vm1173_vm3, %v3362_v41  ;;  %v7964_v41 = vld [vmem:[%s8306_s20 + $0x120] sm:$0xff] }
 0x78d   :  { %3742 = vmatpush.bf16.msrb.mxu3 %v7935_v13  ;;  %v7959_v13 = vld [vmem:[%s8306_s20 + $0xf8] sm:$0xff] }
 0x791   :  { %v3360_v52 = vpop.f32.mrf.mxu2  ;;  %3743 = vmatpush.bf16.msrb.mxu3 %v7934_v24  ;;  %v7956_v24 = vld [vmem:[%s8306_s20 + $0xe0] sm:$0xff] }
 0x792   :  { %v7939_v52 = vld [vmem:[%s8306_s20 + $0x58] sm:$0xff] }
 0x793   :  { %3685 = vmatpush.bf16.msrb.mxu2 %v7939_v52  ;;  %v7114_v52 = vld [vmem:[%s9421_s5 + $0x1c] sm:$0xf] }
 0x795   :  { %3744 = vmatpush.bf16.msrb.mxu3 %v7933_v46  ;;  %v7955_v46 = vld [vmem:[%s8306_s20 + $0xd8] sm:$0xff] }
 0x799   :  { %v3496_v1 = vpop.f32.mrf.mxu2  ;;  %3745 = vmatpush.bf16.msrb.mxu3 %v7932_v31  ;;  %v7952_v31 = vld [vmem:[%s8306_s20 + $0xc0] sm:$0xff] }
 0x79a   :  { %v3500_v10 = vpack.c.bf16 %v3496_v1, %v3496_v1  ;;  %v6914_v1 = vld [vmem:[%s9421_s5 + $0xc] sm:$0xf] }
 0x79c   :  { %6780 = vmatmul.msk.bf16.vlgmr.msra.gmra.mxu3 %vm1173_vm3, %v3500_v10  ;;  %v7963_v10 = vld [vmem:[%s8306_s20 + $0x118] sm:$0xff] }
 0x79d   :  { %3746 = vmatpush.bf16.msrb.mxu3 %v7931_v63 }
 0x7a1   :  { %v3498_v19 = vpop.f32.mrf.mxu2  ;;  %3747 = vmatpush.bf16.msrb.mxu3 %v7930_v55  ;;  %v7983_v55 = vld [vmem:[%s8306_s20 + $0x1b8] sm:$0xff] }
 0x7a2   :  { %v7938_v19 = vld [vmem:[%s8306_s20 + $0x50] sm:$0xff] }
 0x7a3   :  { %3686 = vmatpush.bf16.msrb.mxu2 %v7938_v19  ;;  %v7989_v19 = vld [vmem:[%s8306_s20 + $0x1e8] sm:$0xff] }
 0x7a5   :  { %3748 = vmatpush.bf16.msrb.mxu3 %v7929_v17 }
 0x7a9   :  { %3749 = vmatpush.bf16.msrb.mxu3 %v7928_v27  ;;  %v7982_v27 = vld [vmem:[%s8306_s20 + $0x1b0] sm:$0xff] }
 0x7d3   :  { %v3064_v53 = vpop.f32.mrf.mxu0 }
 0x7db   :  { %v3066_v60 = vpop.f32.mrf.mxu0 }
 0x7dc   :  { %v7937_v60 = vld [vmem:[%s8306_s20 + $0x48] sm:$0xff] }
 0x7dd   :  { %3687 = vmatpush.bf16.msrb.mxu2 %v7937_v60 }
 0x7df   :  { %v3024_v0 = vpop.f32.mrf.mxu3 }
 0x7e0   :  { %v3065_v42 = vadd.f32 %v3064_v53, %v3024_v0  ;;  %v7962_v53 = vld [vmem:[%s8306_s20 + $0x110] sm:$0xff]  ;;  %v7961_v0 = vld [vmem:[%s8306_s20 + $0x108] sm:$0xff] }
 0x7e3   :  { %v3201_v4 = vpop.f32.mrf.mxu0 }
 0x7e7   :  { %v3026_v54 = vpop.f32.mrf.mxu3 }
 0x7e8   :  { %v7960_v54 = vld [vmem:[%s8306_s20 + $0x100] sm:$0xff] }
 0x7eb   :  { %v3203_v50 = vpop.f32.mrf.mxu0 }
 0x7ec   :  { %v7958_v50 = vld [vmem:[%s8306_s20 + $0xf0] sm:$0xff] }
 0x7ef   :  { %v3132_v22 = vpop.f32.mrf.mxu3 }
 0x7f0   :  { %v3136_v33 = vadd.f32 %v3132_v22, %v3065_v42  ;;  %v7957_v22 = vld [vmem:[%s8306_s20 + $0xe8] sm:$0xff] }
 0x7f1   :  { %v7973_v42 = vld [vmem:[%s8306_s20 + $0x168] sm:$0xff] }
 0x7f2   :  { %v3205_v18 = vadd.f32 %v3201_v4, %v3136_v33  ;;  %v7936_v4 = vld [vmem:[%s8306_s20 + $0x40] sm:$0xff]  ;;  %v7981_v33 = vld [vmem:[%s8306_s20 + $0x1a8] sm:$0xff] }
 0x7f3   :  { %v3339_v16 = vpop.f32.mrf.mxu0  ;;  %3688 = vmatpush.bf16.msrb.mxu2 %v7936_v4 }
 0x7f7   :  { %v3134_v25 = vpop.f32.mrf.mxu3  ;;  %3937 = vmatpush.bf16.msra.mxu2 %v7959_v13  ;;  %v4446_v13 = vld [vmem:[%s9422_s9] sm:$0xf] }
 0x7f8   :  { %v7953_v25 = vld [vmem:[%s8306_s20 + $0xc8] sm:$0xff] }
 0x7fb   :  { %v3341_v32 = vpop.f32.mrf.mxu0  ;;  %3938 = vmatpush.bf16.msra.mxu2 %v7958_v50  ;;  %v7988_v50 = vld [vmem:[%s8306_s20 + $0x1e0] sm:$0xff] }
 0x7ff   :  { %v3270_v2 = vpop.f32.mrf.mxu3  ;;  %3939 = vmatpush.bf16.msra.mxu2 %v7957_v22  ;;  %v7987_v22 = vld [vmem:[%s8306_s20 + $0x1d8] sm:$0xff] }
 0x800   :  { %v3274_v47 = vadd.f32 %v3270_v2, %v3205_v18  ;;  %v7975_v2 = vld [vmem:[%s8306_s20 + $0x178] sm:$0xff]  ;;  %v7972_v18 = vld [vmem:[%s8306_s20 + $0x160] sm:$0xff] }
 0x802   :  { %v3343_v20 = vadd.f32 %v3339_v16, %v3274_v47  ;;  %v7954_v16 = vld [vmem:[%s8306_s20 + $0xd0] sm:$0xff]  ;;  %v7980_v47 = vld [vmem:[%s8306_s20 + $0x1a0] sm:$0xff] }
 0x803   :  { %v3477_v14 = vpop.f32.mrf.mxu0  ;;  %3940 = vmatpush.bf16.msra.mxu2 %v7956_v24  ;;  %v7999_v24 = vld [vmem:[%s8306_s20 + $0x238] sm:$0xff] }
 0x807   :  { %v3272_v5 = vpop.f32.mrf.mxu3  ;;  %3941 = vmatpush.bf16.msra.mxu2 %v7955_v46  ;;  %v7986_v46 = vld [vmem:[%s8306_s20 + $0x1d0] sm:$0xff] }
 0x808   :  { %v7974_v5 = vld [vmem:[%s8306_s20 + $0x170] sm:$0xff] }
 0x80b   :  { %v3479_v21 = vpop.f32.mrf.mxu0  ;;  %3942 = vmatpush.bf16.msra.mxu2 %v7954_v16  ;;  %v7998_v16 = vld [vmem:[%s8306_s20 + $0x230] sm:$0xff] }
 0x80f   :  { %v3408_v37 = vpop.f32.mrf.mxu3  ;;  %3943 = vmatpush.bf16.msra.mxu2 %v7953_v25  ;;  %v7985_v25 = vld [vmem:[%s8306_s20 + $0x1c8] sm:$0xff] }
 0x810   :  { %v3412_v34 = vadd.f32 %v3408_v37, %v3343_v20  ;;  %v6964_v20 = vld [vmem:[%s9421_s5 + $0x10] sm:$0xf] }
 0x812   :  { %v3481_v12 = vadd.f32 %v3477_v14, %v3412_v34  ;;  %v7971_v34 = vld [vmem:[%s8306_s20 + $0x158] sm:$0xff] }
 0x813   :  { %3944 = vmatpush.bf16.msra.mxu2 %v7952_v31  ;;  %v7997_v31 = vld [vmem:[%s8306_s20 + $0x228] sm:$0xff] }
 0x817   :  { %v3410_v61 = vpop.f32.mrf.mxu3 }
 0x81f   :  { %v3546_v35 = vpop.f32.mrf.mxu3 }
 0x820   :  { %v3550_v62 = vadd.f32 %v3546_v35, %v3481_v12  ;;  %v7970_v35 = vld [vmem:[%s8306_s20 + $0x150] sm:$0xff] }
 0x822   :  { %v3555_v39 = vadd.f32 %v8163_v15, %v3550_v62  ;;  %v7979_v15 = vld [vmem:[%s8306_s20 + $0x198] sm:$0xff]  ;;  %v7978_v62 = vld [vmem:[%s8306_s20 + $0x190] sm:$0xff] }
 0x824   :  { %v3556_v6 = vmax.f32 %v3555_v39, 0.0 }
 0x826   :  { %v3557_v9 = vpack.c.bf16 %v3556_v6, %v3556_v6  ;;  %v7969_v6 = vld [vmem:[%s8306_s20 + $0x148] sm:$0xff] }
 0x827   :  { %v3548_v29 = vpop.f32.mrf.mxu3 }
 0x828   :  { %v9049_v11 = vsel %vm3563_vm4, %v3557_v9, 0  ;;  %v7977_v9 = vld [vmem:[%s8306_s20 + $0x188] sm:$0xff]  ;;  %v7976_v29 = vld [vmem:[%s8306_s20 + $0x180] sm:$0xff] }
 0x829   :  { %3574 = vmatpush.bf16.msra.mxu1 %v9049_v11  ;;  %3609 = vmatpush.bf16.msrb.mxu0 %v9049_v11 }
 0x82a   :  { %3963 = vmatpush.bf16.msra.mxu3 %v9049_v11 }
 0x82c   :  { %6781 = vmatmul.msk.bf16.vlgmr.msra.gmra.mxu1 %vm3559_vm5, %v3558_v43  ;;  %6783 = vmatmul.msk.bf16.vlgmr.msrb.gmra.mxu0 %vm3559_vm5, %v6782_v44  ;;  %v7014_v44 = vld [vmem:[%s9421_s5 + $0x14] sm:$0xf] }
 0x82d   :  { %3767 = vmatpush.bf16.msrb.mxu1 %v9049_v11  ;;  %3839 = vmatpush.bf16.msra.mxu0 %v7951_v28  ;;  %v7968_v28 = vld [vmem:[%s8306_s20 + $0x140] sm:$0xff] }
 0x831   :  { %3865 = vmatpush.bf16.msra.mxu1 %v9049_v11  ;;  %3840 = vmatpush.bf16.msra.mxu0 %v7950_v45 }
 0x835   :  { %3841 = vmatpush.bf16.msra.mxu0 %v7949_v48 }
 0x839   :  { %3842 = vmatpush.bf16.msra.mxu0 %v7948_v49  ;;  %v7064_v49 = vld [vmem:[%s9421_s5 + $0x18] sm:$0xf] }
 0x83c   :  { %6865 = vmatmul.msk.bf16.vlgmr.msrb.gmra.mxu1 %vm3559_vm5, %v6864_v56 }
 0x83d   :  { %3843 = vmatpush.bf16.msra.mxu0 %v7947_v51  ;;  %4035 = vmatpush.bf16.msrb.mxu1 %v7967_v57 }
 0x841   :  { %3844 = vmatpush.bf16.msra.mxu0 %v7946_v59  ;;  %4036 = vmatpush.bf16.msrb.mxu1 %v7966_v40 }
 0x845   :  { %3845 = vmatpush.bf16.msra.mxu0 %v7945_v26  ;;  %4037 = vmatpush.bf16.msrb.mxu1 %v7965_v23 }
 0x849   :  { %3846 = vmatpush.bf16.msra.mxu0 %v7944_v7  ;;  %4038 = vmatpush.bf16.msrb.mxu1 %v7964_v41  ;;  %v7991_v7 = vld [vmem:[%s8306_s20 + $0x1f8] sm:$0xff] }
 0x84c   :  { %6915 = vmatmul.msk.bf16.vlgmr.msra.gmra.mxu1 %vm3559_vm5, %v6914_v1 }
 0x84d   :  { %4061 = vmatpush.bf16.msrb.mxu0 %v9049_v11  ;;  %4039 = vmatpush.bf16.msrb.mxu1 %v7963_v10 }
 0x851   :  { %4040 = vmatpush.bf16.msrb.mxu1 %v7962_v53 }
 0x855   :  { %4041 = vmatpush.bf16.msrb.mxu1 %v7961_v0  ;;  %v7164_v0 = vld [vmem:[%s9421_s5 + $0x20] sm:$0xf] }
 0x859   :  { %4042 = vmatpush.bf16.msrb.mxu1 %v7960_v54 }
 0x85d   :  { %4257 = vmatpush.bf16.msra.mxu1 %v9049_v11 }
 0x8a9   :  { %v3576_v63 = vpop.f32.mrf.mxu1  ;;  %v3611_v32 = vpop.f32.mrf.mxu0 }
 0x8aa   :  { %v3580_v14 = vpack.c.bf16 %v3576_v63, %v3576_v63  ;;  %v3615_v17 = vpack.c.bf16 %v3611_v32, %v3611_v32  ;;  %v7984_v63 = vld [vmem:[%s8306_s20 + $0x1c0] sm:$0xff] }
 0x8ab   :  { %v7996_v32 = vld [vmem:[%s8306_s20 + $0x220] sm:$0xff] }
 0x8ac   :  { %3750 = vmatmul.bf16.vlgmr.msrb.gmra.mxu3 %v3580_v14  ;;  %3689 = vmatmul.bf16.vlgmr.msrb.gmra.mxu2 %v3615_v17  ;;  %v7993_v14 = vld [vmem:[%s8306_s20 + $0x208] sm:$0xff]  ;;  %v7992_v17 = vld [vmem:[%s8306_s20 + $0x200] sm:$0xff] }
 0x8ad   :  { %4133 = vmatpush.bf16.msrb.mxu3 %v7975_v2  ;;  %4231 = vmatpush.bf16.msrb.mxu2 %v7983_v55  ;;  %v7995_v2 = vld [vmem:[%s8306_s20 + $0x218] sm:$0xff]  ;;  %v7994_v55 = vld [vmem:[%s8306_s20 + $0x210] sm:$0xff] }
 0x8b1   :  { %4134 = vmatpush.bf16.msrb.mxu3 %v7974_v5  ;;  %v3578_v21 = vpop.f32.mrf.mxu1  ;;  %4232 = vmatpush.bf16.msrb.mxu2 %v7982_v27  ;;  %v3613_v37 = vpop.f32.mrf.mxu0 }
 0x8b2   :  { %v8003_v21 = vld [vmem:[%s9423_s13 + $0x18] sm:$0xff]  ;;  %v8001_v37 = vld [vmem:[%s9423_s13 + $0x8] sm:$0xff] }
 0x8b5   :  { %4135 = vmatpush.bf16.msrb.mxu3 %v7973_v42  ;;  %4233 = vmatpush.bf16.msrb.mxu2 %v7981_v33  ;;  %v8002_v42 = vld [vmem:[%s9423_s13 + $0x10] sm:$0xff] }
 0x8b9   :  { %4136 = vmatpush.bf16.msrb.mxu3 %v7972_v18  ;;  %v3769_v61 = vpop.f32.mrf.mxu1  ;;  %4234 = vmatpush.bf16.msrb.mxu2 %v7980_v47  ;;  %v8000_v18 = vld [vmem:[%s9423_s13] sm:$0xff] }
 0x8ba   :  { %v3773_v12 = vpack.c.bf16 %v3769_v61, %v3769_v61 }
 0x8bc   :  { %3847 = vmatmul.bf16.vlgmr.msra.gmra.mxu0 %v3773_v12  ;;  %6965 = vmatmul.msk.bf16.vlgmr.msra.gmra.mxu3 %vm3559_vm5, %v6964_v20 }
 0x8bd   :  { %4137 = vmatpush.bf16.msrb.mxu3 %v7971_v34  ;;  %4159 = vmatpush.bf16.msra.mxu0 %v9049_v11 }
 0x8be   :  { %4235 = vmatpush.bf16.msrb.mxu2 %v7979_v15 }
 0x8c1   :  { %4138 = vmatpush.bf16.msrb.mxu3 %v7970_v35  ;;  %v3771_v39 = vpop.f32.mrf.mxu1 }
 0x8c2   :  { %4236 = vmatpush.bf16.msrb.mxu2 %v7978_v62 }
 0x8c5   :  { %4139 = vmatpush.bf16.msrb.mxu3 %v7969_v6 }
 0x8c6   :  { %4237 = vmatpush.bf16.msrb.mxu2 %v7977_v9 }
 0x8c9   :  { %4140 = vmatpush.bf16.msrb.mxu3 %v7968_v28  ;;  %v3867_v43 = vpop.f32.mrf.mxu1 }
 0x8ca   :  { %v3871_v45 = vpack.c.bf16 %v3867_v43, %v3867_v43  ;;  %4238 = vmatpush.bf16.msrb.mxu2 %v7976_v29 }
 0x8cc   :  { %3945 = vmatmul.bf16.vlgmr.msra.gmra.mxu2 %v3871_v45  ;;  %7015 = vmatmul.msk.bf16.vlgmr.msrb.gmra.mxu0 %vm3559_vm5, %v7014_v44  ;;  %v7309_v45 = vld [vmem:[%s9424_s17 + $0xf0] sm:$0xf] }
 0x8cd   :  { %4355 = vmatpush.bf16.msra.mxu3 %v9049_v11  ;;  %4329 = vmatpush.bf16.msrb.mxu0 %v7991_v7  ;;  %v7269_v7 = vld [vmem:[%s9424_s17 + $0xa0] sm:$0xf] }
 0x8ce   :  { %4456 = vmatpush.bf16.msra.mxu2 %v8953_v38 }
 0x8d1   :  { %v3869_v48 = vpop.f32.mrf.mxu1  ;;  %4330 = vmatpush.bf16.msrb.mxu0 %v7990_v8  ;;  %v8025_v8 = vld [vmem:[%s9424_s17 + $0xa4] sm:$0xf0] }
 0x8d2   :  { %4457 = vmatpush.bf16.msra.mxu2 %v8958_v3  ;;  %v8035_v48 = vld [vmem:[%s9424_s17 + $0xf4] sm:$0xf0] }
 0x8d5   :  { %4331 = vmatpush.bf16.msrb.mxu0 %v7989_v19 }
 0x8d9   :  { %4332 = vmatpush.bf16.msrb.mxu0 %v7988_v50 }
 0x8dc   :  { %7065 = vmatmul.msk.bf16.vlgmr.msra.gmra.mxu0 %vm3559_vm5, %v7064_v49  ;;  %v7310_v49 = vor.u32 %v8035_v48, %v7309_v45  ;;  %v8030_v45 = vld [vmem:[%s9424_s17 + $0xd4] sm:$0xf]  ;;  %v7295_v48 = vld [vmem:[%s9424_s17 + $0xd8] sm:$0xf0] }
 0x8dd   :  { %4333 = vmatpush.bf16.msrb.mxu0 %v7987_v22  ;;  %v8164_v22 = vld [vmem:[%s9425_s21] ss:$0 sm:$0xff] }
 0x8e1   :  { %4334 = vmatpush.bf16.msrb.mxu0 %v7986_v46 }
 0x8e5   :  { %4335 = vmatpush.bf16.msrb.mxu0 %v7985_v25 }
 0x8e9   :  { %4336 = vmatpush.bf16.msrb.mxu0 %v7984_v63  ;;  %v8018_v63 = vld [vmem:[%s9424_s17 + $0x74] sm:$0xf] }
 0x92f   :  { %v3751_v51 = vpop.f32.mrf.mxu3  ;;  %v3690_v56 = vpop.f32.mrf.mxu2 }
 0x930   :  { %v3752_v57 = vadd.f32 %v3751_v51, %v3690_v56  ;;  %v7301_v51 = vld [vmem:[%s9424_s17 + $0xe0] sm:$0xf]  ;;  %v8033_v56 = vld [vmem:[%s9424_s17 + $0xe4] sm:$0xf0] }
 0x937   :  { %v3753_v58 = vpop.f32.mrf.mxu3  ;;  %v3692_v11 = vpop.f32.mrf.mxu2 }
 0x938   :  { %v7293_v58 = vld [vmem:[%s9424_s17 + $0xd0] sm:$0xf]  ;;  %v8031_v11 = vld [vmem:[%s9424_s17 + $0xd4] sm:$0xf0] }
 0x939   :  { %v3848_v59 = vpop.f32.mrf.mxu0 }
 0x93a   :  { %v3852_v36 = vadd.f32 %v3848_v59, %v3752_v57  ;;  %v7302_v57 = vor.u32 %v8033_v56, %v7301_v51  ;;  %v7294_v59 = vor.u32 %v8031_v11, %v7293_v58  ;;  %v8012_v51 = vld [vmem:[%s9424_s17 + $0x44] sm:$0xf]  ;;  %v7351_v56 = vld [vmem:[%s9424_s17 + $0x48] sm:$0xf0]  ;;  %v7298_v58 = vor.u32 %v8030_v45, %v7295_v48  ;;  %v7349_v11 = vld [vmem:[%s9424_s17 + $0x40] sm:$0xf] }
 0x93b   :  { %v8051_v45 = vld [vmem:[%s9424_s17 + $0x174] sm:$0xf0] }
 0x93f   :  { %v3965_v40 = vpop.f32.mrf.mxu3 }
 0x940   :  { %v3969_v26 = vpack.c.bf16 %v3965_v40, %v3965_v40  ;;  %v8029_v40 = vld [vmem:[%s9424_s17 + $0xc4] sm:$0xf0] }
 0x941   :  { %v3850_v38 = vpop.f32.mrf.mxu0 }
 0x942   :  { %4043 = vmatmul.bf16.vlgmr.msrb.gmra.mxu1 %v3969_v26  ;;  %v7277_v38 = vld [vmem:[%s9424_s17 + $0xb0] sm:$0xf] }
 0x943   :  { %4427 = vmatpush.bf16.msrb.mxu1 %v7999_v24  ;;  %v8165_v24 = vld [vmem:[%s9426_s25] ss:$0 sm:$0xff] }
 0x947   :  { %v3967_v3 = vpop.f32.mrf.mxu3  ;;  %4428 = vmatpush.bf16.msrb.mxu1 %v7998_v16 }
 0x948   :  { %v8027_v3 = vld [vmem:[%s9424_s17 + $0xb4] sm:$0xf0] }
 0x949   :  { %v4063_v30 = vpop.f32.mrf.mxu0 }
 0x94a   :  { %v4067_v23 = vpack.c.bf16 %v4063_v30, %v4063_v30 }
 0x94b   :  { %4429 = vmatpush.bf16.msrb.mxu1 %v7997_v31 }
 0x94c   :  { %4141 = vmatmul.bf16.vlgmr.msrb.gmra.mxu3 %v4067_v23  ;;  %v7278_v23 = vor.u32 %v8027_v3, %v7277_v38  ;;  %v8010_v38 = vld [vmem:[%s9424_s17 + $0x34] sm:$0xf]  ;;  %v7343_v3 = vld [vmem:[%s9424_s17 + $0x38] sm:$0xf0] }
 0x94d   :  { %4507 = vmatpush.bf16.msrb.mxu3 %v8003_v21  ;;  %v4519_v21 = vld [vmem:[%s9427_s29] sm:$0x1] }
 0x94f   :  { %v3946_v41 = vpop.f32.mrf.mxu2  ;;  %4430 = vmatpush.bf16.msrb.mxu1 %v7996_v32  ;;  %v7375_v32 = vld [vmem:[%s9424_s17 + $0x78] sm:$0xf0] }
 0x950   :  { %v3950_v1 = vadd.f32 %v3946_v41, %v3852_v36  ;;  %v7285_v36 = vld [vmem:[%s9424_s17 + $0xc0] sm:$0xf]  ;;  %v7270_v41 = vor.u32 %v8025_v8, %v7269_v7  ;;  %v7341_v7 = vld [vmem:[%s9424_s17 + $0x30] sm:$0xf]  ;;  %v8011_v8 = vld [vmem:[%s9424_s17 + $0x34] sm:$0xf0] }
 0x951   :  { %v4065_v10 = vpop.f32.mrf.mxu0  ;;  %4508 = vmatpush.bf16.msrb.mxu3 %v8002_v42  ;;  %v7286_v26 = vor.u32 %v8029_v40, %v7285_v36  ;;  %v7233_v42 = vld [vmem:[%s9427_s29 + $0x1] sm:$0x1]  ;;  %v8028_v36 = vld [vmem:[%s9424_s17 + $0xc4] sm:$0xf]  ;;  %v7287_v40 = vld [vmem:[%s9424_s17 + $0xc8] sm:$0xf0] }
 0x952   :  { %7115 = vmatmul.msk.bf16.vlgmr.msra.gmra.mxu1 %vm3559_vm5, %v7114_v52  ;;  %v8023_v10 = vld [vmem:[%s9424_s17 + $0x94] sm:$0xf0] }
 0x953   :  { %4431 = vmatpush.bf16.msrb.mxu1 %v7995_v2 }
 0x955   :  { %4509 = vmatpush.bf16.msrb.mxu3 %v8001_v37  ;;  %v8019_v37 = vld [vmem:[%s9424_s17 + $0x74] sm:$0xf0] }
 0x957   :  { %v3948_v53 = vpop.f32.mrf.mxu2  ;;  %4432 = vmatpush.bf16.msrb.mxu1 %v7994_v55 }
 0x958   :  { %v7253_v53 = vld [vmem:[%s9424_s17 + $0x80] sm:$0xf] }
 0x959   :  { %v4161_v60 = vpop.f32.mrf.mxu0  ;;  %4510 = vmatpush.bf16.msrb.mxu3 %v8000_v18  ;;  %v8034_v18 = vld [vmem:[%s9424_s17 + $0xf4] sm:$0xf] }
 0x95a   :  { %v4165_v4 = vpack.c.bf16 %v4161_v60, %v4161_v60  ;;  %v8021_v60 = vld [vmem:[%s9424_s17 + $0x84] sm:$0xf0] }
 0x95b   :  { %4433 = vmatpush.bf16.msrb.mxu1 %v7993_v14  ;;  %v7378_v14 = vor.u32 %v8018_v63, %v7375_v32  ;;  %v8007_v63 = vld [vmem:[%s9424_s17 + $0x14] sm:$0xf0] }
 0x95c   :  { %4239 = vmatmul.bf16.vlgmr.msrb.gmra.mxu2 %v4165_v4  ;;  %7165 = vmatmul.msk.bf16.vlgmr.msra.gmra.mxu3 %vm3559_vm5, %v7164_v0  ;;  %v7254_v0 = vor.u32 %v8021_v60, %v7253_v53  ;;  %v7342_v53 = vor.u32 %v8011_v8, %v7341_v7  ;;  %v7449_v7 = vld [vmem:[%s9424_s17 + $0x168] sm:$0xf0]  ;;  %v8062_v8 = vld [vmem:[%s9424_s17 + $0x1d4] sm:$0xf] }
 0x95d   :  { %4672 = vmatpush.bf16.msra.mxu3 %v7310_v49 }
 0x95f   :  { %4434 = vmatpush.bf16.msrb.mxu1 %v7992_v17  ;;  %v8016_v17 = vld [vmem:[%s9424_s17 + $0x64] sm:$0xf] }
 0x961   :  { %v4163_v54 = vpop.f32.mrf.mxu0  ;;  %4673 = vmatpush.bf16.msra.mxu3 %v7302_v57 }
 0x965   :  { %4674 = vmatpush.bf16.msra.mxu3 %v7294_v59  ;;  %v8013_v59 = vld [vmem:[%s9424_s17 + $0x44] sm:$0xf0] }
 0x969   :  { %4675 = vmatpush.bf16.msra.mxu3 %v7286_v26  ;;  %v7354_v26 = vor.u32 %v8012_v51, %v7351_v56  ;;  %v8050_v51 = vld [vmem:[%s9424_s17 + $0x174] sm:$0xf]  ;;  %v7457_v56 = vld [vmem:[%s9424_s17 + $0x178] sm:$0xf0] }
 0x96c   :  { %7214 = vmatmul.msk.bf16.vlgmr.msra.gmra.mxu2 %vm1062_vm2, %v4446_v13 }
 0x96d   :  { %4676 = vmatpush.bf16.msra.mxu3 %v7278_v23  ;;  %v7290_v23 = vor.u32 %v8028_v36, %v7287_v40  ;;  %v7521_v36 = vld [vmem:[%s9424_s17 + $0x1d0] sm:$0xf]  ;;  %v8063_v40 = vld [vmem:[%s9424_s17 + $0x1d4] sm:$0xf0] }
 0x971   :  { %4677 = vmatpush.bf16.msra.mxu3 %v7270_v41  ;;  %v8026_v41 = vld [vmem:[%s9424_s17 + $0xb4] sm:$0xf] }
 0x9bf   :  { %v4044_v5 = vpop.f32.mrf.mxu1 }
 0x9c0   :  { %v4048_v27 = vadd.f32 %v4044_v5, %v3950_v1  ;;  %v7261_v1 = vld [vmem:[%s9424_s17 + $0x90] sm:$0xf]  ;;  %v7367_v5 = vld [vmem:[%s9424_s17 + $0x68] sm:$0xf0] }
 0x9c1   :  { %v7262_v19 = vor.u32 %v8023_v10, %v7261_v1  ;;  %v7346_v1 = vor.u32 %v8010_v38, %v7343_v3  ;;  %v8008_v10 = vld [vmem:[%s9424_s17 + $0x24] sm:$0xf]  ;;  %v7447_v38 = vld [vmem:[%s9424_s17 + $0x160] sm:$0xf]  ;;  %v8049_v3 = vld [vmem:[%s9424_s17 + $0x164] sm:$0xf0] }
 0x9c3   :  { %4678 = vmatpush.bf16.msra.mxu3 %v7262_v19  ;;  %v7335_v19 = vld [vmem:[%s9424_s17 + $0x28] sm:$0xf0] }
 0x9c7   :  { %v4046_v33 = vpop.f32.mrf.mxu1  ;;  %4679 = vmatpush.bf16.msra.mxu3 %v7254_v0  ;;  %v7333_v0 = vld [vmem:[%s9424_s17 + $0x20] sm:$0xf] }
 0x9c8   :  { %v7373_v33 = vld [vmem:[%s9424_s17 + $0x70] sm:$0xf] }
 0x9cf   :  { %v4142_v47 = vpop.f32.mrf.mxu3  ;;  %v4259_v61 = vpop.f32.mrf.mxu1 }
 0x9d0   :  { %v4146_v20 = vadd.f32 %v4142_v47, %v4048_v27  ;;  %v4263_v34 = vpack.c.bf16 %v4259_v61, %v4259_v61  ;;  %v7374_v61 = vor.u32 %v8019_v37, %v7373_v33  ;;  %v8020_v37 = vld [vmem:[%s9424_s17 + $0x84] sm:$0xf] }
 0x9d2   :  { %4337 = vmatmul.bf16.vlgmr.msrb.gmra.mxu0 %v4263_v34  ;;  %v7365_v34 = vld [vmem:[%s9424_s17 + $0x60] sm:$0xf] }
 0x9d7   :  { %v4144_v12 = vpop.f32.mrf.mxu3  ;;  %v4261_v15 = vpop.f32.mrf.mxu1 }
 0x9d8   :  { %v8017_v15 = vld [vmem:[%s9424_s17 + $0x64] sm:$0xf0] }
 0x9df   :  { %v4240_v35 = vpop.f32.mrf.mxu2  ;;  %v4357_v62 = vpop.f32.mrf.mxu3 }
 0x9e0   :  { %v4244_v39 = vadd.f32 %v4240_v35, %v4146_v20  ;;  %v4361_v6 = vpack.c.bf16 %v4357_v62, %v4357_v62  ;;  %v7311_v20 = vld [vmem:[%s9424_s17 + $0xf8] sm:$0xf0]  ;;  %v8032_v35 = vld [vmem:[%s9424_s17 + $0xe4] sm:$0xf]  ;;  %v7303_v62 = vld [vmem:[%s9424_s17 + $0xe8] sm:$0xf0] }
 0x9e1   :  { %v7314_v12 = vor.u32 %v8034_v18, %v7311_v20  ;;  %v7255_v18 = vld [vmem:[%s9424_s17 + $0x88] sm:$0xf0] }
 0x9e2   :  { %4435 = vmatmul.bf16.vlgmr.msrb.gmra.mxu1 %v4361_v6  ;;  %v8014_v6 = vld [vmem:[%s9424_s17 + $0x54] sm:$0xf] }
 0x9e3   :  { %4685 = vmatpush.bf16.msra.mxu1 %v7314_v12  ;;  %v7537_v12 = vld [vmem:[%s9424_s17 + $0x1f0] sm:$0xf] }
 0x9e7   :  { %v4242_v9 = vpop.f32.mrf.mxu2  ;;  %v4359_v28 = vpop.f32.mrf.mxu3 }
 0x9e8   :  { %v7359_v9 = vld [vmem:[%s9424_s17 + $0x58] sm:$0xf0]  ;;  %v7366_v28 = vor.u32 %v8017_v15, %v7365_v34  ;;  %v8067_v15 = vld [vmem:[%s9424_s17 + $0x1f4] sm:$0xf0] }
 0x9e9   :  { %v7362_v49 = vor.u32 %v8014_v6, %v7359_v9  ;;  %v8066_v6 = vld [vmem:[%s9424_s17 + $0x1f4] sm:$0xf]  ;;  %v7539_v9 = vld [vmem:[%s9424_s17 + $0x1f8] sm:$0xf0] }
 0x9ef   :  { %v4459_v29 = vpop.f32.mrf.mxu2 }
 0x9f0   :  { %v4463_v43 = vpack.c.bf16 %v4459_v29, %v4459_v29  ;;  %v7306_v29 = vor.u32 %v8032_v35, %v7303_v62  ;;  %v7538_v62 = vor.u32 %v8067_v15, %v7537_v12  ;;  %v7439_v12 = vld [vmem:[%s9424_s17 + $0x150] sm:$0xf]  ;;  %v8047_v15 = vld [vmem:[%s9424_s17 + $0x154] sm:$0xf0] }
 0x9f2   :  { %7231 = vmatmul.msk.bf16.vlgmr.msrb.gmra.mxu3 %vm1173_vm3, %v4463_v43  ;;  %v7357_v43 = vld [vmem:[%s9424_s17 + $0x50] sm:$0xf]  ;;  %4686 = vmatpush.bf16.msra.mxu1 %v7306_v29  ;;  %v8065_v29 = vld [vmem:[%s9424_s17 + $0x1e4] sm:$0xf0] }
 0x9f6   :  { %4687 = vmatpush.bf16.msra.mxu1 %v7298_v58  ;;  %v7460_v58 = vor.u32 %v8050_v51, %v7457_v56  ;;  %v8044_v51 = vld [vmem:[%s9424_s17 + $0x144] sm:$0xf] }
 0x9f7   :  { %v4461_v44 = vpop.f32.mrf.mxu2 }
 0x9f8   :  { %v8015_v44 = vld [vmem:[%s9424_s17 + $0x54] sm:$0xf0] }
 0x9f9   :  { %v7358_v57 = vor.u32 %v8015_v44, %v7357_v43  ;;  %v7542_v43 = vor.u32 %v8066_v6, %v7539_v9  ;;  %v7455_v44 = vld [vmem:[%s9424_s17 + $0x170] sm:$0xf]  ;;  %v7579_v6 = vld [vmem:[%s9428_s3 + $0x40] sm:$0xf]  ;;  %v8077_v9 = vld [vmem:[%s9428_s3 + $0x44] sm:$0xf0] }
 0x9fa   :  { %4688 = vmatpush.bf16.msra.mxu1 %v7290_v23  ;;  %v7448_v23 = vor.u32 %v8049_v3, %v7447_v38  ;;  %v7423_v3 = vld [vmem:[%s9424_s17 + $0x130] sm:$0xf] }
 0xa4f   :  { %v4338_v30 = vpop.f32.mrf.mxu0 }
 0xa50   :  { %v4342_v13 = vadd.f32 %v4338_v30, %v4244_v39  ;;  %v7370_v39 = vor.u32 %v8016_v17, %v7367_v5  ;;  %v7350_v30 = vor.u32 %v8013_v59, %v7349_v11  ;;  %v7317_v17 = vld [vmem:[%s9424_s17] sm:$0xf]  ;;  %v8005_v5 = vld [vmem:[%s9424_s17 + $0x4] sm:$0xf0]  ;;  %v7531_v11 = vld [vmem:[%s9424_s17 + $0x1e8] sm:$0xf0] }
 0xa57   :  { %v4340_v52 = vpop.f32.mrf.mxu0 }
 0xa58   :  { %v7279_v52 = vld [vmem:[%s9424_s17 + $0xb8] sm:$0xf0] }
 0xa59   :  { %v7282_v60 = vor.u32 %v8026_v41, %v7279_v52  ;;  %v7523_v41 = vld [vmem:[%s9424_s17 + $0x1d8] sm:$0xf0] }
 0xa5b   :  { %4689 = vmatpush.bf16.msra.mxu1 %v7282_v60  ;;  %v8061_v60 = vld [vmem:[%s9424_s17 + $0x1c4] sm:$0xf0] }
 0xa5f   :  { %v4436_v4 = vpop.f32.mrf.mxu1 }
 0xa60   :  { %v4440_v50 = vadd.f32 %v4436_v4, %v4342_v13  ;;  %v8009_v4 = vld [vmem:[%s9424_s17 + $0x24] sm:$0xf0]  ;;  %v8006_v13 = vld [vmem:[%s9424_s17 + $0x14] sm:$0xf] }
 0xa62   :  { %v4445_v16 = vadd.f32 %v8164_v22, %v4440_v50  ;;  %v7327_v50 = vld [vmem:[%s9424_s17 + $0x18] sm:$0xf0]  ;;  %v7334_v22 = vor.u32 %v8009_v4, %v7333_v0  ;;  %v7461_v0 = vld [vmem:[%s9427_s29 + $0x3] sm:$0x1] }
 0xa67   :  { %v4438_v54 = vpop.f32.mrf.mxu1 }
 0xa68   :  { %v7338_v54 = vor.u32 %v8008_v10, %v7335_v19  ;;  %v7522_v10 = vor.u32 %v8063_v40, %v7521_v36  ;;  %v7526_v19 = vor.u32 %v8062_v8, %v7523_v41  ;;  %v8056_v40 = vld [vmem:[%s9424_s17 + $0x1a4] sm:$0xf]  ;;  %v7425_v8 = vld [vmem:[%s9424_s17 + $0x138] sm:$0xf0]  ;;  %v7563_v41 = vld [vmem:[%s9428_s3 + $0x20] sm:$0xf] }
 0xa75   :  { %v4512_v46 = vpop.f32.mrf.mxu3 }
 0xa76   :  { %v4513_v25 = vadd.f32 %v8165_v24, %v4512_v46  ;;  %v7330_v24 = vor.u32 %v8006_v13, %v7327_v50  ;;  %v8004_v46 = vld [vmem:[%s9424_s17 + $0x4] sm:$0xf]  ;;  %v8059_v13 = vld [vmem:[%s9424_s17 + $0x1b4] sm:$0xf0]  ;;  %v7379_v50 = vld [vmem:[%s9427_s29 + $0x2] sm:$0x1] }
 0xa78   :  { %v4516_v31 = vadd.f32 %v4513_v25, %v4445_v16  ;;  %v7319_v16 = vld [vmem:[%s9424_s17 + $0x8] sm:$0xf0] }
 0xa79   :  { %v7322_v25 = vor.u32 %v8004_v46, %v7319_v16  ;;  %v8057_v46 = vld [vmem:[%s9424_s17 + $0x1a4] sm:$0xf0] }
 0xa7a   :  { %v4517_v2 = vmax.f32 %v4516_v31, 0.0  ;;  %v7325_v31 = vld [vmem:[%s9424_s17 + $0x10] sm:$0xf] }
 0xa7b   :  { %v7326_v32 = vor.u32 %v8007_v63, %v7325_v31  ;;  %v8055_v31 = vld [vmem:[%s9424_s17 + $0x194] sm:$0xf0] }
 0xa7c   :  { %v4518_v55 = vpack.c.bf16 %v4517_v2, %v4517_v2  ;;  %v8024_v2 = vld [vmem:[%s9424_s17 + $0xa4] sm:$0xf] }
 0xa7d   :  { %v4514_v27 = vpop.f32.mrf.mxu3 }
 0xa7e   :  { %v9178_v47 = vsel %vm3563_vm4, %v4518_v55, 0  ;;  %v7271_v55 = vld [vmem:[%s9424_s17 + $0xa8] sm:$0xf0]  ;;  %v7318_v27 = vor.u32 %v8005_v5, %v7317_v17 }
 0xa7f   :  { %4533 = vmatpush.bf16.msra.mxu0 %v9178_v47  ;;  %4568 = vmatpush.bf16.msrb.mxu2 %v9178_v47 }
 0xa80   :  { %4816 = vmatpush.bf16.msrb.mxu3 %v9178_v47 }
 0xa82   :  { %7232 = vmatmul.msk.bf16.vlgmr.msra.gmra.mxu0 %vm3559_vm5, %v4519_v21  ;;  %7234 = vmatmul.msk.bf16.vlgmr.msrb.gmra.mxu2 %vm3559_vm5, %v7233_v42  ;;  %v8022_v21 = vld [vmem:[%s9424_s17 + $0x94] sm:$0xf]  ;;  %v7263_v42 = vld [vmem:[%s9424_s17 + $0x98] sm:$0xf0] }
 0xa83   :  { %4791 = vmatpush.bf16.msra.mxu2 %v7378_v14  ;;  %4778 = vmatpush.bf16.msrb.mxu0 %v7374_v61  ;;  %v7274_v14 = vor.u32 %v8024_v2, %v7271_v55  ;;  %v7266_v33 = vor.u32 %v8022_v21, %v7263_v42  ;;  %v7258_v61 = vor.u32 %v8020_v37, %v7255_v18  ;;  %v8053_v2 = vld [vmem:[%s9424_s17 + $0x184] sm:$0xf0]  ;;  %v7603_v55 = vld [vmem:[%s9428_s3 + $0x70] sm:$0xf]  ;;  %v8079_v37 = vld [vmem:[%s9428_s3 + $0x54] sm:$0xf0] }
 0xa84   :  { %v8081_v21 = vld [vmem:[%s9428_s3 + $0x64] sm:$0xf0] }
 0xa85   :  { %4690 = vmatpush.bf16.msra.mxu1 %v7274_v14  ;;  %v8083_v14 = vld [vmem:[%s9428_s3 + $0x74] sm:$0xf0] }
 0xa86   :  { %v7604_v5 = vor.u32 %v8083_v14, %v7603_v55  ;;  %v8038_v55 = vld [vmem:[%s9424_s17 + $0x114] sm:$0xf] }
 0xa87   :  { %4792 = vmatpush.bf16.msra.mxu2 %v7370_v39  ;;  %4779 = vmatpush.bf16.msrb.mxu0 %v7366_v28  ;;  %v7529_v39 = vld [vmem:[%s9424_s17 + $0x1e0] sm:$0xf] }
 0xa88   :  { %v7530_v59 = vor.u32 %v8065_v29, %v7529_v39  ;;  %v7441_v39 = vld [vmem:[%s9424_s17 + $0x158] sm:$0xf0]  ;;  %v7580_v29 = vor.u32 %v8077_v9, %v7579_v6 }
 0xa89   :  { %4691 = vmatpush.bf16.msra.mxu1 %v7266_v33  ;;  %v7587_v33 = vld [vmem:[%s9428_s3 + $0x50] sm:$0xf] }
 0xa8a   :  { %v7588_v18 = vor.u32 %v8079_v37, %v7587_v33  ;;  %v7399_v33 = vld [vmem:[%s9424_s17 + $0x100] sm:$0xf]  ;;  %v8037_v37 = vld [vmem:[%s9424_s17 + $0x104] sm:$0xf0] }
 0xa8b   :  { %4793 = vmatpush.bf16.msra.mxu2 %v7362_v49  ;;  %4780 = vmatpush.bf16.msrb.mxu0 %v7358_v57  ;;  %v7456_v49 = vor.u32 %v8051_v45, %v7455_v44  ;;  %v8064_v57 = vld [vmem:[%s9424_s17 + $0x1e4] sm:$0xf]  ;;  %v7507_v44 = vld [vmem:[%s9424_s17 + $0x1b8] sm:$0xf0] }
 0xa8d   :  { %4692 = vmatpush.bf16.msra.mxu1 %v7258_v61  ;;  %v8060_v61 = vld [vmem:[%s9424_s17 + $0x1c4] sm:$0xf] }
 0xa8f   :  { %4794 = vmatpush.bf16.msra.mxu2 %v7354_v26  ;;  %4781 = vmatpush.bf16.msrb.mxu0 %v7350_v30  ;;  %v7534_v26 = vor.u32 %v8064_v57, %v7531_v11  ;;  %v8048_v30 = vld [vmem:[%s9424_s17 + $0x164] sm:$0xf]  ;;  %v7433_v57 = vld [vmem:[%s9424_s17 + $0x148] sm:$0xf0]  ;;  %v8075_v11 = vld [vmem:[%s9428_s3 + $0x34] sm:$0xf0] }
 0xa90   :  { %v7452_v52 = vor.u32 %v8048_v30, %v7449_v7  ;;  %v8043_v30 = vld [vmem:[%s9424_s17 + $0x134] sm:$0xf0] }
 0xa91   :  { %4920 = vmatpush.bf16.msrb.mxu1 %v7456_v49  ;;  %v8045_v49 = vld [vmem:[%s9424_s17 + $0x144] sm:$0xf0]  ;;  %v7424_v7 = vor.u32 %v8043_v30, %v7423_v3 }
 0xa93   :  { %4795 = vmatpush.bf16.msra.mxu2 %v7346_v1  ;;  %4782 = vmatpush.bf16.msrb.mxu0 %v7342_v53  ;;  %v7513_v53 = vld [vmem:[%s9424_s17 + $0x1c0] sm:$0xf] }
 0xa94   :  { %v7514_v4 = vor.u32 %v8061_v60, %v7513_v53  ;;  %v7491_v53 = vld [vmem:[%s9424_s17 + $0x198] sm:$0xf0] }
 0xa95   :  { %4921 = vmatpush.bf16.msrb.mxu1 %v7448_v23  ;;  %v8042_v23 = vld [vmem:[%s9424_s17 + $0x134] sm:$0xf] }
 0xa97   :  { %4796 = vmatpush.bf16.msra.mxu2 %v7338_v54  ;;  %4783 = vmatpush.bf16.msrb.mxu0 %v7334_v22  ;;  %v7505_v54 = vld [vmem:[%s9424_s17 + $0x1b0] sm:$0xf] }
 0xa98   :  { %v7506_v22 = vor.u32 %v8059_v13, %v7505_v54  ;;  %v8040_v54 = vld [vmem:[%s9424_s17 + $0x124] sm:$0xf] }
 0xa9b   :  { %4797 = vmatpush.bf16.msra.mxu2 %v7330_v24  ;;  %4784 = vmatpush.bf16.msrb.mxu0 %v7326_v32  ;;  %v7497_v24 = vld [vmem:[%s9424_s17 + $0x1a0] sm:$0xf] }
 0xa9c   :  { %v7498_v16 = vor.u32 %v8057_v46, %v7497_v24  ;;  %v7481_v32 = vld [vmem:[%s9424_s17 + $0x180] sm:$0xf]  ;;  %v8071_v24 = vld [vmem:[%s9428_s3 + $0x14] sm:$0xf0] }
 0xa9d   :  { %v7482_v17 = vor.u32 %v8053_v2, %v7481_v32  ;;  %v7407_v32 = vld [vmem:[%s9424_s17 + $0x110] sm:$0xf]  ;;  %v8039_v2 = vld [vmem:[%s9424_s17 + $0x114] sm:$0xf0] }
 0xa9e   :  { %v7408_v14 = vor.u32 %v8039_v2, %v7407_v32  ;;  %v5104_v2 = vld [vmem:[%s9430_s14] sm:$0x1] }
 0xa9f   :  { %4798 = vmatpush.bf16.msra.mxu2 %v7322_v25  ;;  %4785 = vmatpush.bf16.msrb.mxu0 %v7318_v27  ;;  %v7489_v25 = vld [vmem:[%s9424_s17 + $0x190] sm:$0xf]  ;;  %v7595_v27 = vld [vmem:[%s9428_s3 + $0x60] sm:$0xf] }
 0xaa0   :  { %v7490_v63 = vor.u32 %v8055_v31, %v7489_v25  ;;  %v7596_v42 = vor.u32 %v8081_v21, %v7595_v27  ;;  %v8052_v25 = vld [vmem:[%s9424_s17 + $0x184] sm:$0xf]  ;;  %v7483_v31 = vld [vmem:[%s9424_s17 + $0x188] sm:$0xf0]  ;;  %v8069_v27 = vld [vmem:[%s9428_s3 + $0x4] sm:$0xf0] }
 0xaa3   :  { %4960 = vmatpush.bf16.msrb.mxu2 %v9178_v47  ;;  %4933 = vmatpush.bf16.msra.mxu0 %v7460_v58  ;;  %v7571_v58 = vld [vmem:[%s9428_s3 + $0x30] sm:$0xf] }
 0xaa4   :  { %v7572_v36 = vor.u32 %v8075_v11, %v7571_v58  ;;  %v7669_v58 = vld [vmem:[%s9428_s3 + $0xf8] sm:$0xf0] }
 0xaa7   :  { %4934 = vmatpush.bf16.msra.mxu0 %v7452_v52  ;;  %v8073_v52 = vld [vmem:[%s9428_s3 + $0x24] sm:$0xf0] }
 0xaff   :  { %v4535_v20 = vpop.f32.mrf.mxu0 }
 0xb00   :  { %v4539_v34 = vpack.c.bf16 %v4535_v20, %v4535_v20  ;;  %v7515_v20 = vld [vmem:[%s9424_s17 + $0x1c8] sm:$0xf0] }
 0xb02   :  { %4799 = vmatmul.bf16.vlgmr.msra.gmra.mxu2 %v4539_v34  ;;  %4786 = vmatmul.bf16.vlgmr.msrb.gmra.mxu0 %v4539_v34  ;;  %v7518_v34 = vor.u32 %v8060_v61, %v7515_v20  ;;  %v7400_v61 = vor.u32 %v8037_v37, %v7399_v33  ;;  %v7401_v20 = vld [vmem:[%s9424_s17 + $0x108] sm:$0xf0]  ;;  %v8099_v37 = vld [vmem:[%s9428_s3 + $0xf4] sm:$0xf0] }
 0xb03   :  { %5077 = vmatpush.bf16.msra.mxu2 %v7542_v43  ;;  %v8058_v43 = vld [vmem:[%s9424_s17 + $0x1b4] sm:$0xf] }
 0xb04   :  { %v7510_v45 = vor.u32 %v8058_v43, %v7507_v44 }
 0xb05   :  { %v4570_v35 = vpop.f32.mrf.mxu2 }
 0xb06   :  { %v4574_v28 = vpack.c.bf16 %v4570_v35, %v4570_v35  ;;  %v8046_v35 = vld [vmem:[%s9424_s17 + $0x154] sm:$0xf] }
 0xb07   :  { %v4537_v48 = vpop.f32.mrf.mxu0  ;;  %5078 = vmatpush.bf16.msra.mxu2 %v7534_v26  ;;  %v7499_v26 = vld [vmem:[%s9424_s17 + $0x1a8] sm:$0xf0] }
 0xb08   :  { %4680 = vmatmul.bf16.vlgmr.msra.gmra.mxu3 %v4574_v28  ;;  %4693 = vmatmul.bf16.vlgmr.msra.gmra.mxu1 %v4574_v28  ;;  %v7444_v28 = vor.u32 %v8046_v35, %v7441_v39  ;;  %v7431_v48 = vld [vmem:[%s9424_s17 + $0x140] sm:$0xf]  ;;  %v7502_v38 = vor.u32 %v8056_v40, %v7499_v26 }
 0xb09   :  { %5064 = vmatpush.bf16.msra.mxu3 %v7538_v62  ;;  %v7440_v62 = vor.u32 %v8047_v15, %v7439_v12  ;;  %v7432_v56 = vor.u32 %v8045_v49, %v7431_v48  ;;  %v5092_v26 = vld [vmem:[%s9429_s8] sm:$0x3] }
 0xb0a   :  { %4935 = vmatpush.bf16.msra.mxu0 %v7444_v28 }
 0xb0b   :  { %5079 = vmatpush.bf16.msra.mxu2 %v7526_v19  ;;  %4922 = vmatpush.bf16.msrb.mxu1 %v7440_v62  ;;  %v8054_v19 = vld [vmem:[%s9424_s17 + $0x194] sm:$0xf] }
 0xb0c   :  { %v7494_v60 = vor.u32 %v8054_v19, %v7491_v53  ;;  %v8082_v53 = vld [vmem:[%s9428_s3 + $0x74] sm:$0xf] }
 0xb0d   :  { %v4572_v1 = vpop.f32.mrf.mxu2  ;;  %5065 = vmatpush.bf16.msra.mxu3 %v7530_v59  ;;  %v7436_v59 = vor.u32 %v8044_v51, %v7433_v57  ;;  %v8098_v57 = vld [vmem:[%s9428_s3 + $0xf4] sm:$0xf] }
 0xb0e   :  { %v7428_v1 = vor.u32 %v8042_v23, %v7425_v8  ;;  %v7672_v11 = vor.u32 %v8098_v57, %v7669_v58  ;;  %v7565_v57 = vld [vmem:[%s9428_s3 + $0x28] sm:$0xf0]  ;;  %v8088_v58 = vld [vmem:[%s9428_s3 + $0xa4] sm:$0xf] }
 0xb0f   :  { %5080 = vmatpush.bf16.msra.mxu2 %v7518_v34  ;;  %4923 = vmatpush.bf16.msrb.mxu1 %v7432_v56 }
 0xb10   :  { %4936 = vmatpush.bf16.msra.mxu0 %v7436_v59  ;;  %v8096_v59 = vld [vmem:[%s9428_s3 + $0xe4] sm:$0xf] }
 0xb11   :  { %5066 = vmatpush.bf16.msra.mxu3 %v7522_v10  ;;  %v7564_v10 = vor.u32 %v8073_v52, %v7563_v41  ;;  %v5095_v41 = vperm.slane %v5092_v26, 1 }
 0xb12   :  { %7462 = vmatmul.msk.bf16.vlgmr.msrb.gmra.mxu2 %vm3559_vm5, %v7461_v0  ;;  %v7415_v0 = vld [vmem:[%s9424_s17 + $0x120] sm:$0xf] }
 0xb13   :  { %5081 = vmatpush.bf16.msra.mxu2 %v7510_v45  ;;  %4924 = vmatpush.bf16.msrb.mxu1 %v7424_v7  ;;  %v5094_v7 = vperm.slane %v5092_v26, 0 }
 0xb14   :  { %4937 = vmatpush.bf16.msra.mxu0 %v7428_v1 }
 0xb15   :  { %5067 = vmatpush.bf16.msra.mxu3 %v7514_v4  ;;  %v8041_v4 = vld [vmem:[%s9424_s17 + $0x124] sm:$0xf0] }
 0xb16   :  { %v7416_v13 = vor.u32 %v8041_v4, %v7415_v0 }
 0xb17   :  { %5082 = vmatpush.bf16.msra.mxu2 %v7502_v38 }
 0xb18   :  { %7380 = vmatmul.msk.bf16.vlgmr.msrb.gmra.mxu3 %vm3559_vm5, %v7379_v50  ;;  %v7417_v50 = vld [vmem:[%s9424_s17 + $0x128] sm:$0xf0]  ;;  %4925 = vmatpush.bf16.msrb.mxu1 %v7416_v13 }
 0xb19   :  { %5068 = vmatpush.bf16.msra.mxu3 %v7506_v22  ;;  %v7555_v22 = vld [vmem:[%s9428_s3 + $0x10] sm:$0xf]  ;;  %v7420_v46 = vor.u32 %v8040_v54, %v7417_v50 }
 0xb1b   :  { %5083 = vmatpush.bf16.msra.mxu2 %v7494_v60  ;;  %4938 = vmatpush.bf16.msra.mxu0 %v7420_v46  ;;  %v7605_v60 = vld [vmem:[%s9428_s3 + $0x78] sm:$0xf0] }
 0xb1c   :  { %4926 = vmatpush.bf16.msrb.mxu1 %v7408_v14  ;;  %v8078_v14 = vld [vmem:[%s9428_s3 + $0x54] sm:$0xf] }
 0xb1d   :  { %5069 = vmatpush.bf16.msra.mxu3 %v7498_v16  ;;  %v7556_v16 = vor.u32 %v8071_v24, %v7555_v22 }
 0xb20   :  { %4927 = vmatpush.bf16.msrb.mxu1 %v7400_v61  ;;  %v8076_v61 = vld [vmem:[%s9428_s3 + $0x44] sm:$0xf] }
 0xb21   :  { %5070 = vmatpush.bf16.msra.mxu3 %v7490_v63  ;;  %v7486_v63 = vor.u32 %v8052_v25, %v7483_v31  ;;  %v8080_v25 = vld [vmem:[%s9428_s3 + $0x64] sm:$0xf]  ;;  %v7597_v31 = vld [vmem:[%s9428_s3 + $0x68] sm:$0xf0] }
 0xb23   :  { %5084 = vmatpush.bf16.msra.mxu2 %v7486_v63 }
 0xb25   :  { %5071 = vmatpush.bf16.msra.mxu3 %v7482_v17  ;;  %v7409_v17 = vld [vmem:[%s9424_s17 + $0x118] sm:$0xf0] }
 0xb26   :  { %v7412_v21 = vor.u32 %v8038_v55, %v7409_v17  ;;  %v7600_v55 = vor.u32 %v8080_v25, %v7597_v31  ;;  %v7589_v17 = vld [vmem:[%s9428_s3 + $0x58] sm:$0xf0]  ;;  %v8085_v25 = vld [vmem:[%s9428_s3 + $0x84] sm:$0xf0] }
 0xb27   :  { %5381 = vmatpush.bf16.msrb.mxu2 %v7672_v11 }
 0xb28   :  { %4939 = vmatpush.bf16.msra.mxu0 %v7412_v21  ;;  %v7653_v21 = vld [vmem:[%s9428_s3 + $0xd8] sm:$0xf0] }
 0xb29   :  { %5342 = vmatpush.bf16.msrb.mxu3 %v7604_v5  ;;  %v7547_v5 = vld [vmem:[%s9428_s3] sm:$0xf] }
 0xb2d   :  { %5343 = vmatpush.bf16.msrb.mxu3 %v7596_v42  ;;  %v7548_v42 = vor.u32 %v8069_v27, %v7547_v5  ;;  %v7592_v5 = vor.u32 %v8078_v14, %v7589_v17  ;;  %v8094_v27 = vld [vmem:[%s9428_s3 + $0xd4] sm:$0xf]  ;;  %v7734_v14 = vld [vmem:[%s8366_s6 + $0x78] sm:$0xf0]  ;;  %v7724_v17 = vld [vmem:[%s8366_s6 + $0x60] sm:$0xf] }
 0xb2e   :  { %v7656_v33 = vor.u32 %v8094_v27, %v7653_v21  ;;  %v8112_v21 = vld [vmem:[%s8366_s6 + $0x64] sm:$0xf] }
 0xb31   :  { %5344 = vmatpush.bf16.msrb.mxu3 %v7588_v18  ;;  %v8036_v18 = vld [vmem:[%s9424_s17 + $0x104] sm:$0xf] }
 0xb32   :  { %v7404_v34 = vor.u32 %v8036_v18, %v7401_v20  ;;  %v7581_v20 = vld [vmem:[%s9428_s3 + $0x48] sm:$0xf0] }
 0xb34   :  { %4940 = vmatpush.bf16.msra.mxu0 %v7404_v34  ;;  %v8092_v34 = vld [vmem:[%s9428_s3 + $0xc4] sm:$0xf] }
 0xb35   :  { %5345 = vmatpush.bf16.msrb.mxu3 %v7580_v29 }
 0xb39   :  { %5346 = vmatpush.bf16.msrb.mxu3 %v7572_v36  ;;  %v7661_v36 = vld [vmem:[%s9428_s3 + $0xe8] sm:$0xf0] }
 0xb3a   :  { %v7664_v40 = vor.u32 %v8096_v59, %v7661_v36  ;;  %v7629_v59 = vld [vmem:[%s9428_s3 + $0xa8] sm:$0xf0]  ;;  %v7643_v36 = vld [vmem:[%s9428_s3 + $0xc0] sm:$0xf] }
 0xb3b   :  { %v7632_v26 = vor.u32 %v8088_v58, %v7629_v59  ;;  %v8106_v58 = vld [vmem:[%s8366_s6 + $0x34] sm:$0xf]  ;;  %v7702_v59 = vld [vmem:[%s8366_s6 + $0x38] sm:$0xf0] }
 0xb3c   :  { %5382 = vmatpush.bf16.msrb.mxu2 %v7664_v40  ;;  %v8093_v40 = vld [vmem:[%s9428_s3 + $0xc4] sm:$0xf0] }
 0xb3d   :  { %5347 = vmatpush.bf16.msrb.mxu3 %v7564_v10 }
 0xb40   :  { %5383 = vmatpush.bf16.msrb.mxu2 %v7656_v33 }
 0xb41   :  { %5348 = vmatpush.bf16.msrb.mxu3 %v7556_v16  ;;  %v7608_v16 = vor.u32 %v8082_v53, %v7605_v60  ;;  %v8084_v53 = vld [vmem:[%s9428_s3 + $0x84] sm:$0xf] }
 0xb45   :  { %5349 = vmatpush.bf16.msrb.mxu3 %v7548_v42  ;;  %v7667_v42 = vld [vmem:[%s9428_s3 + $0xf0] sm:$0xf] }
 0xb46   :  { %v7668_v18 = vor.u32 %v8099_v37, %v7667_v42  ;;  %v7726_v42 = vld [vmem:[%s8366_s6 + $0x68] sm:$0xf0] }
 0xb47   :  { %v7729_v37 = vor.u32 %v8112_v21, %v7726_v42  ;;  %v5428_v42 = vld [vmem:[%s8371_s27] sm:$0x3]  ;;  %s8182_s27 = scalar_lea.hbm %s8376_s4, 4 }
 0xb7f   :  { %v4787_v12 = vpop.f32.mrf.mxu0 }
 0xb85   :  { %v4800_v15 = vpop.f32.mrf.mxu2  ;;  %v4694_v35 = vpop.f32.mrf.mxu1 }
 0xb86   :  { %v4801_v62 = vadd.f32 %v4800_v15, %v4694_v35  ;;  %v7645_v15 = vld [vmem:[%s9428_s3 + $0xc8] sm:$0xf0]  ;;  %v7659_v35 = vld [vmem:[%s9428_s3 + $0xe0] sm:$0xf] }
 0xb87   :  { %v4789_v39 = vpop.f32.mrf.mxu0 }
 0xb88   :  { %v7648_v39 = vor.u32 %v8092_v34, %v7645_v15  ;;  %v7718_v34 = vld [vmem:[%s8366_s6 + $0x58] sm:$0xf0] }
 0xb8a   :  { %5384 = vmatpush.bf16.msrb.mxu2 %v7648_v39 }
 0xb8b   :  { %v4681_v6 = vpop.f32.mrf.mxu3 }
 0xb8c   :  { %v4788_v9 = vadd.f32 %v4787_v12, %v4681_v6  ;;  %v7584_v12 = vor.u32 %v8076_v61, %v7581_v20  ;;  %v8111_v61 = vld [vmem:[%s8366_s6 + $0x54] sm:$0xf0]  ;;  %v8110_v20 = vld [vmem:[%s8366_s6 + $0x54] sm:$0xf] }
 0xb8d   :  { %v4802_v28 = vpop.f32.mrf.mxu2  ;;  %v4696_v29 = vpop.f32.mrf.mxu1  ;;  %v7721_v15 = vor.u32 %v8110_v20, %v7718_v34 }
 0xb8e   :  { %v7573_v28 = vld [vmem:[%s9428_s3 + $0x38] sm:$0xf0]  ;;  %v8090_v29 = vld [vmem:[%s9428_s3 + $0xb4] sm:$0xf] }
 0xb93   :  { %v4683_v43 = vpop.f32.mrf.mxu3 }
 0xb95   :  { %v4962_v44 = vpop.f32.mrf.mxu2 }
 0xb96   :  { %v4966_v45 = vpack.c.bf16 %v4962_v44, %v4962_v44  ;;  %v7637_v44 = vld [vmem:[%s9428_s3 + $0xb8] sm:$0xf0] }
 0xb98   :  { %5072 = vmatmul.bf16.vlgmr.msra.gmra.mxu3 %v4966_v45  ;;  %5085 = vmatmul.bf16.vlgmr.msra.gmra.mxu2 %v4966_v45  ;;  %v7651_v45 = vld [vmem:[%s9428_s3 + $0xd0] sm:$0xf] }
 0xb99   :  { %5405 = vmatpush.bf16.msra.mxu3 %v9178_v47 }
 0xb9b   :  { %v4818_v48 = vpop.f32.mrf.mxu3 }
 0xb9c   :  { %v4822_v49 = vpack.c.bf16 %v4818_v48, %v4818_v48  ;;  %v8095_v48 = vld [vmem:[%s9428_s3 + $0xd4] sm:$0xf0] }
 0xb9d   :  { %v4964_v51 = vpop.f32.mrf.mxu2 }
 0xb9e   :  { %4928 = vmatmul.bf16.vlgmr.msrb.gmra.mxu1 %v4822_v49  ;;  %4941 = vmatmul.bf16.vlgmr.msra.gmra.mxu0 %v4822_v49  ;;  %v7640_v49 = vor.u32 %v8090_v29, %v7637_v44  ;;  %v7652_v51 = vor.u32 %v8095_v48, %v7651_v45  ;;  %v5394_v29 = vld [vmem:[%s8361_s12] sm:$0x1]  ;;  %v8109_v44 = vld [vmem:[%s8366_s6 + $0x44] sm:$0xf0]  ;;  %v8108_v45 = vld [vmem:[%s8366_s6 + $0x44] sm:$0xf] }
 0xba0   :  { %5385 = vmatpush.bf16.msrb.mxu2 %v7640_v49  ;;  %v7710_v49 = vld [vmem:[%s8366_s6 + $0x48] sm:$0xf0] }
 0xba3   :  { %v4820_v56 = vpop.f32.mrf.mxu3 }
 0xba4   :  { %v8072_v56 = vld [vmem:[%s9428_s3 + $0x24] sm:$0xf]  ;;  %5386 = vmatpush.bf16.msrb.mxu2 %v7632_v26  ;;  %v8105_v26 = vld [vmem:[%s8366_s6 + $0x24] sm:$0xf0] }
 0xba5   :  { %v7568_v11 = vor.u32 %v8072_v56, %v7565_v57  ;;  %v7700_v56 = vld [vmem:[%s8366_s6 + $0x30] sm:$0xf]  ;;  %v8107_v57 = vld [vmem:[%s8366_s6 + $0x34] sm:$0xf0] }
 0xc1b   :  { %v4929_v38 = vpop.f32.mrf.mxu1  ;;  %v4942_v3 = vpop.f32.mrf.mxu0 }
 0xc1c   :  { %v4946_v47 = vadd.f32 %v4929_v38, %v4788_v9  ;;  %v4947_v30 = vadd.f32 %v4942_v3, %v4801_v62  ;;  %v5073_v23 = vpop.f32.mrf.mxu3  ;;  %v5086_v8 = vpop.f32.mrf.mxu2  ;;  %v8097_v62 = vld [vmem:[%s9428_s3 + $0xe4] sm:$0xf0]  ;;  %v8074_v9 = vld [vmem:[%s9428_s3 + $0x34] sm:$0xf]  ;;  %v7644_v38 = vor.u32 %v8093_v40, %v7643_v36  ;;  %v7705_v36 = vor.u32 %v8106_v58, %v7702_v59  ;;  %v7692_v40 = vld [vmem:[%s8366_s6 + $0x20] sm:$0xf] }
 0xc1d   :  { %v7660_v6 = vor.u32 %v8097_v62, %v7659_v35  ;;  %v7576_v43 = vor.u32 %v8074_v9, %v7573_v28  ;;  %v8070_v3 = vld [vmem:[%s9428_s3 + $0x14] sm:$0xf] }
 0xc1e   :  { %v5090_v52 = vadd.f32 %v5073_v23, %v4946_v47  ;;  %v5091_v1 = vadd.f32 %v5086_v8, %v4947_v30  ;;  %v7557_v47 = vld [vmem:[%s9428_s3 + $0x18] sm:$0xf0]  ;;  %v8086_v30 = vld [vmem:[%s9428_s3 + $0x94] sm:$0xf]  ;;  %v7635_v8 = vld [vmem:[%s9428_s3 + $0xb0] sm:$0xf] }
 0xc1f   :  { %v7560_v23 = vor.u32 %v8070_v3, %v7557_v47  ;;  %v7693_v3 = vor.u32 %v8105_v26, %v7692_v40  ;;  %v7694_v47 = vld [vmem:[%s8366_s6 + $0x28] sm:$0xf0] }
 0xc20   :  { %v5098_v10 = vadd.f32 %v5094_v7, %v5090_v52  ;;  %v5099_v19 = vadd.f32 %v5095_v41, %v5091_v1  ;;  %v7621_v7 = vld [vmem:[%s9428_s3 + $0x98] sm:$0xf0]  ;;  %v8091_v41 = vld [vmem:[%s9428_s3 + $0xb4] sm:$0xf0] }
 0xc21   :  { %v7624_v52 = vor.u32 %v8086_v30, %v7621_v7  ;;  %v7636_v1 = vor.u32 %v8091_v41, %v7635_v8  ;;  %v8103_v7 = vld [vmem:[%s8366_s6 + $0x14] sm:$0xf0]  ;;  %v8102_v8 = vld [vmem:[%s8366_s6 + $0x14] sm:$0xf] }
 0xc22   :  { %v5100_v0 = vmax.f32 %v5098_v10, 0.0  ;;  %v5101_v4 = vmax.f32 %v5099_v19, 0.0  ;;  %v8068_v10 = vld [vmem:[%s9428_s3 + $0x4] sm:$0xf]  ;;  %v7549_v19 = vld [vmem:[%s9428_s3 + $0x8] sm:$0xf0] }
 0xc23   :  { %v4931_v54 = vpop.f32.mrf.mxu1  ;;  %v4944_v13 = vpop.f32.mrf.mxu0  ;;  %5387 = vmatpush.bf16.msrb.mxu2 %v7624_v52  ;;  %v7552_v60 = vor.u32 %v8068_v10, %v7549_v19  ;;  %v7686_v52 = vld [vmem:[%s8366_s6 + $0x18] sm:$0xf0]  ;;  %v7676_v10 = vld [vmem:[%s8366_s6] sm:$0xf]  ;;  %v8101_v19 = vld [vmem:[%s8366_s6 + $0x4] sm:$0xf0] }
 0xc24   :  { %v5102_v50 = vpack.c.bf16 %v5100_v0, %v5100_v0  ;;  %v5103_v22 = vpack.c.bf16 %v5101_v4, %v5101_v4  ;;  %v5075_v24 = vpop.f32.mrf.mxu3  ;;  %v5088_v46 = vpop.f32.mrf.mxu2  ;;  %v7613_v0 = vld [vmem:[%s9428_s3 + $0x88] sm:$0xf0]  ;;  %v7627_v4 = vld [vmem:[%s9428_s3 + $0xa0] sm:$0xf]  ;;  %v8089_v54 = vld [vmem:[%s9428_s3 + $0xa4] sm:$0xf0] }
 0xc25   :  { %v7616_v13 = vor.u32 %v8084_v53, %v7613_v0  ;;  %v8087_v24 = vld [vmem:[%s9428_s3 + $0x94] sm:$0xf0]  ;;  %v8100_v53 = vld [vmem:[%s8366_s6 + $0x4] sm:$0xf]  ;;  %v7678_v0 = vld [vmem:[%s8366_s6 + $0x8] sm:$0xf0] }
 0xc26   :  { %v5111_v63 = vsel %vm5109_vm6, %v5102_v50, 0  ;;  %v5114_v32 = vsel %vm5109_vm6, %v5103_v22, 0  ;;  %v7628_v50 = vor.u32 %v8089_v54, %v7627_v4  ;;  %v7619_v22 = vld [vmem:[%s9428_s3 + $0x90] sm:$0xf]  ;;  %v7681_v4 = vor.u32 %v8100_v53, %v7678_v0  ;;  %v5176_v54 = vld [vmem:[%s9431_s19] sm:$0x3] }
 0xc27   :  { %5123 = vmatpush.bf16.msra.mxu1 %v5111_v63  ;;  %5136 = vmatpush.bf16.msrb.mxu0 %v5114_v32  ;;  %v7620_v46 = vor.u32 %v8087_v24, %v7619_v22  ;;  %v7732_v63 = vld [vmem:[%s8366_s6 + $0x70] sm:$0xf]  ;;  %v8115_v32 = vld [vmem:[%s8366_s6 + $0x74] sm:$0xf0]  ;;  %v5179_v22 = vperm.slane %v5176_v54, 1  ;;  %v5178_v24 = vperm.slane %v5176_v54, 0 }
 0xc28   :  { %5388 = vmatpush.bf16.msrb.mxu2 %v7616_v13 }
 0xc2a   :  { %7543 = vmatmul.msk.bf16.vlgmr.msra.gmra.mxu1 %vm5105_vm7, %v5104_v2  ;;  %7544 = vmatmul.msk.bf16.vlgmr.msrb.gmra.mxu0 %vm5105_vm7, %v5104_v2  ;;  %v8114_v2 = vld [vmem:[%s8366_s6 + $0x74] sm:$0xf] }
 0xc2b   :  { %5368 = vmatpush.bf16.msra.mxu0 %v7608_v16  ;;  %5355 = vmatpush.bf16.msrb.mxu1 %v7668_v18  ;;  %v7611_v16 = vld [vmem:[%s9428_s3 + $0x80] sm:$0xf]  ;;  %v7737_v27 = vor.u32 %v8114_v2, %v7734_v14  ;;  %v7716_v18 = vld [vmem:[%s8366_s6 + $0x50] sm:$0xf] }
 0xc2c   :  { %v7612_v31 = vor.u32 %v8085_v25, %v7611_v16 }
 0xc2f   :  { %5369 = vmatpush.bf16.msra.mxu0 %v7600_v55  ;;  %5356 = vmatpush.bf16.msrb.mxu1 %v7660_v6  ;;  %v7733_v55 = vor.u32 %v8115_v32, %v7732_v63 }
 0xc33   :  { %5370 = vmatpush.bf16.msra.mxu0 %v7592_v5  ;;  %5357 = vmatpush.bf16.msrb.mxu1 %v7652_v51  ;;  %v8113_v5 = vld [vmem:[%s8366_s6 + $0x64] sm:$0xf0]  ;;  %v7713_v51 = vor.u32 %v8108_v45, %v7710_v49 }
 0xc34   :  { %v7725_v33 = vor.u32 %v8113_v5, %v7724_v17 }
 0xc37   :  { %5371 = vmatpush.bf16.msra.mxu0 %v7584_v12  ;;  %5358 = vmatpush.bf16.msrb.mxu1 %v7644_v38  ;;  %v7717_v12 = vor.u32 %v8111_v61, %v7716_v18  ;;  %v8104_v38 = vld [vmem:[%s8366_s6 + $0x24] sm:$0xf] }
 0xc38   :  { %v7697_v30 = vor.u32 %v8104_v38, %v7694_v47 }
 0xc3b   :  { %5372 = vmatpush.bf16.msra.mxu0 %v7576_v43  ;;  %5359 = vmatpush.bf16.msrb.mxu1 %v7636_v1  ;;  %v7708_v43 = vld [vmem:[%s8366_s6 + $0x40] sm:$0xf]  ;;  %v7689_v1 = vor.u32 %v8102_v8, %v7686_v52 }
 0xc3c   :  { %v7709_v48 = vor.u32 %v8109_v44, %v7708_v43 }
 0xc3f   :  { %5373 = vmatpush.bf16.msra.mxu0 %v7568_v11  ;;  %5360 = vmatpush.bf16.msrb.mxu1 %v7628_v50  ;;  %v7701_v11 = vor.u32 %v8107_v57, %v7700_v56 }
 0xc43   :  { %5374 = vmatpush.bf16.msra.mxu0 %v7560_v23  ;;  %5361 = vmatpush.bf16.msrb.mxu1 %v7620_v46  ;;  %v7684_v23 = vld [vmem:[%s8366_s6 + $0x10] sm:$0xf]  ;;  %s5557_s6 = sshll.u32 %s8376_s4, 4  ;;  %s5558_s6 = int_to_ptr.hbm [resolvable:$true] %s5557_s6 }
 0xc44   :  { %v7685_v41 = vor.u32 %v8103_v7, %v7684_v23  ;;  %s8178_s12 = sshra.s32 %s5558_s6, 4  ;;  %s8179_s12 = int_to_ptr.hbm [resolvable:$true] %s8178_s12 }
 0xc45   :  { %s8180_s20 = scalar_lea.hbm %s8179_s12, 4  ;;  %p8183_p1 = scmp.lt.s32.totalorder %s8179_s12, %s8376_s4 }
 0xc46   :  { %p8181_p0 = scmp.ne.s32.totalorder %s8179_s12, %s8180_s20  ;;  %p8184_p2 = scmp.lt.s32.totalorder %s8182_s27, %s8180_s20 }
 0xc47   :  { %5375 = vmatpush.bf16.msra.mxu0 %v7552_v60  ;;  %5362 = vmatpush.bf16.msrb.mxu1 %v7612_v31  ;;  %v7677_v60 = vor.u32 %v8101_v19, %v7676_v10 }
 0xc48   :  { %p8185_p3 = por %p8184_p2, %p8183_p1 }
 0xc4a   :  { %p8186_p4 = pnand %p8185_p3, %p8181_p0 }
 0xc4b   :  { %5514 = vmatpush.bf16.msra.mxu1 %v7733_v55  ;;  %5527 = vmatpush.bf16.msrb.mxu0 %v7737_v27 }
 0xc4f   :  { %5515 = vmatpush.bf16.msra.mxu1 %v7725_v33  ;;  %5528 = vmatpush.bf16.msrb.mxu0 %v7729_v37  ;;  %v5430_v33 = vperm.slane %v5428_v42, 0  ;;  %v5431_v37 = vperm.slane %v5428_v42, 1 }
 0xc53   :  { %5516 = vmatpush.bf16.msra.mxu1 %v7717_v12  ;;  %5529 = vmatpush.bf16.msrb.mxu0 %v7721_v15 }
 0xc57   :  { %5517 = vmatpush.bf16.msra.mxu1 %v7709_v48  ;;  %5530 = vmatpush.bf16.msrb.mxu0 %v7713_v51 }
 0xc5b   :  { %5518 = vmatpush.bf16.msra.mxu1 %v7701_v11  ;;  %5531 = vmatpush.bf16.msrb.mxu0 %v7705_v36 }
 0xc5f   :  { %5519 = vmatpush.bf16.msra.mxu1 %v7693_v3  ;;  %5532 = vmatpush.bf16.msrb.mxu0 %v7697_v30 }
 0xc63   :  { %5520 = vmatpush.bf16.msra.mxu1 %v7685_v41  ;;  %5533 = vmatpush.bf16.msrb.mxu0 %v7689_v1 }
 0xc67   :  { %5521 = vmatpush.bf16.msra.mxu1 %v7677_v60  ;;  %5534 = vmatpush.bf16.msrb.mxu0 %v7681_v4 }
 0xca7   :  { %v5125_v35 = vpop.f32.mrf.mxu1  ;;  %v5138_v62 = vpop.f32.mrf.mxu0 }
 0xca8   :  { %v5142_v39 = vpack.c.bf16 %v5125_v35, %v5125_v35  ;;  %v5143_v6 = vpack.c.bf16 %v5138_v62, %v5138_v62 }
 0xcaa   :  { %5350 = vmatmul.bf16.vlgmr.msrb.gmra.mxu3 %v5142_v39  ;;  %5376 = vmatmul.bf16.vlgmr.msra.gmra.mxu0 %v5142_v39 }
 0xcab   :  { %5389 = vmatmul.bf16.vlgmr.msrb.gmra.mxu2 %v5143_v6  ;;  %5363 = vmatmul.bf16.vlgmr.msrb.gmra.mxu1 %v5143_v6 }
 0xcaf   :  { %v5127_v9 = vpop.f32.mrf.mxu1  ;;  %v5140_v28 = vpop.f32.mrf.mxu0 }
 0xcba   :  { %7673 = vmatmul.msk.bf16.vlgmr.msra.gmra.mxu3 %vm3559_vm5, %v5394_v29 }
 0xd27   :  { %v5377_v13 = vpop.f32.mrf.mxu0 }
 0xd28   :  { %v5364_v50 = vpop.f32.mrf.mxu1  ;;  %v5378_v16 = vadd.f32 %v5377_v13, %v5179_v22 }
 0xd2d   :  { %v5351_v46 = vpop.f32.mrf.mxu3 }
 0xd2e   :  { %v5352_v25 = vadd.f32 %v5351_v46, %v5178_v24  ;;  %v5390_v31 = vpop.f32.mrf.mxu2 }
 0xd2f   :  { %v5379_v63 = vpop.f32.mrf.mxu0  ;;  %v5391_v32 = vadd.f32 %v5390_v31, %v5378_v16 }
 0xd30   :  { %v5365_v2 = vadd.f32 %v5364_v50, %v5352_v25  ;;  %v5366_v55 = vpop.f32.mrf.mxu1 }
 0xd35   :  { %v5353_v14 = vpop.f32.mrf.mxu3 }
 0xd36   :  { %v5392_v17 = vpop.f32.mrf.mxu2 }
 0xd3d   :  { %v5407_v5 = vpop.f32.mrf.mxu3 }
 0xd3e   :  { %v5411_v27 = vpack.c.bf16 %v5407_v5, %v5407_v5 }
 0xd40   :  { %5522 = vmatmul.bf16.vlgmr.msra.gmra.mxu1 %v5411_v27  ;;  %5535 = vmatmul.bf16.vlgmr.msrb.gmra.mxu0 %v5411_v27 }
 0xd45   :  { %v5409_v21 = vpop.f32.mrf.mxu3 }
 0xdbd   :  { %v5523_v18 = vpop.f32.mrf.mxu1  ;;  %v5536_v61 = vpop.f32.mrf.mxu0 }
 0xdbe   :  { %v5524_v20 = vadd.f32 %v5523_v18, %v5430_v33  ;;  %v5537_v34 = vadd.f32 %v5536_v61, %v5431_v37 }
 0xdc0   :  { %v5540_v12 = vadd.f32 %v5524_v20, %v5365_v2  ;;  %v5541_v15 = vadd.f32 %v5537_v34, %v5391_v32 }
 0xdc2   :  { %v5543_v35 = vmax.f32 %v5541_v15, 0.0  ;;  %v5542_v62 = vmax.f32 %v5540_v12, 0.0 }
 0xdc4   :  { %v5546_v39 = vrot.slane %v5543_v35, 6 }
 0xdc5   :  { %v5525_v6 = vpop.f32.mrf.mxu1  ;;  %v5538_v9 = vpop.f32.mrf.mxu0 }
 0xdc6   :  { %v5547_v28 = vsel %vm341_vm0, %v5542_v62, %v5546_v39 }
 0xdc7   :  { %5549 = vst [vmem:[#allocation2] sm:$0xf] %v5547_v28 }
 0xdc8   :  { %8189 = shalt.err (!%p8186_p4)
}
 0xdc9   :  { %5560 = dma.vmem_to_hbm [thread:$0]  %s5556_s30, 64, %s5558_s6, [#allocation3]  }
 0xdca   :  { %8190 = dma.done.wait [#allocation3], 64  }
 0xdcb   :  { %8191 = vsyncadd [#allocation3], 4294967232 }
 0xdcc   :  { %5565 = vsyncpa [#allocation3], 1 }

</bundles_post_ra>
